<compile_context>
chip_gen: v5e
topology: v5e:2x2
jax: 0.10.0
libtpu: 0.0.40
codegen_flags: <defaults>
</compile_context>

<pallas_src>
import functools

import jax
import jax.numpy as jnp
from jax.experimental import pallas as pl
from jax.experimental.pallas import tpu as pltpu


_NT_DIMS = (((1,), (1,)), ((), ()))   # contract last dims of both: A @ B^T


def _srcnn_kernel(p1_ref, w1_ref, b1_ref, w2_ref, b2_ref, w3_ref, b3_ref,
                  o_ref, a2p_ref, *, H, W, K3, C2, W_OFF):
    """Fused SRCNN forward for one batch element.

    p1_ref : (1, H*W, Kc1p)     conv1 im2col slab, bf16 (lane-dense)
    w1_ref : (Kc1p, 64) bf16    conv1 weight (rows zero-padded to Kc1p)
    b1_ref : (1, 64)    f32
    w2_ref : (64, 32)   bf16    conv2 (1x1) weight
    b2_ref : (1, 32)    f32
    w3_ref : (K3*K3, 8, 32) bf16  per-tap conv3 weights, out-ch padded 3->8
    b3_ref : (8, 1)     f32
    o_ref  : (1, 8, H*W)        lane-dense output tile
    a2p_ref: VMEM f32 scratch   zero-padded conv2 activation (spatial)
    """
    HW = H * W
    pad3 = (K3 - 1) // 2

    # ---- conv1 (9x9): one im2col matmul + bias + ReLU (f32 epilogue) -------
    a1 = jnp.dot(p1_ref[0], w1_ref[...],
                 preferred_element_type=jnp.float32)             # (HW, 64)
    a1 = jnp.maximum(a1 + b1_ref[...], 0.0)

    # ---- conv2 (1x1): plain matmul + bias + ReLU ----------------------------
    a2 = jnp.dot(a1.astype(jnp.bfloat16), w2_ref[...],
                 preferred_element_type=jnp.float32)             # (HW, 32)
    a2 = jnp.maximum(a2 + b2_ref[...], 0.0)

    # ---- conv3 (5x5): zero-padded VMEM scratch, 25-tap NT accumulation ------
    # Interior is written at sublane offset W_OFF (8-aligned) so the store is
    # unmasked; the per-tap reads are cheap unaligned loads.
    a2p_ref[...] = jnp.zeros_like(a2p_ref)
    a2p_ref[pad3:pad3 + H, W_OFF:W_OFF + W, :] = a2.reshape(H, W, C2)

    CP = w3_ref.shape[1]                                         # 8
    acc3 = jnp.zeros((CP, HW), jnp.float32)
    for dy in range(K3):
        for dx in range(K3):
            c0 = W_OFF - pad3 + dx
            patch = a2p_ref[dy:dy + H, c0:c0 + W, :].reshape(HW, C2)
            acc3 = acc3 + jax.lax.dot_general(
                w3_ref[dy * K3 + dx], patch.astype(jnp.bfloat16),
                dimension_numbers=_NT_DIMS,
                preferred_element_type=jnp.float32)              # (CP, HW)

    o_ref[0] = (acc3 + b3_ref[...]).astype(o_ref.dtype)


def srcnn_forward(params, x_nchw):
    """Matches SRCNN.forward: relu(conv1) -> relu(conv2) -> conv3. NCHW in/out."""
    N, C, H, W = x_nchw.shape
    K1 = params["w1"].shape[0]           # 9
    K3 = params["w3"].shape[0]           # 5
    C1 = params["w1"].shape[-1]          # 64
    C2 = params["w2"].shape[-1]          # 32
    pad1, pad3 = (K1 - 1) // 2, (K3 - 1) // 2
    HW = H * W
    CP = 8                               # conv3 out-channels padded 3 -> 8
    W_OFF = 8                            # aligned interior offset in conv3 scratch

    # NCHW -> NHWC
    x = jnp.transpose(x_nchw, (0, 2, 3, 1))

    # conv1 im2col slab, built in the wrapper so the 3-lane-wide raw input
    # never enters the kernel; contraction zero-padded up to a multiple of 128.
    # TODO(synk): for large images, move this im2col in-kernel with H-row
    # tiling (+K1-1 halo) to avoid the K1*K1 HBM blow-up and to fit v7x VMEM.
    xp = jnp.pad(x, ((0, 0), (pad1, pad1), (pad1, pad1), (0, 0)))
    taps = [xp[:, dy:dy + H, dx:dx + W, :]
            for dy in range(K1) for dx in range(K1)]
    kc1 = K1 * K1 * C
    kc1p = pl.cdiv(kc1, 128) * 128
    p1 = jnp.stack(taps, axis=3).reshape(N, HW, kc1)
    p1 = jnp.pad(p1, ((0, 0), (0, 0), (0, kc1p - kc1))).astype(jnp.bfloat16)

    w1 = jnp.pad(params["w1"].reshape(kc1, C1),
                 ((0, kc1p - kc1), (0, 0))).astype(jnp.bfloat16)
    b1 = params["b1"].reshape(1, C1).astype(jnp.float32)
    w2 = params["w2"].reshape(C1, C2).astype(jnp.bfloat16)
    b2 = params["b2"].reshape(1, C2).astype(jnp.float32)
    # conv3 weights as per-tap (CP, C2) blocks for the NT ("A @ B^T") matmuls.
    w3 = jnp.transpose(params["w3"], (0, 1, 3, 2))               # (K3,K3,C,C2)
    w3 = jnp.pad(w3, ((0, 0), (0, 0), (0, CP - C), (0, 0)))
    w3 = w3.reshape(K3 * K3, CP, C2).astype(jnp.bfloat16)
    b3 = jnp.pad(params["b3"], (0, CP - C)).reshape(CP, 1).astype(jnp.float32)

    kernel = functools.partial(_srcnn_kernel, H=H, W=W, K3=K3, C2=C2,
                               W_OFF=W_OFF)

    out = pl.pallas_call(
        kernel,
        out_shape=jax.ShapeDtypeStruct((N, CP, HW), x_nchw.dtype),
        grid_spec=pltpu.PrefetchScalarGridSpec(
            num_scalar_prefetch=0,
            grid=(N,),
            in_specs=[
                pl.BlockSpec((1, HW, kc1p), lambda n: (n, 0, 0)),
                pl.BlockSpec((kc1p, C1), lambda n: (0, 0)),
                pl.BlockSpec((1, C1), lambda n: (0, 0)),
                pl.BlockSpec((C1, C2), lambda n: (0, 0)),
                pl.BlockSpec((1, C2), lambda n: (0, 0)),
                pl.BlockSpec((K3 * K3, CP, C2), lambda n: (0, 0, 0)),
                pl.BlockSpec((CP, 1), lambda n: (0, 0)),
            ],
            out_specs=pl.BlockSpec((1, CP, HW), lambda n: (n, 0, 0)),
            scratch_shapes=[
                pltpu.VMEM((H + 2 * pad3, W + W_OFF + pad3, C2), jnp.float32),
            ],
        ),
        compiler_params=pltpu.CompilerParams(
            dimension_semantics=("parallel",)),
    )(p1, w1, b1, w2, b2, w3, b3)

    # (N, CP, HW) lane-dense tile -> NCHW, dropping the padded channels.
    return out[:, :C, :].reshape(N, C, H, W)


def init_srcnn_params(key, num_channels=3, dtype=jnp.float32):
    """Deterministic synthetic parameters matching the PyTorch module shapes.

    PyTorch conv weights are (Cout, Cin, K, K); we store them HWIO as
    (K, K, Cin, Cout).  (Real PyTorch weights would need an OIHW->HWIO
    transpose before use.)
    """
    k1, k2, k3, kb1, kb2, kb3 = jax.random.split(key, 6)

    def winit(k, K, cin, cout):
        fan_in = cin * K * K
        return (jax.random.normal(k, (K, K, cin, cout), dtype)
                * (1.0 / jnp.sqrt(fan_in)))

    return {
        "w1": winit(k1, 9, num_channels, 64),
        "b1": jax.random.normal(kb1, (64,), dtype) * 0.01,
        "w2": winit(k2, 1, 64, 32),
        "b2": jax.random.normal(kb2, (32,), dtype) * 0.01,
        "w3": winit(k3, 5, 32, num_channels),
        "b3": jax.random.normal(kb3, (num_channels,), dtype) * 0.01,
    }


if __name__ == "__main__":
    key = jax.random.PRNGKey(0)
    kx, kp = jax.random.split(key)

    x = jax.random.normal(kx, (2, 3, 16, 16), jnp.float32)
    params = init_srcnn_params(kp, num_channels=3)

    out = jax.jit(srcnn_forward)(params, x)
    out = jax.block_until_ready(out)
    assert out.shape == (2, 3, 16, 16)

    # Pure-JAX reference with the same bf16 operand rounding (f32 accumulation)
    # so the comparison is tight.
    def _bf(a):
        return a.astype(jnp.bfloat16).astype(jnp.float32)

    def ref_conv(xh, w, b, pad, relu):
        y = jax.lax.conv_general_dilated(
            _bf(xh), _bf(w), window_strides=(1, 1),
            padding=[(pad, pad), (pad, pad)],
            dimension_numbers=("NHWC", "HWIO", "NHWC"),
            precision=jax.lax.Precision.HIGHEST)
        y = y + b.astype(jnp.float32)
        return jnp.maximum(y, 0.0) if relu else y

    xh = jnp.transpose(x, (0, 2, 3, 1))
    r = ref_conv(xh, params["w1"], params["b1"], 4, True)
    r = ref_conv(r, params["w2"], params["b2"], 0, True)
    r = ref_conv(r, params["w3"], params["b3"], 2, False)
    r = jnp.transpose(r, (0, 3, 1, 2))

    err = float(jnp.max(jnp.abs(out - r)))
    assert jnp.allclose(out, r, atol=5e-3, rtol=5e-3), err

    print("KERNEL_OK")
</pallas_src>

<mosaic_0001>
module attributes {stable_mosaic.version = 11 : i64} {
  func.func @_srcnn_kernel(%arg0: i32, %arg1: memref<1x256x256xbf16, #tpu.memory_space<vmem>>, %arg2: memref<256x64xbf16, #tpu.memory_space<vmem>>, %arg3: memref<1x64xf32, #tpu.memory_space<vmem>>, %arg4: memref<64x32xbf16, #tpu.memory_space<vmem>>, %arg5: memref<1x32xf32, #tpu.memory_space<vmem>>, %arg6: memref<25x8x32xbf16, #tpu.memory_space<vmem>>, %arg7: memref<8x1xf32, #tpu.memory_space<vmem>>, %arg8: memref<1x8x256xf32, #tpu.memory_space<vmem>>, %arg9: memref<20x26x32xf32, #tpu.memory_space<vmem>>) attributes {dimension_semantics = [#tpu.dimension_semantics<parallel>], iteration_bounds = array<i64: 2>, scalar_prefetch = 0 : i64, scratch_operands = 1 : i64, tpu.core_type = #tpu.core_type<tc>, window_params = [{transform_indices = @transform_0, window_bounds = array<i64: 1, 256, 256>}, {pipeline_mode = #tpu.pipeline_mode<synchronous>, transform_indices = @transform_1, window_bounds = array<i64: 256, 64>}, {pipeline_mode = #tpu.pipeline_mode<synchronous>, transform_indices = @transform_2, window_bounds = array<i64: 1, 64>}, {pipeline_mode = #tpu.pipeline_mode<synchronous>, transform_indices = @transform_3, window_bounds = array<i64: 64, 32>}, {pipeline_mode = #tpu.pipeline_mode<synchronous>, transform_indices = @transform_4, window_bounds = array<i64: 1, 32>}, {pipeline_mode = #tpu.pipeline_mode<synchronous>, transform_indices = @transform_5, window_bounds = array<i64: 25, 8, 32>}, {pipeline_mode = #tpu.pipeline_mode<synchronous>, transform_indices = @transform_6, window_bounds = array<i64: 8, 1>}, {transform_indices = @transform_7, window_bounds = array<i64: 1, 8, 256>}]} {
    %c0 = arith.constant 0 : index
    %c0_0 = arith.constant 0 : index
    %c0_1 = arith.constant 0 : index
    %0 = vector.load %arg1[%c0, %c0_0, %c0_1] : memref<1x256x256xbf16, #tpu.memory_space<vmem>>, vector<1x256x256xbf16>
    %1 = vector.shape_cast %0 : vector<1x256x256xbf16> to vector<256x256xbf16>
    %c0_2 = arith.constant 0 : index
    %c0_3 = arith.constant 0 : index
    %2 = vector.load %arg2[%c0_2, %c0_3] : memref<256x64xbf16, #tpu.memory_space<vmem>>, vector<256x64xbf16>
    %cst = arith.constant dense<0.000000e+00> : vector<256x64xf32>
    %3 = tpu.matmul %1, %2, %cst {dimension_numbers = #tpu.dot_dimension_numbers<[1], [0], [0], [1], [0, 0, 1, 1], [], []>} : vector<256x256xbf16>, vector<256x64xbf16>, vector<256x64xf32> -> vector<256x64xf32>
    %c0_4 = arith.constant 0 : index
    %c0_5 = arith.constant 0 : index
    %4 = vector.load %arg3[%c0_4, %c0_5] : memref<1x64xf32, #tpu.memory_space<vmem>>, vector<1x64xf32>
    %5 = vector.broadcast %4 : vector<1x64xf32> to vector<256x64xf32>
    %6 = arith.addf %3, %5 : vector<256x64xf32>
    %cst_6 = arith.constant 0.000000e+00 : f32
    %7 = vector.broadcast %cst_6 : f32 to vector<256x64xf32>
    %8 = arith.maximumf %6, %7 : vector<256x64xf32>
    %9 = arith.truncf %8 : vector<256x64xf32> to vector<256x64xbf16>
    %c0_7 = arith.constant 0 : index
    %c0_8 = arith.constant 0 : index
    %10 = vector.load %arg4[%c0_7, %c0_8] : memref<64x32xbf16, #tpu.memory_space<vmem>>, vector<64x32xbf16>
    %cst_9 = arith.constant dense<0.000000e+00> : vector<256x32xf32>
    %11 = tpu.matmul %9, %10, %cst_9 {dimension_numbers = #tpu.dot_dimension_numbers<[1], [0], [0], [1], [0, 0, 1, 1], [], []>} : vector<256x64xbf16>, vector<64x32xbf16>, vector<256x32xf32> -> vector<256x32xf32>
    %c0_10 = arith.constant 0 : index
    %c0_11 = arith.constant 0 : index
    %12 = vector.load %arg5[%c0_10, %c0_11] : memref<1x32xf32, #tpu.memory_space<vmem>>, vector<1x32xf32>
    %13 = vector.broadcast %12 : vector<1x32xf32> to vector<256x32xf32>
    %14 = arith.addf %11, %13 : vector<256x32xf32>
    %cst_12 = arith.constant 0.000000e+00 : f32
    %15 = vector.broadcast %cst_12 : f32 to vector<256x32xf32>
    %16 = arith.maximumf %14, %15 : vector<256x32xf32>
    %cst_13 = arith.constant 0.000000e+00 : f32
    %17 = vector.broadcast %cst_13 : f32 to vector<20x26x32xf32>
    %c0_14 = arith.constant 0 : index
    %c0_15 = arith.constant 0 : index
    %c0_16 = arith.constant 0 : index
    %18 = vector.load %arg9[%c0_14, %c0_15, %c0_16] : memref<20x26x32xf32, #tpu.memory_space<vmem>>, vector<20x26x32xf32>
    tpu.vector_store %arg9[%c0_14, %c0_15, %c0_16], %17 {strides = array<i32>} : memref<20x26x32xf32, #tpu.memory_space<vmem>>, vector<20x26x32xf32>,
    %19 = vector.shape_cast %16 : vector<256x32xf32> to vector<16x16x32xf32>
    %c2 = arith.constant 2 : index
    %c8 = arith.constant 8 : index
    %c0_17 = arith.constant 0 : index
    %20 = vector.load %arg9[%c2, %c8, %c0_17] : memref<20x26x32xf32, #tpu.memory_space<vmem>>, vector<16x16x32xf32>
    tpu.vector_store %arg9[%c2, %c8, %c0_17], %19 {strides = array<i32>} : memref<20x26x32xf32, #tpu.memory_space<vmem>>, vector<16x16x32xf32>,
    %cst_18 = arith.constant 0.000000e+00 : f32
    %21 = vector.broadcast %cst_18 : f32 to vector<8x256xf32>
    %c0_19 = arith.constant 0 : index
    %c6 = arith.constant 6 : index
    %c0_20 = arith.constant 0 : index
    %22 = vector.load %arg9[%c0_19, %c6, %c0_20] : memref<20x26x32xf32, #tpu.memory_space<vmem>>, vector<16x16x32xf32>
    %23 = vector.shape_cast %22 : vector<16x16x32xf32> to vector<256x32xf32>
    %c0_21 = arith.constant 0 : index
    %c0_22 = arith.constant 0 : index
    %c0_23 = arith.constant 0 : index
    %24 = vector.load %arg6[%c0_21, %c0_22, %c0_23] : memref<25x8x32xbf16, #tpu.memory_space<vmem>>, vector<1x8x32xbf16>
    %25 = vector.shape_cast %24 : vector<1x8x32xbf16> to vector<8x32xbf16>
    %26 = arith.truncf %23 : vector<256x32xf32> to vector<256x32xbf16>
    %cst_24 = arith.constant dense<0.000000e+00> : vector<8x256xf32>
    %27 = tpu.matmul %25, %26, %cst_24 {dimension_numbers = #tpu.dot_dimension_numbers<[1], [1], [0], [0], [0, 0, 1, 0], [], []>} : vector<8x32xbf16>, vector<256x32xbf16>, vector<8x256xf32> -> vector<8x256xf32>
    %28 = arith.addf %21, %27 : vector<8x256xf32>
    %c0_25 = arith.constant 0 : index
    %c7 = arith.constant 7 : index
    %c0_26 = arith.constant 0 : index
    %29 = vector.load %arg9[%c0_25, %c7, %c0_26] : memref<20x26x32xf32, #tpu.memory_space<vmem>>, vector<16x16x32xf32>
    %30 = vector.shape_cast %29 : vector<16x16x32xf32> to vector<256x32xf32>
    %c1 = arith.constant 1 : index
    %c0_27 = arith.constant 0 : index
    %c0_28 = arith.constant 0 : index
    %31 = vector.load %arg6[%c1, %c0_27, %c0_28] : memref<25x8x32xbf16, #tpu.memory_space<vmem>>, vector<1x8x32xbf16>
    %32 = vector.shape_cast %31 : vector<1x8x32xbf16> to vector<8x32xbf16>
    %33 = arith.truncf %30 : vector<256x32xf32> to vector<256x32xbf16>
    %cst_29 = arith.constant dense<0.000000e+00> : vector<8x256xf32>
    %34 = tpu.matmul %32, %33, %cst_29 {dimension_numbers = #tpu.dot_dimension_numbers<[1], [1], [0], [0], [0, 0, 1, 0], [], []>} : vector<8x32xbf16>, vector<256x32xbf16>, vector<8x256xf32> -> vector<8x256xf32>
    %35 = arith.addf %28, %34 : vector<8x256xf32>
    %c0_30 = arith.constant 0 : index
    %c8_31 = arith.constant 8 : index
    %c0_32 = arith.constant 0 : index
    %36 = vector.load %arg9[%c0_30, %c8_31, %c0_32] : memref<20x26x32xf32, #tpu.memory_space<vmem>>, vector<16x16x32xf32>
    %37 = vector.shape_cast %36 : vector<16x16x32xf32> to vector<256x32xf32>
    %c2_33 = arith.constant 2 : index
    %c0_34 = arith.constant 0 : index
    %c0_35 = arith.constant 0 : index
    %38 = vector.load %arg6[%c2_33, %c0_34, %c0_35] : memref<25x8x32xbf16, #tpu.memory_space<vmem>>, vector<1x8x32xbf16>
    %39 = vector.shape_cast %38 : vector<1x8x32xbf16> to vector<8x32xbf16>
    %40 = arith.truncf %37 : vector<256x32xf32> to vector<256x32xbf16>
    %cst_36 = arith.constant dense<0.000000e+00> : vector<8x256xf32>
    %41 = tpu.matmul %39, %40, %cst_36 {dimension_numbers = #tpu.dot_dimension_numbers<[1], [1], [0], [0], [0, 0, 1, 0], [], []>} : vector<8x32xbf16>, vector<256x32xbf16>, vector<8x256xf32> -> vector<8x256xf32>
    %42 = arith.addf %35, %41 : vector<8x256xf32>
    %c0_37 = arith.constant 0 : index
    %c9 = arith.constant 9 : index
    %c0_38 = arith.constant 0 : index
    %43 = vector.load %arg9[%c0_37, %c9, %c0_38] : memref<20x26x32xf32, #tpu.memory_space<vmem>>, vector<16x16x32xf32>
    %44 = vector.shape_cast %43 : vector<16x16x32xf32> to vector<256x32xf32>
    %c3 = arith.constant 3 : index
    %c0_39 = arith.constant 0 : index
    %c0_40 = arith.constant 0 : index
    %45 = vector.load %arg6[%c3, %c0_39, %c0_40] : memref<25x8x32xbf16, #tpu.memory_space<vmem>>, vector<1x8x32xbf16>
    %46 = vector.shape_cast %45 : vector<1x8x32xbf16> to vector<8x32xbf16>
    %47 = arith.truncf %44 : vector<256x32xf32> to vector<256x32xbf16>
    %cst_41 = arith.constant dense<0.000000e+00> : vector<8x256xf32>
    %48 = tpu.matmul %46, %47, %cst_41 {dimension_numbers = #tpu.dot_dimension_numbers<[1], [1], [0], [0], [0, 0, 1, 0], [], []>} : vector<8x32xbf16>, vector<256x32xbf16>, vector<8x256xf32> -> vector<8x256xf32>
    %49 = arith.addf %42, %48 : vector<8x256xf32>
    %c0_42 = arith.constant 0 : index
    %c10 = arith.constant 10 : index
    %c0_43 = arith.constant 0 : index
    %50 = vector.load %arg9[%c0_42, %c10, %c0_43] : memref<20x26x32xf32, #tpu.memory_space<vmem>>, vector<16x16x32xf32>
    %51 = vector.shape_cast %50 : vector<16x16x32xf32> to vector<256x32xf32>
    %c4 = arith.constant 4 : index
    %c0_44 = arith.constant 0 : index
    %c0_45 = arith.constant 0 : index
    %52 = vector.load %arg6[%c4, %c0_44, %c0_45] : memref<25x8x32xbf16, #tpu.memory_space<vmem>>, vector<1x8x32xbf16>
    %53 = vector.shape_cast %52 : vector<1x8x32xbf16> to vector<8x32xbf16>
    %54 = arith.truncf %51 : vector<256x32xf32> to vector<256x32xbf16>
    %cst_46 = arith.constant dense<0.000000e+00> : vector<8x256xf32>
    %55 = tpu.matmul %53, %54, %cst_46 {dimension_numbers = #tpu.dot_dimension_numbers<[1], [1], [0], [0], [0, 0, 1, 0], [], []>} : vector<8x32xbf16>, vector<256x32xbf16>, vector<8x256xf32> -> vector<8x256xf32>
    %56 = arith.addf %49, %55 : vector<8x256xf32>
    %c1_47 = arith.constant 1 : index
    %c6_48 = arith.constant 6 : index
    %c0_49 = arith.constant 0 : index
    %57 = vector.load %arg9[%c1_47, %c6_48, %c0_49] : memref<20x26x32xf32, #tpu.memory_space<vmem>>, vector<16x16x32xf32>
    %58 = vector.shape_cast %57 : vector<16x16x32xf32> to vector<256x32xf32>
    %c5 = arith.constant 5 : index
    %c0_50 = arith.constant 0 : index
    %c0_51 = arith.constant 0 : index
    %59 = vector.load %arg6[%c5, %c0_50, %c0_51] : memref<25x8x32xbf16, #tpu.memory_space<vmem>>, vector<1x8x32xbf16>
    %60 = vector.shape_cast %59 : vector<1x8x32xbf16> to vector<8x32xbf16>
    %61 = arith.truncf %58 : vector<256x32xf32> to vector<256x32xbf16>
    %cst_52 = arith.constant dense<0.000000e+00> : vector<8x256xf32>
    %62 = tpu.matmul %60, %61, %cst_52 {dimension_numbers = #tpu.dot_dimension_numbers<[1], [1], [0], [0], [0, 0, 1, 0], [], []>} : vector<8x32xbf16>, vector<256x32xbf16>, vector<8x256xf32> -> vector<8x256xf32>
    %63 = arith.addf %56, %62 : vector<8x256xf32>
    %c1_53 = arith.constant 1 : index
    %c7_54 = arith.constant 7 : index
    %c0_55 = arith.constant 0 : index
    %64 = vector.load %arg9[%c1_53, %c7_54, %c0_55] : memref<20x26x32xf32, #tpu.memory_space<vmem>>, vector<16x16x32xf32>
    %65 = vector.shape_cast %64 : vector<16x16x32xf32> to vector<256x32xf32>
    %c6_56 = arith.constant 6 : index
    %c0_57 = arith.constant 0 : index
    %c0_58 = arith.constant 0 : index
    %66 = vector.load %arg6[%c6_56, %c0_57, %c0_58] : memref<25x8x32xbf16, #tpu.memory_space<vmem>>, vector<1x8x32xbf16>
    %67 = vector.shape_cast %66 : vector<1x8x32xbf16> to vector<8x32xbf16>
    %68 = arith.truncf %65 : vector<256x32xf32> to vector<256x32xbf16>
    %cst_59 = arith.constant dense<0.000000e+00> : vector<8x256xf32>
    %69 = tpu.matmul %67, %68, %cst_59 {dimension_numbers = #tpu.dot_dimension_numbers<[1], [1], [0], [0], [0, 0, 1, 0], [], []>} : vector<8x32xbf16>, vector<256x32xbf16>, vector<8x256xf32> -> vector<8x256xf32>
    %70 = arith.addf %63, %69 : vector<8x256xf32>
    %c1_60 = arith.constant 1 : index
    %c8_61 = arith.constant 8 : index
    %c0_62 = arith.constant 0 : index
    %71 = vector.load %arg9[%c1_60, %c8_61, %c0_62] : memref<20x26x32xf32, #tpu.memory_space<vmem>>, vector<16x16x32xf32>
    %72 = vector.shape_cast %71 : vector<16x16x32xf32> to vector<256x32xf32>
    %c7_63 = arith.constant 7 : index
    %c0_64 = arith.constant 0 : index
    %c0_65 = arith.constant 0 : index
    %73 = vector.load %arg6[%c7_63, %c0_64, %c0_65] : memref<25x8x32xbf16, #tpu.memory_space<vmem>>, vector<1x8x32xbf16>
    %74 = vector.shape_cast %73 : vector<1x8x32xbf16> to vector<8x32xbf16>
    %75 = arith.truncf %72 : vector<256x32xf32> to vector<256x32xbf16>
    %cst_66 = arith.constant dense<0.000000e+00> : vector<8x256xf32>
    %76 = tpu.matmul %74, %75, %cst_66 {dimension_numbers = #tpu.dot_dimension_numbers<[1], [1], [0], [0], [0, 0, 1, 0], [], []>} : vector<8x32xbf16>, vector<256x32xbf16>, vector<8x256xf32> -> vector<8x256xf32>
    %77 = arith.addf %70, %76 : vector<8x256xf32>
    %c1_67 = arith.constant 1 : index
    %c9_68 = arith.constant 9 : index
    %c0_69 = arith.constant 0 : index
    %78 = vector.load %arg9[%c1_67, %c9_68, %c0_69] : memref<20x26x32xf32, #tpu.memory_space<vmem>>, vector<16x16x32xf32>
    %79 = vector.shape_cast %78 : vector<16x16x32xf32> to vector<256x32xf32>
    %c8_70 = arith.constant 8 : index
    %c0_71 = arith.constant 0 : index
    %c0_72 = arith.constant 0 : index
    %80 = vector.load %arg6[%c8_70, %c0_71, %c0_72] : memref<25x8x32xbf16, #tpu.memory_space<vmem>>, vector<1x8x32xbf16>
    %81 = vector.shape_cast %80 : vector<1x8x32xbf16> to vector<8x32xbf16>
    %82 = arith.truncf %79 : vector<256x32xf32> to vector<256x32xbf16>
    %cst_73 = arith.constant dense<0.000000e+00> : vector<8x256xf32>
    %83 = tpu.matmul %81, %82, %cst_73 {dimension_numbers = #tpu.dot_dimension_numbers<[1], [1], [0], [0], [0, 0, 1, 0], [], []>} : vector<8x32xbf16>, vector<256x32xbf16>, vector<8x256xf32> -> vector<8x256xf32>
    %84 = arith.addf %77, %83 : vector<8x256xf32>
    %c1_74 = arith.constant 1 : index
    %c10_75 = arith.constant 10 : index
    %c0_76 = arith.constant 0 : index
    %85 = vector.load %arg9[%c1_74, %c10_75, %c0_76] : memref<20x26x32xf32, #tpu.memory_space<vmem>>, vector<16x16x32xf32>
    %86 = vector.shape_cast %85 : vector<16x16x32xf32> to vector<256x32xf32>
    %c9_77 = arith.constant 9 : index
    %c0_78 = arith.constant 0 : index
    %c0_79 = arith.constant 0 : index
    %87 = vector.load %arg6[%c9_77, %c0_78, %c0_79] : memref<25x8x32xbf16, #tpu.memory_space<vmem>>, vector<1x8x32xbf16>
    %88 = vector.shape_cast %87 : vector<1x8x32xbf16> to vector<8x32xbf16>
    %89 = arith.truncf %86 : vector<256x32xf32> to vector<256x32xbf16>
    %cst_80 = arith.constant dense<0.000000e+00> : vector<8x256xf32>
    %90 = tpu.matmul %88, %89, %cst_80 {dimension_numbers = #tpu.dot_dimension_numbers<[1], [1], [0], [0], [0, 0, 1, 0], [], []>} : vector<8x32xbf16>, vector<256x32xbf16>, vector<8x256xf32> -> vector<8x256xf32>
    %91 = arith.addf %84, %90 : vector<8x256xf32>
    %c2_81 = arith.constant 2 : index
    %c6_82 = arith.constant 6 : index
    %c0_83 = arith.constant 0 : index
    %92 = vector.load %arg9[%c2_81, %c6_82, %c0_83] : memref<20x26x32xf32, #tpu.memory_space<vmem>>, vector<16x16x32xf32>
    %93 = vector.shape_cast %92 : vector<16x16x32xf32> to vector<256x32xf32>
    %c10_84 = arith.constant 10 : index
    %c0_85 = arith.constant 0 : index
    %c0_86 = arith.constant 0 : index
    %94 = vector.load %arg6[%c10_84, %c0_85, %c0_86] : memref<25x8x32xbf16, #tpu.memory_space<vmem>>, vector<1x8x32xbf16>
    %95 = vector.shape_cast %94 : vector<1x8x32xbf16> to vector<8x32xbf16>
    %96 = arith.truncf %93 : vector<256x32xf32> to vector<256x32xbf16>
    %cst_87 = arith.constant dense<0.000000e+00> : vector<8x256xf32>
    %97 = tpu.matmul %95, %96, %cst_87 {dimension_numbers = #tpu.dot_dimension_numbers<[1], [1], [0], [0], [0, 0, 1, 0], [], []>} : vector<8x32xbf16>, vector<256x32xbf16>, vector<8x256xf32> -> vector<8x256xf32>
    %98 = arith.addf %91, %97 : vector<8x256xf32>
    %c2_88 = arith.constant 2 : index
    %c7_89 = arith.constant 7 : index
    %c0_90 = arith.constant 0 : index
    %99 = vector.load %arg9[%c2_88, %c7_89, %c0_90] : memref<20x26x32xf32, #tpu.memory_space<vmem>>, vector<16x16x32xf32>
    %100 = vector.shape_cast %99 : vector<16x16x32xf32> to vector<256x32xf32>
    %c11 = arith.constant 11 : index
    %c0_91 = arith.constant 0 : index
    %c0_92 = arith.constant 0 : index
    %101 = vector.load %arg6[%c11, %c0_91, %c0_92] : memref<25x8x32xbf16, #tpu.memory_space<vmem>>, vector<1x8x32xbf16>
    %102 = vector.shape_cast %101 : vector<1x8x32xbf16> to vector<8x32xbf16>
    %103 = arith.truncf %100 : vector<256x32xf32> to vector<256x32xbf16>
    %cst_93 = arith.constant dense<0.000000e+00> : vector<8x256xf32>
    %104 = tpu.matmul %102, %103, %cst_93 {dimension_numbers = #tpu.dot_dimension_numbers<[1], [1], [0], [0], [0, 0, 1, 0], [], []>} : vector<8x32xbf16>, vector<256x32xbf16>, vector<8x256xf32> -> vector<8x256xf32>
    %105 = arith.addf %98, %104 : vector<8x256xf32>
    %c2_94 = arith.constant 2 : index
    %c8_95 = arith.constant 8 : index
    %c0_96 = arith.constant 0 : index
    %106 = vector.load %arg9[%c2_94, %c8_95, %c0_96] : memref<20x26x32xf32, #tpu.memory_space<vmem>>, vector<16x16x32xf32>
    %107 = vector.shape_cast %106 : vector<16x16x32xf32> to vector<256x32xf32>
    %c12 = arith.constant 12 : index
    %c0_97 = arith.constant 0 : index
    %c0_98 = arith.constant 0 : index
    %108 = vector.load %arg6[%c12, %c0_97, %c0_98] : memref<25x8x32xbf16, #tpu.memory_space<vmem>>, vector<1x8x32xbf16>
    %109 = vector.shape_cast %108 : vector<1x8x32xbf16> to vector<8x32xbf16>
    %110 = arith.truncf %107 : vector<256x32xf32> to vector<256x32xbf16>
    %cst_99 = arith.constant dense<0.000000e+00> : vector<8x256xf32>
    %111 = tpu.matmul %109, %110, %cst_99 {dimension_numbers = #tpu.dot_dimension_numbers<[1], [1], [0], [0], [0, 0, 1, 0], [], []>} : vector<8x32xbf16>, vector<256x32xbf16>, vector<8x256xf32> -> vector<8x256xf32>
    %112 = arith.addf %105, %111 : vector<8x256xf32>
    %c2_100 = arith.constant 2 : index
    %c9_101 = arith.constant 9 : index
    %c0_102 = arith.constant 0 : index
    %113 = vector.load %arg9[%c2_100, %c9_101, %c0_102] : memref<20x26x32xf32, #tpu.memory_space<vmem>>, vector<16x16x32xf32>
    %114 = vector.shape_cast %113 : vector<16x16x32xf32> to vector<256x32xf32>
    %c13 = arith.constant 13 : index
    %c0_103 = arith.constant 0 : index
    %c0_104 = arith.constant 0 : index
    %115 = vector.load %arg6[%c13, %c0_103, %c0_104] : memref<25x8x32xbf16, #tpu.memory_space<vmem>>, vector<1x8x32xbf16>
    %116 = vector.shape_cast %115 : vector<1x8x32xbf16> to vector<8x32xbf16>
    %117 = arith.truncf %114 : vector<256x32xf32> to vector<256x32xbf16>
    %cst_105 = arith.constant dense<0.000000e+00> : vector<8x256xf32>
    %118 = tpu.matmul %116, %117, %cst_105 {dimension_numbers = #tpu.dot_dimension_numbers<[1], [1], [0], [0], [0, 0, 1, 0], [], []>} : vector<8x32xbf16>, vector<256x32xbf16>, vector<8x256xf32> -> vector<8x256xf32>
    %119 = arith.addf %112, %118 : vector<8x256xf32>
    %c2_106 = arith.constant 2 : index
    %c10_107 = arith.constant 10 : index
    %c0_108 = arith.constant 0 : index
    %120 = vector.load %arg9[%c2_106, %c10_107, %c0_108] : memref<20x26x32xf32, #tpu.memory_space<vmem>>, vector<16x16x32xf32>
    %121 = vector.shape_cast %120 : vector<16x16x32xf32> to vector<256x32xf32>
    %c14 = arith.constant 14 : index
    %c0_109 = arith.constant 0 : index
    %c0_110 = arith.constant 0 : index
    %122 = vector.load %arg6[%c14, %c0_109, %c0_110] : memref<25x8x32xbf16, #tpu.memory_space<vmem>>, vector<1x8x32xbf16>
    %123 = vector.shape_cast %122 : vector<1x8x32xbf16> to vector<8x32xbf16>
    %124 = arith.truncf %121 : vector<256x32xf32> to vector<256x32xbf16>
    %cst_111 = arith.constant dense<0.000000e+00> : vector<8x256xf32>
    %125 = tpu.matmul %123, %124, %cst_111 {dimension_numbers = #tpu.dot_dimension_numbers<[1], [1], [0], [0], [0, 0, 1, 0], [], []>} : vector<8x32xbf16>, vector<256x32xbf16>, vector<8x256xf32> -> vector<8x256xf32>
    %126 = arith.addf %119, %125 : vector<8x256xf32>
    %c3_112 = arith.constant 3 : index
    %c6_113 = arith.constant 6 : index
    %c0_114 = arith.constant 0 : index
    %127 = vector.load %arg9[%c3_112, %c6_113, %c0_114] : memref<20x26x32xf32, #tpu.memory_space<vmem>>, vector<16x16x32xf32>
    %128 = vector.shape_cast %127 : vector<16x16x32xf32> to vector<256x32xf32>
    %c15 = arith.constant 15 : index
    %c0_115 = arith.constant 0 : index
    %c0_116 = arith.constant 0 : index
    %129 = vector.load %arg6[%c15, %c0_115, %c0_116] : memref<25x8x32xbf16, #tpu.memory_space<vmem>>, vector<1x8x32xbf16>
    %130 = vector.shape_cast %129 : vector<1x8x32xbf16> to vector<8x32xbf16>
    %131 = arith.truncf %128 : vector<256x32xf32> to vector<256x32xbf16>
    %cst_117 = arith.constant dense<0.000000e+00> : vector<8x256xf32>
    %132 = tpu.matmul %130, %131, %cst_117 {dimension_numbers = #tpu.dot_dimension_numbers<[1], [1], [0], [0], [0, 0, 1, 0], [], []>} : vector<8x32xbf16>, vector<256x32xbf16>, vector<8x256xf32> -> vector<8x256xf32>
    %133 = arith.addf %126, %132 : vector<8x256xf32>
    %c3_118 = arith.constant 3 : index
    %c7_119 = arith.constant 7 : index
    %c0_120 = arith.constant 0 : index
    %134 = vector.load %arg9[%c3_118, %c7_119, %c0_120] : memref<20x26x32xf32, #tpu.memory_space<vmem>>, vector<16x16x32xf32>
    %135 = vector.shape_cast %134 : vector<16x16x32xf32> to vector<256x32xf32>
    %c16 = arith.constant 16 : index
    %c0_121 = arith.constant 0 : index
    %c0_122 = arith.constant 0 : index
    %136 = vector.load %arg6[%c16, %c0_121, %c0_122] : memref<25x8x32xbf16, #tpu.memory_space<vmem>>, vector<1x8x32xbf16>
    %137 = vector.shape_cast %136 : vector<1x8x32xbf16> to vector<8x32xbf16>
    %138 = arith.truncf %135 : vector<256x32xf32> to vector<256x32xbf16>
    %cst_123 = arith.constant dense<0.000000e+00> : vector<8x256xf32>
    %139 = tpu.matmul %137, %138, %cst_123 {dimension_numbers = #tpu.dot_dimension_numbers<[1], [1], [0], [0], [0, 0, 1, 0], [], []>} : vector<8x32xbf16>, vector<256x32xbf16>, vector<8x256xf32> -> vector<8x256xf32>
    %140 = arith.addf %133, %139 : vector<8x256xf32>
    %c3_124 = arith.constant 3 : index
    %c8_125 = arith.constant 8 : index
    %c0_126 = arith.constant 0 : index
    %141 = vector.load %arg9[%c3_124, %c8_125, %c0_126] : memref<20x26x32xf32, #tpu.memory_space<vmem>>, vector<16x16x32xf32>
    %142 = vector.shape_cast %141 : vector<16x16x32xf32> to vector<256x32xf32>
    %c17 = arith.constant 17 : index
    %c0_127 = arith.constant 0 : index
    %c0_128 = arith.constant 0 : index
    %143 = vector.load %arg6[%c17, %c0_127, %c0_128] : memref<25x8x32xbf16, #tpu.memory_space<vmem>>, vector<1x8x32xbf16>
    %144 = vector.shape_cast %143 : vector<1x8x32xbf16> to vector<8x32xbf16>
    %145 = arith.truncf %142 : vector<256x32xf32> to vector<256x32xbf16>
    %cst_129 = arith.constant dense<0.000000e+00> : vector<8x256xf32>
    %146 = tpu.matmul %144, %145, %cst_129 {dimension_numbers = #tpu.dot_dimension_numbers<[1], [1], [0], [0], [0, 0, 1, 0], [], []>} : vector<8x32xbf16>, vector<256x32xbf16>, vector<8x256xf32> -> vector<8x256xf32>
    %147 = arith.addf %140, %146 : vector<8x256xf32>
    %c3_130 = arith.constant 3 : index
    %c9_131 = arith.constant 9 : index
    %c0_132 = arith.constant 0 : index
    %148 = vector.load %arg9[%c3_130, %c9_131, %c0_132] : memref<20x26x32xf32, #tpu.memory_space<vmem>>, vector<16x16x32xf32>
    %149 = vector.shape_cast %148 : vector<16x16x32xf32> to vector<256x32xf32>
    %c18 = arith.constant 18 : index
    %c0_133 = arith.constant 0 : index
    %c0_134 = arith.constant 0 : index
    %150 = vector.load %arg6[%c18, %c0_133, %c0_134] : memref<25x8x32xbf16, #tpu.memory_space<vmem>>, vector<1x8x32xbf16>
    %151 = vector.shape_cast %150 : vector<1x8x32xbf16> to vector<8x32xbf16>
    %152 = arith.truncf %149 : vector<256x32xf32> to vector<256x32xbf16>
    %cst_135 = arith.constant dense<0.000000e+00> : vector<8x256xf32>
    %153 = tpu.matmul %151, %152, %cst_135 {dimension_numbers = #tpu.dot_dimension_numbers<[1], [1], [0], [0], [0, 0, 1, 0], [], []>} : vector<8x32xbf16>, vector<256x32xbf16>, vector<8x256xf32> -> vector<8x256xf32>
    %154 = arith.addf %147, %153 : vector<8x256xf32>
    %c3_136 = arith.constant 3 : index
    %c10_137 = arith.constant 10 : index
    %c0_138 = arith.constant 0 : index
    %155 = vector.load %arg9[%c3_136, %c10_137, %c0_138] : memref<20x26x32xf32, #tpu.memory_space<vmem>>, vector<16x16x32xf32>
    %156 = vector.shape_cast %155 : vector<16x16x32xf32> to vector<256x32xf32>
    %c19 = arith.constant 19 : index
    %c0_139 = arith.constant 0 : index
    %c0_140 = arith.constant 0 : index
    %157 = vector.load %arg6[%c19, %c0_139, %c0_140] : memref<25x8x32xbf16, #tpu.memory_space<vmem>>, vector<1x8x32xbf16>
    %158 = vector.shape_cast %157 : vector<1x8x32xbf16> to vector<8x32xbf16>
    %159 = arith.truncf %156 : vector<256x32xf32> to vector<256x32xbf16>
    %cst_141 = arith.constant dense<0.000000e+00> : vector<8x256xf32>
    %160 = tpu.matmul %158, %159, %cst_141 {dimension_numbers = #tpu.dot_dimension_numbers<[1], [1], [0], [0], [0, 0, 1, 0], [], []>} : vector<8x32xbf16>, vector<256x32xbf16>, vector<8x256xf32> -> vector<8x256xf32>
    %161 = arith.addf %154, %160 : vector<8x256xf32>
    %c4_142 = arith.constant 4 : index
    %c6_143 = arith.constant 6 : index
    %c0_144 = arith.constant 0 : index
    %162 = vector.load %arg9[%c4_142, %c6_143, %c0_144] : memref<20x26x32xf32, #tpu.memory_space<vmem>>, vector<16x16x32xf32>
    %163 = vector.shape_cast %162 : vector<16x16x32xf32> to vector<256x32xf32>
    %c20 = arith.constant 20 : index
    %c0_145 = arith.constant 0 : index
    %c0_146 = arith.constant 0 : index
    %164 = vector.load %arg6[%c20, %c0_145, %c0_146] : memref<25x8x32xbf16, #tpu.memory_space<vmem>>, vector<1x8x32xbf16>
    %165 = vector.shape_cast %164 : vector<1x8x32xbf16> to vector<8x32xbf16>
    %166 = arith.truncf %163 : vector<256x32xf32> to vector<256x32xbf16>
    %cst_147 = arith.constant dense<0.000000e+00> : vector<8x256xf32>
    %167 = tpu.matmul %165, %166, %cst_147 {dimension_numbers = #tpu.dot_dimension_numbers<[1], [1], [0], [0], [0, 0, 1, 0], [], []>} : vector<8x32xbf16>, vector<256x32xbf16>, vector<8x256xf32> -> vector<8x256xf32>
    %168 = arith.addf %161, %167 : vector<8x256xf32>
    %c4_148 = arith.constant 4 : index
    %c7_149 = arith.constant 7 : index
    %c0_150 = arith.constant 0 : index
    %169 = vector.load %arg9[%c4_148, %c7_149, %c0_150] : memref<20x26x32xf32, #tpu.memory_space<vmem>>, vector<16x16x32xf32>
    %170 = vector.shape_cast %169 : vector<16x16x32xf32> to vector<256x32xf32>
    %c21 = arith.constant 21 : index
    %c0_151 = arith.constant 0 : index
    %c0_152 = arith.constant 0 : index
    %171 = vector.load %arg6[%c21, %c0_151, %c0_152] : memref<25x8x32xbf16, #tpu.memory_space<vmem>>, vector<1x8x32xbf16>
    %172 = vector.shape_cast %171 : vector<1x8x32xbf16> to vector<8x32xbf16>
    %173 = arith.truncf %170 : vector<256x32xf32> to vector<256x32xbf16>
    %cst_153 = arith.constant dense<0.000000e+00> : vector<8x256xf32>
    %174 = tpu.matmul %172, %173, %cst_153 {dimension_numbers = #tpu.dot_dimension_numbers<[1], [1], [0], [0], [0, 0, 1, 0], [], []>} : vector<8x32xbf16>, vector<256x32xbf16>, vector<8x256xf32> -> vector<8x256xf32>
    %175 = arith.addf %168, %174 : vector<8x256xf32>
    %c4_154 = arith.constant 4 : index
    %c8_155 = arith.constant 8 : index
    %c0_156 = arith.constant 0 : index
    %176 = vector.load %arg9[%c4_154, %c8_155, %c0_156] : memref<20x26x32xf32, #tpu.memory_space<vmem>>, vector<16x16x32xf32>
    %177 = vector.shape_cast %176 : vector<16x16x32xf32> to vector<256x32xf32>
    %c22 = arith.constant 22 : index
    %c0_157 = arith.constant 0 : index
    %c0_158 = arith.constant 0 : index
    %178 = vector.load %arg6[%c22, %c0_157, %c0_158] : memref<25x8x32xbf16, #tpu.memory_space<vmem>>, vector<1x8x32xbf16>
    %179 = vector.shape_cast %178 : vector<1x8x32xbf16> to vector<8x32xbf16>
    %180 = arith.truncf %177 : vector<256x32xf32> to vector<256x32xbf16>
    %cst_159 = arith.constant dense<0.000000e+00> : vector<8x256xf32>
    %181 = tpu.matmul %179, %180, %cst_159 {dimension_numbers = #tpu.dot_dimension_numbers<[1], [1], [0], [0], [0, 0, 1, 0], [], []>} : vector<8x32xbf16>, vector<256x32xbf16>, vector<8x256xf32> -> vector<8x256xf32>
    %182 = arith.addf %175, %181 : vector<8x256xf32>
    %c4_160 = arith.constant 4 : index
    %c9_161 = arith.constant 9 : index
    %c0_162 = arith.constant 0 : index
    %183 = vector.load %arg9[%c4_160, %c9_161, %c0_162] : memref<20x26x32xf32, #tpu.memory_space<vmem>>, vector<16x16x32xf32>
    %184 = vector.shape_cast %183 : vector<16x16x32xf32> to vector<256x32xf32>
    %c23 = arith.constant 23 : index
    %c0_163 = arith.constant 0 : index
    %c0_164 = arith.constant 0 : index
    %185 = vector.load %arg6[%c23, %c0_163, %c0_164] : memref<25x8x32xbf16, #tpu.memory_space<vmem>>, vector<1x8x32xbf16>
    %186 = vector.shape_cast %185 : vector<1x8x32xbf16> to vector<8x32xbf16>
    %187 = arith.truncf %184 : vector<256x32xf32> to vector<256x32xbf16>
    %cst_165 = arith.constant dense<0.000000e+00> : vector<8x256xf32>
    %188 = tpu.matmul %186, %187, %cst_165 {dimension_numbers = #tpu.dot_dimension_numbers<[1], [1], [0], [0], [0, 0, 1, 0], [], []>} : vector<8x32xbf16>, vector<256x32xbf16>, vector<8x256xf32> -> vector<8x256xf32>
    %189 = arith.addf %182, %188 : vector<8x256xf32>
    %c4_166 = arith.constant 4 : index
    %c10_167 = arith.constant 10 : index
    %c0_168 = arith.constant 0 : index
    %190 = vector.load %arg9[%c4_166, %c10_167, %c0_168] : memref<20x26x32xf32, #tpu.memory_space<vmem>>, vector<16x16x32xf32>
    %191 = vector.shape_cast %190 : vector<16x16x32xf32> to vector<256x32xf32>
    %c24 = arith.constant 24 : index
    %c0_169 = arith.constant 0 : index
    %c0_170 = arith.constant 0 : index
    %192 = vector.load %arg6[%c24, %c0_169, %c0_170] : memref<25x8x32xbf16, #tpu.memory_space<vmem>>, vector<1x8x32xbf16>
    %193 = vector.shape_cast %192 : vector<1x8x32xbf16> to vector<8x32xbf16>
    %194 = arith.truncf %191 : vector<256x32xf32> to vector<256x32xbf16>
    %cst_171 = arith.constant dense<0.000000e+00> : vector<8x256xf32>
    %195 = tpu.matmul %193, %194, %cst_171 {dimension_numbers = #tpu.dot_dimension_numbers<[1], [1], [0], [0], [0, 0, 1, 0], [], []>} : vector<8x32xbf16>, vector<256x32xbf16>, vector<8x256xf32> -> vector<8x256xf32>
    %196 = arith.addf %189, %195 : vector<8x256xf32>
    %c0_172 = arith.constant 0 : index
    %c0_173 = arith.constant 0 : index
    %197 = vector.load %arg7[%c0_172, %c0_173] : memref<8x1xf32, #tpu.memory_space<vmem>>, vector<8x1xf32>
    %198 = vector.broadcast %197 : vector<8x1xf32> to vector<8x256xf32>
    %199 = arith.addf %196, %198 : vector<8x256xf32>
    %c0_174 = arith.constant 0 : index
    %c0_175 = arith.constant 0 : index
    %c0_176 = arith.constant 0 : index
    %200 = vector.load %arg8[%c0_174, %c0_175, %c0_176] : memref<1x8x256xf32, #tpu.memory_space<vmem>>, vector<1x8x256xf32>
    %201 = vector.shape_cast %200 : vector<1x8x256xf32> to vector<8x256xf32>
    %202 = vector.shape_cast %199 : vector<8x256xf32> to vector<1x8x256xf32>
    tpu.vector_store %arg8[%c0_174, %c0_175, %c0_176], %202 {strides = array<i32>} : memref<1x8x256xf32, #tpu.memory_space<vmem>>, vector<1x8x256xf32>,
    return
  }
  func.func @transform_0(%arg0: i32) -> (i32, i32, i32) {
    %c0_i32 = arith.constant 0 : i32
    %c0_i32_0 = arith.constant 0 : i32
    %c0_i32_1 = arith.constant 0 : i32
    return %arg0, %c0_i32, %c0_i32_0 : i32, i32, i32
  }
  func.func @transform_1(%arg0: i32) -> (i32, i32) {
    %c0_i32 = arith.constant 0 : i32
    %c0_i32_0 = arith.constant 0 : i32
    %c0_i32_1 = arith.constant 0 : i32
    return %c0_i32, %c0_i32_0 : i32, i32
  }
  func.func @transform_2(%arg0: i32) -> (i32, i32) {
    %c0_i32 = arith.constant 0 : i32
    %c0_i32_0 = arith.constant 0 : i32
    %c0_i32_1 = arith.constant 0 : i32
    return %c0_i32, %c0_i32_0 : i32, i32
  }
  func.func @transform_3(%arg0: i32) -> (i32, i32) {
    %c0_i32 = arith.constant 0 : i32
    %c0_i32_0 = arith.constant 0 : i32
    %c0_i32_1 = arith.constant 0 : i32
    return %c0_i32, %c0_i32_0 : i32, i32
  }
  func.func @transform_4(%arg0: i32) -> (i32, i32) {
    %c0_i32 = arith.constant 0 : i32
    %c0_i32_0 = arith.constant 0 : i32
    %c0_i32_1 = arith.constant 0 : i32
    return %c0_i32, %c0_i32_0 : i32, i32
  }
  func.func @transform_5(%arg0: i32) -> (i32, i32, i32) {
    %c0_i32 = arith.constant 0 : i32
    %c0_i32_0 = arith.constant 0 : i32
    %c0_i32_1 = arith.constant 0 : i32
    %c0_i32_2 = arith.constant 0 : i32
    return %c0_i32, %c0_i32_0, %c0_i32_1 : i32, i32, i32
  }
  func.func @transform_6(%arg0: i32) -> (i32, i32) {
    %c0_i32 = arith.constant 0 : i32
    %c0_i32_0 = arith.constant 0 : i32
    %c0_i32_1 = arith.constant 0 : i32
    return %c0_i32, %c0_i32_0 : i32, i32
  }
  func.func @transform_7(%arg0: i32) -> (i32, i32, i32) {
    %c0_i32 = arith.constant 0 : i32
    %c0_i32_0 = arith.constant 0 : i32
    %c0_i32_1 = arith.constant 0 : i32
    return %arg0, %c0_i32, %c0_i32_0 : i32, i32, i32
  }
}

</mosaic_0001>

<bundles_post_ra>
// kernel: srcnn_forward.1
= control target key start
LH: loop header
LB: loop body
LE: loop exit
PB: predicated region body
PF: predicated region fallthrough
CT: control target
= control target key end

     0   :  { %s4875_s24 = smov 0   ;;  %s6258_s0 = inlined_call_operand.vmem [shape: bf16[2,256,256], index: 0, kind: input, shape index: {}]   ;;  %s6259_s1 = inlined_call_operand.vmem [shape: bf16[256,64], index: 1, kind: input, shape index: {}]   ;;  %s6260_s2 = inlined_call_operand.vmem [shape: f32[1,64], index: 2, kind: input, shape index: {}]   ;;  %s6261_s3 = inlined_call_operand.vmem [shape: bf16[64,32], index: 3, kind: input, shape index: {}]   ;;  %s6262_s4 = inlined_call_operand.vmem [shape: f32[1,32], index: 4, kind: input, shape index: {}]   ;;  %s6263_s5 = inlined_call_operand.vmem [shape: bf16[25,8,32], index: 5, kind: input, shape index: {}]   ;;  %s6264_s6 = inlined_call_operand.vmem [shape: f32[8,1], index: 6, kind: input, shape index: {}]   ;;  %s6265_s7 = inlined_call_operand.vmem [shape: f32[2,8,256], index: 7, kind: output, shape index: {}]  }
   0x1 LB: > { %s4439_s25 = sadd.s32 4294967295, %s4831_s24   ;;  %p4443_p0 = scmp.ge.s32.totalorder %s4831_s24, 1  ;;  %s4831_s24 = sphi %s4875_s24, %s17_s24  }
   0x2   : > { %p237_p1 = scmp.lt.s32.totalorder %s4831_s24, 3 }
   0x4   : > { %p238_p2 = pnand %p4443_p0, %p237_p1 }
   0x5   : > { %p269_p3 = scmp.lt.s32.totalorder (!%p238_p2), %s4439_s25, 1 }
   0x6   : > { %241 = sbr.rel (%p238_p2) target bundleno = 1596 (0x63c), region = 48 }
   0xb   : > { %v4789_v0 = vld [vmem:[%s6259_s1 + $0x38] sm:$0xff]  ;;  %v4788_v2 = vld [vmem:[%s6259_s1 + $0x30] sm:$0xff]  ;;  %v4787_v4 = vld [vmem:[%s6259_s1 + $0x28] sm:$0xff]  ;;  %s6267_s25 = smov (!%p269_p3, %s4439_s25), 1  ;;  %vm866_vm0 = vcmask 523264   ;;  %vm1036_vm1 = vcmask 261120  }
   0xc   : > { %v4797_v1 = vld [vmem:[%s6259_s1 + $0x78] sm:$0xff]  ;;  %604 = vmatpush.bf16.msra.mxu0 %v4789_v0  ;;  %v4796_v3 = vld [vmem:[%s6259_s1 + $0x70] sm:$0xff]  ;;  %v4795_v5 = vld [vmem:[%s6259_s1 + $0x68] sm:$0xff]  ;;  %s4748_s29 = sshll.u32 %s6267_s25, 8  ;;  %vm1040_vm2 = vcmask 254976   ;;  %s4749_s18 = sshll.u32 %s6267_s25, 4 }
   0xd   : > { %693 = vmatpush.bf16.msra.mxu1 %v4797_v1  ;;  %v4786_v6 = vld [vmem:[%s6259_s1 + $0x20] sm:$0xff]  ;;  %v4785_v8 = vld [vmem:[%s6259_s1 + $0x18] sm:$0xff]  ;;  %v4784_v10 = vld [vmem:[%s6259_s1 + $0x10] sm:$0xff]  ;;  %s4931_s13 = scalar_lea.vmem %s6258_s0, %s4748_s29  ;;  %s6231_s21 = scalar_lea.vmem %s6265_s7, %s4749_s18 }
   0xe   : > { %v4794_v7 = vld [vmem:[%s6259_s1 + $0x60] sm:$0xff]  ;;  %v4793_v9 = vld [vmem:[%s6259_s1 + $0x58] sm:$0xff]  ;;  %v4792_v11 = vld [vmem:[%s6259_s1 + $0x50] sm:$0xff] }
   0xf   : > { %v4783_v12 = vld [vmem:[%s6259_s1 + $0x8] sm:$0xff]  ;;  %v4782_v14 = vld [vmem:[%s6259_s1] sm:$0xff]  ;;  %v4458_v22 = vld [vmem:[%s4931_s13 + $0x10] sm:$0xf] }
  0x10   : > { %605 = vmatpush.bf16.msra.mxu0 %v4788_v2  ;;  %v4791_v13 = vld [vmem:[%s6259_s1 + $0x48] sm:$0xff]  ;;  %v4790_v15 = vld [vmem:[%s6259_s1 + $0x40] sm:$0xff]  ;;  %v4753_v23 = vld [vmem:[%s4931_s13 + $0x14] sm:$0xf0] }
  0x11   : > { %694 = vmatpush.bf16.msra.mxu1 %v4796_v3  ;;  %v4450_v16 = vld [vmem:[%s4931_s13] sm:$0xf]  ;;  %v4751_v17 = vld [vmem:[%s4931_s13 + $0x4] sm:$0xf0]  ;;  %v4750_v18 = vld [vmem:[%s4931_s13 + $0x4] sm:$0xf]  ;;  %v4459_v26 = vor.u32 %v4753_v23, %v4458_v22 }
  0x12   : > { %v4452_v19 = vld [vmem:[%s4931_s13 + $0x8] sm:$0xf0]  ;;  %v4451_v20 = vor.u32 %v4751_v17, %v4450_v16  ;;  %v4752_v24 = vld [vmem:[%s4931_s13 + $0x14] sm:$0xf]  ;;  %v4460_v25 = vld [vmem:[%s4931_s13 + $0x18] sm:$0xf0] }
  0x13   : > { %v4455_v21 = vor.u32 %v4750_v18, %v4452_v19  ;;  %v4463_v27 = vor.u32 %v4752_v24, %v4460_v25  ;;  %v4466_v28 = vld [vmem:[%s4931_s13 + $0x20] sm:$0xf]  ;;  %v4755_v29 = vld [vmem:[%s4931_s13 + $0x24] sm:$0xf0]  ;;  %v4754_v30 = vld [vmem:[%s4931_s13 + $0x24] sm:$0xf] }
  0x14   : > { %606 = vmatpush.bf16.msra.mxu0 %v4787_v4  ;;  %v4468_v31 = vld [vmem:[%s4931_s13 + $0x28] sm:$0xf0]  ;;  %v4467_v32 = vor.u32 %v4755_v29, %v4466_v28  ;;  %v4474_v34 = vld [vmem:[%s4931_s13 + $0x30] sm:$0xf]  ;;  %v4757_v35 = vld [vmem:[%s4931_s13 + $0x34] sm:$0xf0] }
  0x15   : > { %695 = vmatpush.bf16.msra.mxu1 %v4795_v5  ;;  %v4471_v33 = vor.u32 %v4754_v30, %v4468_v31  ;;  %v4756_v36 = vld [vmem:[%s4931_s13 + $0x34] sm:$0xf]  ;;  %v4476_v37 = vld [vmem:[%s4931_s13 + $0x38] sm:$0xf0]  ;;  %v4475_v38 = vor.u32 %v4757_v35, %v4474_v34  ;;  %v4482_v40 = vld [vmem:[%s4931_s13 + $0x40] sm:$0xf] }
  0x16   : > { %v4479_v39 = vor.u32 %v4756_v36, %v4476_v37  ;;  %v4759_v41 = vld [vmem:[%s4931_s13 + $0x44] sm:$0xf0]  ;;  %v4758_v42 = vld [vmem:[%s4931_s13 + $0x44] sm:$0xf]  ;;  %v4484_v43 = vld [vmem:[%s4931_s13 + $0x48] sm:$0xf0] }
  0x17   : > { %v4483_v44 = vor.u32 %v4759_v41, %v4482_v40  ;;  %v4487_v45 = vor.u32 %v4758_v42, %v4484_v43  ;;  %v4490_v46 = vld [vmem:[%s4931_s13 + $0x50] sm:$0xf]  ;;  %v4761_v47 = vld [vmem:[%s4931_s13 + $0x54] sm:$0xf0]  ;;  %v4760_v48 = vld [vmem:[%s4931_s13 + $0x54] sm:$0xf] }
  0x18   : > { %607 = vmatpush.bf16.msra.mxu0 %v4786_v6  ;;  %v4492_v49 = vld [vmem:[%s4931_s13 + $0x58] sm:$0xf0]  ;;  %v4491_v50 = vor.u32 %v4761_v47, %v4490_v46  ;;  %v4498_v52 = vld [vmem:[%s4931_s13 + $0x60] sm:$0xf]  ;;  %v4763_v53 = vld [vmem:[%s4931_s13 + $0x64] sm:$0xf0] }
  0x19   : > { %696 = vmatpush.bf16.msra.mxu1 %v4794_v7  ;;  %v4495_v51 = vor.u32 %v4760_v48, %v4492_v49  ;;  %v4762_v54 = vld [vmem:[%s4931_s13 + $0x64] sm:$0xf]  ;;  %v4500_v55 = vld [vmem:[%s4931_s13 + $0x68] sm:$0xf0]  ;;  %v4499_v56 = vor.u32 %v4763_v53, %v4498_v52  ;;  %v4801_v58 = vld [vmem:[%s6261_s3 + $0x18] sm:$0xff] }
  0x1a   : > { %v4503_v57 = vor.u32 %v4762_v54, %v4500_v55  ;;  %919 = vmatpush.bf16.msra.mxu2 %v4801_v58  ;;  %v4800_v59 = vld [vmem:[%s6261_s3 + $0x10] sm:$0xff]  ;;  %v4799_v60 = vld [vmem:[%s6261_s3 + $0x8] sm:$0xff]  ;;  %v4765_v62 = vld [vmem:[%s4931_s13 + $0x74] sm:$0xf0] }
  0x1b   : > { %v4506_v61 = vld [vmem:[%s4931_s13 + $0x70] sm:$0xf]  ;;  %v4764_v63 = vld [vmem:[%s4931_s13 + $0x74] sm:$0xf]  ;;  %v4508_v0 = vld [vmem:[%s4931_s13 + $0x78] sm:$0xf0] }
  0x1c   : > { %608 = vmatpush.bf16.msra.mxu0 %v4785_v8  ;;  %v4798_v1 = vld [vmem:[%s6261_s3] sm:$0xff]  ;;  %v4507_v2 = vor.u32 %v4765_v62, %v4506_v61  ;;  %v4511_v3 = vor.u32 %v4764_v63, %v4508_v0  ;;  %v4767_v5 = vld [vmem:[%s4931_s13 + $0x84] sm:$0xf0]  ;;  %v4516_v7 = vld [vmem:[%s4931_s13 + $0x88] sm:$0xf0] }
  0x1d   : > { %697 = vmatpush.bf16.msra.mxu1 %v4793_v9  ;;  %v4514_v4 = vld [vmem:[%s4931_s13 + $0x80] sm:$0xf]  ;;  %v4766_v6 = vld [vmem:[%s4931_s13 + $0x84] sm:$0xf]  ;;  %v4522_v19 = vld [vmem:[%s4931_s13 + $0x90] sm:$0xf] }
  0x1e   : > { %920 = vmatpush.bf16.msra.mxu2 %v4800_v59  ;;  %v4515_v8 = vor.u32 %v4767_v5, %v4514_v4  ;;  %v4519_v9 = vor.u32 %v4766_v6, %v4516_v7  ;;  %v4524_v22 = vld [vmem:[%s4931_s13 + $0x98] sm:$0xf0]  ;;  %v4530_v36 = vld [vmem:[%s4931_s13 + $0xa0] sm:$0xf]  ;;  %v4771_v37 = vld [vmem:[%s4931_s13 + $0xa4] sm:$0xf0] }
  0x1f   : > { %v4531_v43 = vor.u32 %v4771_v37, %v4530_v36  ;;  %v4538_v53 = vld [vmem:[%s4931_s13 + $0xb0] sm:$0xf]  ;;  %v4773_v54 = vld [vmem:[%s4931_s13 + $0xb4] sm:$0xf0]  ;;  %v4772_v55 = vld [vmem:[%s4931_s13 + $0xb4] sm:$0xf] }
  0x20   : > { %609 = vmatpush.bf16.msra.mxu0 %v4784_v10  ;;  %v4546_v6 = vld [vmem:[%s4931_s13 + $0xc0] sm:$0xf]  ;;  %v4775_v7 = vld [vmem:[%s4931_s13 + $0xc4] sm:$0xf0] }
  0x21   : > { %698 = vmatpush.bf16.msra.mxu1 %v4792_v11 }
  0x22   : > { %921 = vmatpush.bf16.msra.mxu2 %v4799_v60  ;;  %v4539_v60 = vor.u32 %v4773_v54, %v4538_v53 }
  0x24   : > { %610 = vmatpush.bf16.msra.mxu0 %v4783_v12  ;;  %v4990_v12 = vld [vmem:[%s6260_s2] ss:$0 sm:$0xff] }
  0x25   : > { %699 = vmatpush.bf16.msra.mxu1 %v4791_v13 }
  0x26   : > { %922 = vmatpush.bf16.msra.mxu2 %v4798_v1 }
  0x28   : > { %611 = vmatpush.bf16.msra.mxu0 %v4782_v14 }
  0x29   : > { %700 = vmatpush.bf16.msra.mxu1 %v4790_v15 }
  0x2b   : > { %612 = vmatmul.bf16.vlgmr.msra.gmra.mxu0 %v4451_v20  ;;  %v4769_v20 = vld [vmem:[%s4931_s13 + $0x94] sm:$0xf0] }
  0x2c   : > { %701 = vmatmul.bf16.vlgmr.msra.gmra.mxu1 %v4455_v21  ;;  %v4768_v21 = vld [vmem:[%s4931_s13 + $0x94] sm:$0xf] }
  0x3b   : > { %617 = vmatmul.bf16.gmra.mxu0 %v4459_v26  ;;  %v4523_v26 = vor.u32 %v4769_v20, %v4522_v19 }
  0x3c   : > { %706 = vmatmul.bf16.gmra.mxu1 %v4463_v27  ;;  %v4527_v27 = vor.u32 %v4768_v21, %v4524_v22 }
  0x4b   : > { %622 = vmatmul.bf16.gmra.mxu0 %v4467_v32 }
  0x4c   : > { %711 = vmatmul.bf16.gmra.mxu1 %v4471_v33 }
  0x5b   : > { %627 = vmatmul.bf16.gmra.mxu0 %v4475_v38  ;;  %v4770_v38 = vld [vmem:[%s4931_s13 + $0xa4] sm:$0xf] }
  0x5c   : > { %716 = vmatmul.bf16.gmra.mxu1 %v4479_v39  ;;  %v4532_v39 = vld [vmem:[%s4931_s13 + $0xa8] sm:$0xf0] }
  0x6b   : > { %632 = vmatmul.bf16.gmra.mxu0 %v4483_v44  ;;  %v4535_v44 = vor.u32 %v4770_v38, %v4532_v39 }
  0x6c   : > { %721 = vmatmul.bf16.gmra.mxu1 %v4487_v45 }
  0x7b   : > { %637 = vmatmul.bf16.gmra.mxu0 %v4491_v50 }
  0x7c   : > { %726 = vmatmul.bf16.gmra.mxu1 %v4495_v51 }
  0x8b   : > { %642 = vmatmul.bf16.gmra.mxu0 %v4499_v56  ;;  %v4540_v56 = vld [vmem:[%s4931_s13 + $0xb8] sm:$0xf0] }
  0x8c   : > { %731 = vmatmul.bf16.gmra.mxu1 %v4503_v57  ;;  %v4543_v61 = vor.u32 %v4772_v55, %v4540_v56 }
  0x9b   : > { %647 = vmatmul.bf16.gmra.mxu0 %v4507_v2 }
  0x9c   : > { %736 = vmatmul.bf16.gmra.mxu1 %v4511_v3 }
  0xa8   : > { %v613_v10 = vpop.f32.mrf.mxu0 }
  0xa9   : > { %v702_v11 = vpop.f32.mrf.mxu1  ;;  %v614_v13 = vadd.f32 %v4990_v12, %v613_v10 }
  0xab   : > { %652 = vmatmul.bf16.gmra.mxu0 %v4515_v8  ;;  %v703_v16 = vadd.f32 %v702_v11, %v614_v13  ;;  %v4774_v8 = vld [vmem:[%s4931_s13 + $0xc4] sm:$0xf] }
  0xac   : > { %741 = vmatmul.bf16.gmra.mxu1 %v4519_v9  ;;  %v4548_v9 = vld [vmem:[%s4931_s13 + $0xc8] sm:$0xf0] }
  0xad   : > { %v782_v23 = vmax.f32 %v703_v16, 0.0 }
  0xb0   : > { %v615_v14 = vpop.f32.mrf.mxu0 }
  0xb1   : > { %v704_v15 = vpop.f32.mrf.mxu1  ;;  %v616_v17 = vadd.f32 %v4990_v12, %v615_v14  ;;  %v4547_v14 = vor.u32 %v4775_v7, %v4546_v6 }
  0xb3   : > { %v705_v18 = vadd.f32 %v704_v15, %v616_v17  ;;  %v4551_v15 = vor.u32 %v4774_v8, %v4548_v9 }
  0xb5   : > { %v783_v24 = vmax.f32 %v705_v18, 0.0 }
  0xb7   : > { %v814_v25 = vpack.c.bf16 %v783_v24, %v782_v23  ;;  %v4554_v24 = vld [vmem:[%s4931_s13 + $0xd0] sm:$0xf] }
  0xb8   : > { %v618_v28 = vpop.f32.mrf.mxu0 }
  0xb9   : > { %v707_v29 = vpop.f32.mrf.mxu1  ;;  %4656 = vmatmul.msk.bf16.vlgmr.msra.gmra.mxu2 %vm866_vm0, %v814_v25  ;;  %v619_v30 = vadd.f32 %v4990_v12, %v618_v28  ;;  %v4777_v25 = vld [vmem:[%s4931_s13 + $0xd4] sm:$0xf0] }
  0xbb   : > { %657 = vmatmul.bf16.gmra.mxu0 %v4523_v26  ;;  %v708_v33 = vadd.f32 %v707_v29, %v619_v30  ;;  %v4776_v26 = vld [vmem:[%s4931_s13 + $0xd4] sm:$0xf] }
  0xbc   : > { %746 = vmatmul.bf16.gmra.mxu1 %v4527_v27  ;;  %v4556_v27 = vld [vmem:[%s4931_s13 + $0xd8] sm:$0xf0] }
  0xbd   : > { %v784_v40 = vmax.f32 %v708_v33, 0.0 }
  0xc0   : > { %v620_v31 = vpop.f32.mrf.mxu0 }
  0xc1   : > { %v709_v32 = vpop.f32.mrf.mxu1  ;;  %v621_v34 = vadd.f32 %v4990_v12, %v620_v31  ;;  %v4555_v31 = vor.u32 %v4777_v25, %v4554_v24 }
  0xc3   : > { %v710_v35 = vadd.f32 %v709_v32, %v621_v34  ;;  %v4559_v32 = vor.u32 %v4776_v26, %v4556_v27 }
  0xc5   : > { %v785_v41 = vmax.f32 %v710_v35, 0.0 }
  0xc7   : > { %v815_v42 = vpack.c.bf16 %v785_v41, %v784_v40 }
  0xc8   : > { %v623_v45 = vpop.f32.mrf.mxu0 }
  0xc9   : > { %v712_v46 = vpop.f32.mrf.mxu1  ;;  %4657 = vmatmul.msk.bf16.gmra.mxu2 %vm866_vm0, %v815_v42  ;;  %v624_v47 = vadd.f32 %v4990_v12, %v623_v45 }
  0xcb   : > { %662 = vmatmul.bf16.gmra.mxu0 %v4531_v43  ;;  %v713_v50 = vadd.f32 %v712_v46, %v624_v47 }
  0xcc   : > { %751 = vmatmul.bf16.gmra.mxu1 %v4535_v44 }
  0xcd   : > { %v786_v57 = vmax.f32 %v713_v50, 0.0 }
  0xd0   : > { %v625_v48 = vpop.f32.mrf.mxu0 }
  0xd1   : > { %v714_v49 = vpop.f32.mrf.mxu1  ;;  %v626_v51 = vadd.f32 %v4990_v12, %v625_v48 }
  0xd3   : > { %v715_v52 = vadd.f32 %v714_v49, %v626_v51 }
  0xd5   : > { %v787_v58 = vmax.f32 %v715_v52, 0.0 }
  0xd7   : > { %v816_v59 = vpack.c.bf16 %v787_v58, %v786_v57 }
  0xd8   : > { %v628_v62 = vpop.f32.mrf.mxu0 }
  0xd9   : > { %v717_v63 = vpop.f32.mrf.mxu1  ;;  %4658 = vmatmul.msk.bf16.gmra.mxu2 %vm866_vm0, %v816_v59  ;;  %v629_v0 = vadd.f32 %v4990_v12, %v628_v62 }
  0xdb   : > { %667 = vmatmul.bf16.gmra.mxu0 %v4539_v60  ;;  %v718_v3 = vadd.f32 %v717_v63, %v629_v0  ;;  %v4833_v60 = vmov 0.0  }
  0xdc   : > { %756 = vmatmul.bf16.gmra.mxu1 %v4543_v61  ;;  %1047 = vst.msk [vmem:[#allocation2 + $0x48] sm:$0xff] %vm1036_vm1, %v4833_v60 }
  0xdd   : > { %v788_v10 = vmax.f32 %v718_v3, 0.0  ;;  %1037 = vst.msk [vmem:[#allocation2] sm:$0xff] %vm1036_vm1, %v4833_v60 }
  0xde   : > { %1038 = vst.msk [vmem:[#allocation2 + $0x8] sm:$0xff] %vm1036_vm1, %v4833_v60 }
  0xdf   : > { %1039 = vst.msk [vmem:[#allocation2 + $0x10] sm:$0xff] %vm1036_vm1, %v4833_v60 }
  0xe0   : > { %v630_v1 = vpop.f32.mrf.mxu0  ;;  %1042 = vst.msk [vmem:[#allocation2 + $0x20] sm:$0xff] %vm1036_vm1, %v4833_v60 }
  0xe1   : > { %v719_v2 = vpop.f32.mrf.mxu1  ;;  %v631_v4 = vadd.f32 %v4990_v12, %v630_v1  ;;  %1043 = vst.msk [vmem:[#allocation2 + $0x28] sm:$0xff] %vm1036_vm1, %v4833_v60 }
  0xe2   : > { %1044 = vst.msk [vmem:[#allocation2 + $0x30] sm:$0xff] %vm1036_vm1, %v4833_v60 }
  0xe3   : > { %v720_v5 = vadd.f32 %v719_v2, %v631_v4  ;;  %1046 = vst.msk [vmem:[#allocation2 + $0x40] sm:$0xff] %vm1036_vm1, %v4833_v60 }
  0xe4   : > { %1048 = vst.msk [vmem:[#allocation2 + $0x50] sm:$0xff] %vm1036_vm1, %v4833_v60 }
  0xe5   : > { %v789_v11 = vmax.f32 %v720_v5, 0.0  ;;  %1050 = vst.msk [vmem:[#allocation2 + $0x60] sm:$0xff] %vm1036_vm1, %v4833_v60 }
  0xe6   : > { %1051 = vst.msk [vmem:[#allocation2 + $0x68] sm:$0xff] %vm1036_vm1, %v4833_v60 }
  0xe7   : > { %v817_v13 = vpack.c.bf16 %v789_v11, %v788_v10  ;;  %1052 = vst.msk [vmem:[#allocation2 + $0x70] sm:$0xff] %vm1036_vm1, %v4833_v60 }
  0xe8   : > { %v633_v16 = vpop.f32.mrf.mxu0  ;;  %1054 = vst.msk [vmem:[#allocation2 + $0x80] sm:$0xff] %vm1036_vm1, %v4833_v60 }
  0xe9   : > { %v722_v17 = vpop.f32.mrf.mxu1  ;;  %4659 = vmatmul.msk.bf16.gmra.mxu2 %vm866_vm0, %v817_v13  ;;  %v634_v18 = vadd.f32 %v4990_v12, %v633_v16  ;;  %1055 = vst.msk [vmem:[#allocation2 + $0x88] sm:$0xff] %vm1036_vm1, %v4833_v60 }
  0xea   : > { %1056 = vst.msk [vmem:[#allocation2 + $0x90] sm:$0xff] %vm1036_vm1, %v4833_v60 }
  0xeb   : > { %672 = vmatmul.bf16.gmra.mxu0 %v4547_v14  ;;  %v723_v21 = vadd.f32 %v722_v17, %v634_v18  ;;  %1058 = vst.msk [vmem:[#allocation2 + $0xa0] sm:$0xff] %vm1036_vm1, %v4833_v60  ;;  %v5092_v17 = vld [vmem:[%s6262_s4] ss:$0 sm:$0xff] }
  0xec   : > { %761 = vmatmul.bf16.gmra.mxu1 %v4551_v15  ;;  %1059 = vst.msk [vmem:[#allocation2 + $0xa8] sm:$0xff] %vm1036_vm1, %v4833_v60 }
  0xed   : > { %v790_v28 = vmax.f32 %v723_v21, 0.0  ;;  %1060 = vst.msk [vmem:[#allocation2 + $0xb0] sm:$0xff] %vm1036_vm1, %v4833_v60 }
  0xee   : > { %1062 = vst.msk [vmem:[#allocation2 + $0xc0] sm:$0xff] %vm1036_vm1, %v4833_v60 }
  0xef   : > { %1063 = vst.msk [vmem:[#allocation2 + $0xc8] sm:$0xff] %vm1036_vm1, %v4833_v60 }
  0xf0   : > { %v635_v19 = vpop.f32.mrf.mxu0  ;;  %1064 = vst.msk [vmem:[#allocation2 + $0xd0] sm:$0xff] %vm1036_vm1, %v4833_v60 }
  0xf1   : > { %v724_v20 = vpop.f32.mrf.mxu1  ;;  %v636_v22 = vadd.f32 %v4990_v12, %v635_v19  ;;  %1066 = vst.msk [vmem:[#allocation2 + $0xe0] sm:$0xff] %vm1036_vm1, %v4833_v60 }
  0xf2   : > { %1067 = vst.msk [vmem:[#allocation2 + $0xe8] sm:$0xff] %vm1036_vm1, %v4833_v60 }
  0xf3   : > { %v725_v23 = vadd.f32 %v724_v20, %v636_v22  ;;  %1068 = vst.msk [vmem:[#allocation2 + $0xf0] sm:$0xff] %vm1036_vm1, %v4833_v60 }
  0xf4   : > { %1070 = vst.msk [vmem:[#allocation2 + $0x100] sm:$0xff] %vm1036_vm1, %v4833_v60 }
  0xf5   : > { %v791_v29 = vmax.f32 %v725_v23, 0.0  ;;  %1071 = vst.msk [vmem:[#allocation2 + $0x108] sm:$0xff] %vm1036_vm1, %v4833_v60 }
  0xf6   : > { %1072 = vst.msk [vmem:[#allocation2 + $0x110] sm:$0xff] %vm1036_vm1, %v4833_v60 }
  0xf7   : > { %v818_v30 = vpack.c.bf16 %v791_v29, %v790_v28  ;;  %1074 = vst.msk [vmem:[#allocation2 + $0x120] sm:$0xff] %vm1036_vm1, %v4833_v60 }
  0xf8   : > { %v638_v33 = vpop.f32.mrf.mxu0  ;;  %1075 = vst.msk [vmem:[#allocation2 + $0x128] sm:$0xff] %vm1036_vm1, %v4833_v60 }
  0xf9   : > { %v727_v34 = vpop.f32.mrf.mxu1  ;;  %4660 = vmatmul.msk.bf16.gmra.mxu2 %vm866_vm0, %v818_v30  ;;  %v639_v35 = vadd.f32 %v4990_v12, %v638_v33  ;;  %1076 = vst.msk [vmem:[#allocation2 + $0x130] sm:$0xff] %vm1036_vm1, %v4833_v60  ;;  %v4562_v33 = vld [vmem:[%s4931_s13 + $0xe0] sm:$0xf] }
  0xfa   : > { %1078 = vst.msk [vmem:[#allocation2 + $0x140] sm:$0xff] %vm1036_vm1, %v4833_v60 }
  0xfb   : > { %677 = vmatmul.bf16.gmra.mxu0 %v4555_v31  ;;  %v728_v38 = vadd.f32 %v727_v34, %v639_v35  ;;  %1079 = vst.msk [vmem:[#allocation2 + $0x148] sm:$0xff] %vm1036_vm1, %v4833_v60  ;;  %v4779_v34 = vld [vmem:[%s4931_s13 + $0xe4] sm:$0xf0] }
  0xfc   : > { %766 = vmatmul.bf16.gmra.mxu1 %v4559_v32  ;;  %1080 = vst.msk [vmem:[#allocation2 + $0x150] sm:$0xff] %vm1036_vm1, %v4833_v60  ;;  %v4563_v35 = vor.u32 %v4779_v34, %v4562_v33 }
  0xfd   : > { %v792_v41 = vmax.f32 %v728_v38, 0.0  ;;  %1082 = vst.msk [vmem:[#allocation2 + $0x160] sm:$0xff] %vm1036_vm1, %v4833_v60  ;;  %v4778_v38 = vld [vmem:[%s4931_s13 + $0xe4] sm:$0xf] }
  0xfe   : > { %1083 = vst.msk [vmem:[#allocation2 + $0x168] sm:$0xff] %vm1036_vm1, %v4833_v60 }
  0xff   : > { %1084 = vst.msk [vmem:[#allocation2 + $0x170] sm:$0xff] %vm1036_vm1, %v4833_v60 }
 0x100   : > { %v640_v36 = vpop.f32.mrf.mxu0  ;;  %1086 = vst.msk [vmem:[#allocation2 + $0x180] sm:$0xff] %vm1036_vm1, %v4833_v60 }
 0x101   : > { %v729_v37 = vpop.f32.mrf.mxu1  ;;  %v641_v39 = vadd.f32 %v4990_v12, %v640_v36  ;;  %1087 = vst.msk [vmem:[#allocation2 + $0x188] sm:$0xff] %vm1036_vm1, %v4833_v60 }
 0x102   : > { %1088 = vst.msk [vmem:[#allocation2 + $0x190] sm:$0xff] %vm1036_vm1, %v4833_v60 }
 0x103   : > { %v730_v40 = vadd.f32 %v729_v37, %v641_v39  ;;  %1090 = vst.msk [vmem:[#allocation2 + $0x1a0] sm:$0xff] %vm1036_vm1, %v4833_v60  ;;  %v4564_v39 = vld [vmem:[%s4931_s13 + $0xe8] sm:$0xf0] }
 0x104   : > { %1091 = vst.msk [vmem:[#allocation2 + $0x1a8] sm:$0xff] %vm1036_vm1, %v4833_v60 }
 0x105   : > { %v793_v42 = vmax.f32 %v730_v40, 0.0  ;;  %1092 = vst.msk [vmem:[#allocation2 + $0x1b0] sm:$0xff] %vm1036_vm1, %v4833_v60  ;;  %v4567_v40 = vor.u32 %v4778_v38, %v4564_v39 }
 0x106   : > { %1094 = vst.msk [vmem:[#allocation2 + $0x1c0] sm:$0xff] %vm1036_vm1, %v4833_v60 }
 0x107   : > { %v819_v43 = vpack.c.bf16 %v793_v42, %v792_v41  ;;  %1095 = vst.msk [vmem:[#allocation2 + $0x1c8] sm:$0xff] %vm1036_vm1, %v4833_v60 }
 0x108   : > { %v643_v44 = vpop.f32.mrf.mxu0  ;;  %1096 = vst.msk [vmem:[#allocation2 + $0x1d0] sm:$0xff] %vm1036_vm1, %v4833_v60 }
 0x109   : > { %v732_v45 = vpop.f32.mrf.mxu1  ;;  %4661 = vmatmul.msk.bf16.gmra.mxu2 %vm866_vm0, %v819_v43  ;;  %v644_v46 = vadd.f32 %v4990_v12, %v643_v44  ;;  %1098 = vst.msk [vmem:[#allocation2 + $0x1e0] sm:$0xff] %vm1036_vm1, %v4833_v60 }
 0x10a   : > { %1099 = vst.msk [vmem:[#allocation2 + $0x1e8] sm:$0xff] %vm1036_vm1, %v4833_v60 }
 0x10b   : > { %v733_v49 = vadd.f32 %v732_v45, %v644_v46  ;;  %682 = vmatmul.bf16.gmra.mxu0 %v4563_v35  ;;  %1100 = vst.msk [vmem:[#allocation2 + $0x1f0] sm:$0xff] %vm1036_vm1, %v4833_v60 }
 0x10c   : > { %771 = vmatmul.bf16.gmra.mxu1 %v4567_v40  ;;  %1102 = vst.msk [vmem:[#allocation2 + $0x200] sm:$0xff] %vm1036_vm1, %v4833_v60 }
 0x10d   : > { %v794_v52 = vmax.f32 %v733_v49, 0.0  ;;  %1103 = vst.msk [vmem:[#allocation2 + $0x208] sm:$0xff] %vm1036_vm1, %v4833_v60 }
 0x10e   : > { %1104 = vst.msk [vmem:[#allocation2 + $0x210] sm:$0xff] %vm1036_vm1, %v4833_v60 }
 0x10f   : > { %1106 = vst.msk [vmem:[#allocation2 + $0x220] sm:$0xff] %vm1036_vm1, %v4833_v60 }
 0x110   : > { %v645_v47 = vpop.f32.mrf.mxu0  ;;  %1107 = vst.msk [vmem:[#allocation2 + $0x228] sm:$0xff] %vm1036_vm1, %v4833_v60 }
 0x111   : > { %v734_v48 = vpop.f32.mrf.mxu1  ;;  %v646_v50 = vadd.f32 %v4990_v12, %v645_v47  ;;  %1108 = vst.msk [vmem:[#allocation2 + $0x230] sm:$0xff] %vm1036_vm1, %v4833_v60 }
 0x112   : > { %1110 = vst.msk [vmem:[#allocation2 + $0x240] sm:$0xff] %vm1036_vm1, %v4833_v60 }
 0x113   : > { %v735_v51 = vadd.f32 %v734_v48, %v646_v50  ;;  %1111 = vst.msk [vmem:[#allocation2 + $0x248] sm:$0xff] %vm1036_vm1, %v4833_v60 }
 0x114   : > { %1112 = vst.msk [vmem:[#allocation2 + $0x250] sm:$0xff] %vm1036_vm1, %v4833_v60 }
 0x115   : > { %v795_v53 = vmax.f32 %v735_v51, 0.0  ;;  %1114 = vst.msk [vmem:[#allocation2 + $0x260] sm:$0xff] %vm1036_vm1, %v4833_v60 }
 0x116   : > { %1115 = vst.msk [vmem:[#allocation2 + $0x268] sm:$0xff] %vm1036_vm1, %v4833_v60 }
 0x117   : > { %v820_v54 = vpack.c.bf16 %v795_v53, %v794_v52  ;;  %1116 = vst.msk [vmem:[#allocation2 + $0x270] sm:$0xff] %vm1036_vm1, %v4833_v60 }
 0x118   : > { %v648_v55 = vpop.f32.mrf.mxu0  ;;  %1069 = vst.msk [vmem:[#allocation2 + $0xf8] sm:$0x3] %vm1040_vm2, %v4833_v60 }
 0x119   : > { %v737_v56 = vpop.f32.mrf.mxu1  ;;  %4662 = vmatmul.msk.bf16.gmra.mxu2 %vm866_vm0, %v820_v54  ;;  %v649_v57 = vadd.f32 %v4990_v12, %v648_v55  ;;  %1041 = vst.msk [vmem:[#allocation2 + $0x18] sm:$0x3] %vm1040_vm2, %v4833_v60 }
 0x11a   : > { %1045 = vst.msk [vmem:[#allocation2 + $0x38] sm:$0x3] %vm1040_vm2, %v4833_v60 }
 0x11b   : > { %v738_v61 = vadd.f32 %v737_v56, %v649_v57  ;;  %v4570_v56 = vld [vmem:[%s4931_s13 + $0xf0] sm:$0xf]  ;;  %v4781_v57 = vld [vmem:[%s4931_s13 + $0xf4] sm:$0xf0]  ;;  %1049 = vst.msk [vmem:[#allocation2 + $0x58] sm:$0x3] %vm1040_vm2, %v4833_v60 }
 0x11c   : > { %1053 = vst.msk [vmem:[#allocation2 + $0x78] sm:$0x3] %vm1040_vm2, %v4833_v60 }
 0x11d   : > { %v796_v0 = vmax.f32 %v738_v61, 0.0  ;;  %1057 = vst.msk [vmem:[#allocation2 + $0x98] sm:$0x3] %vm1040_vm2, %v4833_v60 }
 0x11e   : > { %1061 = vst.msk [vmem:[#allocation2 + $0xb8] sm:$0x3] %vm1040_vm2, %v4833_v60 }
 0x11f   : > { %1065 = vst.msk [vmem:[#allocation2 + $0xd8] sm:$0x3] %vm1040_vm2, %v4833_v60 }
 0x120   : > { %v650_v58 = vpop.f32.mrf.mxu0  ;;  %1073 = vst.msk [vmem:[#allocation2 + $0x118] sm:$0x3] %vm1040_vm2, %v4833_v60 }
 0x121   : > { %v739_v59 = vpop.f32.mrf.mxu1  ;;  %v651_v62 = vadd.f32 %v4990_v12, %v650_v58  ;;  %1077 = vst.msk [vmem:[#allocation2 + $0x138] sm:$0x3] %vm1040_vm2, %v4833_v60 }
 0x122   : > { %1081 = vst.msk [vmem:[#allocation2 + $0x158] sm:$0x3] %vm1040_vm2, %v4833_v60 }
 0x123   : > { %v740_v63 = vadd.f32 %v739_v59, %v651_v62  ;;  %v4571_v59 = vor.u32 %v4781_v57, %v4570_v56  ;;  %1085 = vst.msk [vmem:[#allocation2 + $0x178] sm:$0x3] %vm1040_vm2, %v4833_v60 }
 0x124   : > { %1089 = vst.msk [vmem:[#allocation2 + $0x198] sm:$0x3] %vm1040_vm2, %v4833_v60 }
 0x125   : > { %v797_v1 = vmax.f32 %v740_v63, 0.0  ;;  %687 = vmatmul.bf16.gmra.mxu0 %v4571_v59  ;;  %1093 = vst.msk [vmem:[#allocation2 + $0x1b8] sm:$0x3] %vm1040_vm2, %v4833_v60 }
 0x126   : > { %1097 = vst.msk [vmem:[#allocation2 + $0x1d8] sm:$0x3] %vm1040_vm2, %v4833_v60 }
 0x127   : > { %v821_v2 = vpack.c.bf16 %v797_v1, %v796_v0  ;;  %v4780_v1 = vld [vmem:[%s4931_s13 + $0xf4] sm:$0xf]  ;;  %1101 = vst.msk [vmem:[#allocation2 + $0x1f8] sm:$0x3] %vm1040_vm2, %v4833_v60 }
 0x128   : > { %v653_v3 = vpop.f32.mrf.mxu0  ;;  %1105 = vst.msk [vmem:[#allocation2 + $0x218] sm:$0x3] %vm1040_vm2, %v4833_v60 }
 0x129   : > { %v742_v4 = vpop.f32.mrf.mxu1  ;;  %4663 = vmatmul.msk.bf16.gmra.mxu2 %vm866_vm0, %v821_v2  ;;  %v654_v5 = vadd.f32 %v4990_v12, %v653_v3  ;;  %v4572_v2 = vld [vmem:[%s4931_s13 + $0xf8] sm:$0xf0]  ;;  %1109 = vst.msk [vmem:[#allocation2 + $0x238] sm:$0x3] %vm1040_vm2, %v4833_v60 }
 0x12a   : > { %v4575_v3 = vor.u32 %v4780_v1, %v4572_v2  ;;  %1113 = vst.msk [vmem:[#allocation2 + $0x258] sm:$0x3] %vm1040_vm2, %v4833_v60 }
 0x12b   : > { %v743_v8 = vadd.f32 %v742_v4, %v654_v5  ;;  %1117 = vst.msk [vmem:[#allocation2 + $0x278] sm:$0x3] %vm1040_vm2, %v4833_v60 }
 0x12c   : > { %776 = vmatmul.bf16.gmra.mxu1 %v4575_v3 }
 0x12d   : > { %v798_v11 = vmax.f32 %v743_v8, 0.0 }
 0x130   : > { %v655_v6 = vpop.f32.mrf.mxu0 }
 0x131   : > { %v744_v7 = vpop.f32.mrf.mxu1  ;;  %v656_v9 = vadd.f32 %v4990_v12, %v655_v6 }
 0x133   : > { %v745_v10 = vadd.f32 %v744_v7, %v656_v9 }
 0x135   : > { %v799_v13 = vmax.f32 %v745_v10, 0.0 }
 0x137   : > { %v822_v14 = vpack.c.bf16 %v799_v13, %v798_v11 }
 0x138   : > { %v658_v15 = vpop.f32.mrf.mxu0 }
 0x139   : > { %v747_v16 = vpop.f32.mrf.mxu1  ;;  %4664 = vmatmul.msk.bf16.gmra.mxu2 %vm866_vm0, %v822_v14  ;;  %v659_v19 = vadd.f32 %v4990_v12, %v658_v15 }
 0x13b   : > { %v748_v24 = vadd.f32 %v747_v16, %v659_v19 }
 0x13c   : > { %v924_v18 = vpop.f32.mrf.mxu2 }
 0x13d   : > { %v925_v20 = vadd.f32 %v5092_v17, %v924_v18  ;;  %v800_v28 = vmax.f32 %v748_v24, 0.0 }
 0x13f   : > { %v1004_v21 = vmax.f32 %v925_v20, 0.0 }
 0x140   : > { %v660_v22 = vpop.f32.mrf.mxu0 }
 0x141   : > { %v749_v23 = vpop.f32.mrf.mxu1  ;;  %1119 = vst.msk [vmem:[#allocation2 + $0x48] sm:$0xff] %vm1036_vm1, %v1004_v21  ;;  %v661_v25 = vadd.f32 %v4990_v12, %v660_v22 }
 0x143   : > { %v750_v26 = vadd.f32 %v749_v23, %v661_v25 }
 0x144   : > { %v926_v27 = vpop.f32.mrf.mxu2 }
 0x145   : > { %v801_v29 = vmax.f32 %v750_v26, 0.0  ;;  %v927_v47 = vadd.f32 %v5092_v17, %v926_v27 }
 0x147   : > { %v823_v30 = vpack.c.bf16 %v801_v29, %v800_v28  ;;  %v1005_v55 = vmax.f32 %v927_v47, 0.0 }
 0x148   : > { %v663_v31 = vpop.f32.mrf.mxu0 }
 0x149   : > { %v752_v32 = vpop.f32.mrf.mxu1  ;;  %4665 = vmatmul.msk.bf16.gmra.mxu2 %vm866_vm0, %v823_v30  ;;  %v664_v37 = vadd.f32 %v4990_v12, %v663_v31  ;;  %1120 = vst.msk [vmem:[#allocation2 + $0x50] sm:$0xff] %vm1036_vm1, %v1005_v55 }
 0x14b   : > { %v753_v43 = vadd.f32 %v752_v32, %v664_v37 }
 0x14c   : > { %v929_v36 = vpop.f32.mrf.mxu2 }
 0x14d   : > { %v802_v48 = vmax.f32 %v753_v43, 0.0  ;;  %v930_v50 = vadd.f32 %v5092_v17, %v929_v36 }
 0x14f   : > { %v1006_v58 = vmax.f32 %v930_v50, 0.0 }
 0x150   : > { %v665_v41 = vpop.f32.mrf.mxu0 }
 0x151   : > { %v754_v42 = vpop.f32.mrf.mxu1  ;;  %v666_v44 = vadd.f32 %v4990_v12, %v665_v41  ;;  %1121 = vst.msk [vmem:[#allocation2 + $0x68] sm:$0xff] %vm1036_vm1, %v1006_v58 }
 0x153   : > { %v755_v45 = vadd.f32 %v754_v42, %v666_v44 }
 0x154   : > { %v931_v46 = vpop.f32.mrf.mxu2 }
 0x155   : > { %v803_v49 = vmax.f32 %v755_v45, 0.0  ;;  %v932_v51 = vadd.f32 %v5092_v17, %v931_v46 }
 0x157   : > { %v824_v52 = vpack.c.bf16 %v803_v49, %v802_v48  ;;  %v1007_v61 = vmax.f32 %v932_v51, 0.0 }
 0x158   : > { %v668_v53 = vpop.f32.mrf.mxu0 }
 0x159   : > { %v757_v54 = vpop.f32.mrf.mxu1  ;;  %4666 = vmatmul.msk.bf16.gmra.mxu2 %vm866_vm0, %v824_v52  ;;  %v669_v63 = vadd.f32 %v4990_v12, %v668_v53  ;;  %1122 = vst.msk [vmem:[#allocation2 + $0x70] sm:$0xff] %vm1036_vm1, %v1007_v61 }
 0x15b   : > { %v758_v7 = vadd.f32 %v757_v54, %v669_v63 }
 0x15c   : > { %v934_v62 = vpop.f32.mrf.mxu2 }
 0x15d   : > { %v935_v0 = vadd.f32 %v5092_v17, %v934_v62  ;;  %v804_v11 = vmax.f32 %v758_v7, 0.0 }
 0x15f   : > { %v1008_v4 = vmax.f32 %v935_v0, 0.0 }
 0x160   : > { %v670_v5 = vpop.f32.mrf.mxu0 }
 0x161   : > { %v759_v6 = vpop.f32.mrf.mxu1  ;;  %1123 = vst.msk [vmem:[#allocation2 + $0x88] sm:$0xff] %vm1036_vm1, %v1008_v4  ;;  %v671_v8 = vadd.f32 %v4990_v12, %v670_v5 }
 0x163   : > { %v760_v9 = vadd.f32 %v759_v6, %v671_v8 }
 0x164   : > { %v936_v10 = vpop.f32.mrf.mxu2 }
 0x165   : > { %v805_v13 = vmax.f32 %v760_v9, 0.0  ;;  %v937_v14 = vadd.f32 %v5092_v17, %v936_v10 }
 0x167   : > { %v1009_v15 = vmax.f32 %v937_v14, 0.0  ;;  %v825_v16 = vpack.c.bf16 %v805_v13, %v804_v11 }
 0x168   : > { %v673_v18 = vpop.f32.mrf.mxu0 }
 0x169   : > { %v762_v19 = vpop.f32.mrf.mxu1  ;;  %1124 = vst.msk [vmem:[#allocation2 + $0x90] sm:$0xff] %vm1036_vm1, %v1009_v15  ;;  %4667 = vmatmul.msk.bf16.gmra.mxu2 %vm866_vm0, %v825_v16  ;;  %v674_v21 = vadd.f32 %v4990_v12, %v673_v18 }
 0x16b   : > { %v763_v26 = vadd.f32 %v762_v19, %v674_v21 }
 0x16c   : > { %v939_v20 = vpop.f32.mrf.mxu2 }
 0x16d   : > { %v940_v22 = vadd.f32 %v5092_v17, %v939_v20  ;;  %v806_v30 = vmax.f32 %v763_v26, 0.0 }
 0x16f   : > { %v1010_v23 = vmax.f32 %v940_v22, 0.0 }
 0x170   : > { %v675_v24 = vpop.f32.mrf.mxu0 }
 0x171   : > { %v764_v25 = vpop.f32.mrf.mxu1  ;;  %1125 = vst.msk [vmem:[#allocation2 + $0xa8] sm:$0xff] %vm1036_vm1, %v1010_v23  ;;  %v676_v27 = vadd.f32 %v4990_v12, %v675_v24 }
 0x173   : > { %v765_v28 = vadd.f32 %v764_v25, %v676_v27 }
 0x174   : > { %v941_v29 = vpop.f32.mrf.mxu2 }
 0x175   : > { %v807_v31 = vmax.f32 %v765_v28, 0.0  ;;  %v942_v32 = vadd.f32 %v5092_v17, %v941_v29 }
 0x177   : > { %v826_v33 = vpack.c.bf16 %v807_v31, %v806_v30  ;;  %v1011_v34 = vmax.f32 %v942_v32, 0.0 }
 0x178   : > { %v678_v35 = vpop.f32.mrf.mxu0  ;;  %v1210_v32 = vld [vmem:[#allocation2 + $0xa7] sm:$0xff] }
 0x179   : > { %v767_v36 = vpop.f32.mrf.mxu1  ;;  %1126 = vst.msk [vmem:[#allocation2 + $0xb0] sm:$0xff] %vm1036_vm1, %v1011_v34  ;;  %4668 = vmatmul.msk.bf16.gmra.mxu2 %vm866_vm0, %v826_v33  ;;  %v679_v38 = vadd.f32 %v4990_v12, %v678_v35  ;;  %v1414_v33 = vld [vmem:[#allocation2 + $0xa8] sm:$0xff] }
 0x17b   : > { %v768_v42 = vadd.f32 %v767_v36, %v679_v38 }
 0x17c   : > { %v944_v37 = vpop.f32.mrf.mxu2 }
 0x17d   : > { %v945_v39 = vadd.f32 %v5092_v17, %v944_v37  ;;  %v808_v46 = vmax.f32 %v768_v42, 0.0  ;;  %v1209_v42 = vld [vmem:[#allocation2 + $0x8f] sm:$0xff] }
 0x17f   : > { %v1012_v40 = vmax.f32 %v945_v39, 0.0 }
 0x180   : > { %v680_v41 = vpop.f32.mrf.mxu0  ;;  %v1211_v27 = vld [vmem:[#allocation2 + $0xaf] sm:$0xff] }
 0x181   : > { %1127 = vst.msk [vmem:[#allocation2 + $0xc8] sm:$0xff] %vm1036_vm1, %v1012_v40  ;;  %v681_v60 = vadd.f32 %v4990_v12, %v680_v41  ;;  %v769_v43 = vpop.f32.mrf.mxu1  ;;  %v1415_v28 = vld [vmem:[#allocation2 + $0xb0] sm:$0xff]  ;;  %v1239_v35 = vpack.c.bf16 %v1211_v27, %v1210_v32 }
 0x182   : > { %v1543_v30 = vld [vmem:[#allocation2 + $0xa9] sm:$0xff]  ;;  %v1544_v31 = vld [vmem:[#allocation2 + $0xb1] sm:$0xff]  ;;  %v1443_v36 = vpack.c.bf16 %v1415_v28, %v1414_v33 }
 0x183   : > { %v770_v44 = vadd.f32 %v769_v43, %v681_v60  ;;  %v1572_v37 = vpack.c.bf16 %v1544_v31, %v1543_v30  ;;  %v5282_v38 = vsel %vm1036_vm1, %v1239_v35, 0  ;;  %v1413_v60 = vld [vmem:[#allocation2 + $0x90] sm:$0xff]  ;;  %v1406_v28 = vld [vmem:[#allocation2 + $0x28] sm:$0xff] }
 0x184   : > { %v946_v45 = vpop.f32.mrf.mxu2  ;;  %v5285_v39 = vsel %vm1036_vm1, %v1443_v36, 0  ;;  %v1535_v32 = vld [vmem:[#allocation2 + $0x29] sm:$0xff]  ;;  %v1536_v33 = vld [vmem:[#allocation2 + $0x31] sm:$0xff] }
 0x185   : > { %v809_v47 = vmax.f32 %v770_v44, 0.0  ;;  %v947_v48 = vadd.f32 %v5092_v17, %v946_v45  ;;  %v5290_v41 = vsel %vm1036_vm1, %v1572_v37, 0  ;;  %v1541_v44 = vld [vmem:[#allocation2 + $0x89] sm:$0xff]  ;;  %v1542_v45 = vld [vmem:[#allocation2 + $0x91] sm:$0xff] }
 0x187   : > { %v827_v49 = vpack.c.bf16 %v809_v47, %v808_v46  ;;  %v1013_v50 = vmax.f32 %v947_v48, 0.0  ;;  %v1208_v46 = vld [vmem:[#allocation2 + $0x87] sm:$0xff] }
 0x188   : > { %v1212_v16 = vld [vmem:[#allocation2 + $0xc7] sm:$0xff]  ;;  %v683_v27 = vpop.f32.mrf.mxu0 }
 0x189   : > { %1128 = vst.msk [vmem:[#allocation2 + $0xd0] sm:$0xff] %vm1036_vm1, %v1013_v50  ;;  %4669 = vmatmul.msk.bf16.gmra.mxu2 %vm866_vm0, %v827_v49  ;;  %v1416_v18 = vld [vmem:[#allocation2 + $0xc8] sm:$0xff]  ;;  %v1238_v49 = vpack.c.bf16 %v1209_v42, %v1208_v46  ;;  %v1568_v42 = vpack.c.bf16 %v1536_v33, %v1535_v32  ;;  %v4815_v32 = vld [vmem:[%s6260_s2] ss:$0 sm:$0xff] }
 0x18a   : > { %v1412_v47 = vld [vmem:[#allocation2 + $0x88] sm:$0xff] }
 0x18b   : > { %v1442_v50 = vpack.c.bf16 %v1413_v60, %v1412_v47  ;;  %v684_v60 = vadd.f32 %v4990_v12, %v683_v27  ;;  %v5342_v46 = vsel %vm1036_vm1, %v1568_v42, 0  ;;  %v1404_v47 = vld [vmem:[#allocation2 + $0x8] sm:$0xff] }
 0x18c   : > { %v949_v51 = vpop.f32.mrf.mxu2 }
 0x18d   : > { %v950_v52 = vadd.f32 %v5092_v17, %v949_v51  ;;  %v1571_v51 = vpack.c.bf16 %v1542_v45, %v1541_v44 }
 0x18f   : > { %v1014_v53 = vmax.f32 %v950_v52, 0.0  ;;  %v5296_v52 = vsel %vm1036_vm1, %v1238_v49, 0 }
 0x190   : > { %v1213_v10 = vld [vmem:[#allocation2 + $0xcf] sm:$0xff]  ;;  %v685_v45 = vpop.f32.mrf.mxu0 }
 0x191   : > { %1129 = vst.msk [vmem:[#allocation2 + $0xe8] sm:$0xff] %vm1036_vm1, %v1014_v53  ;;  %v1417_v11 = vld [vmem:[#allocation2 + $0xd0] sm:$0xff]  ;;  %v1240_v20 = vpack.c.bf16 %v1213_v10, %v1212_v16  ;;  %v5299_v53 = vsel %vm1036_vm1, %v1442_v50, 0  ;;  %v686_v50 = vadd.f32 %v4990_v12, %v685_v45 }
 0x192   : > { %v1545_v14 = vld [vmem:[#allocation2 + $0xc9] sm:$0xff]  ;;  %v1546_v15 = vld [vmem:[#allocation2 + $0xd1] sm:$0xff]  ;;  %v1444_v21 = vpack.c.bf16 %v1417_v11, %v1416_v18 }
 0x193   : > { %v1573_v22 = vpack.c.bf16 %v1546_v15, %v1545_v14  ;;  %v5268_v23 = vsel %vm1036_vm1, %v1240_v20, 0  ;;  %v1205_v11 = vld [vmem:[#allocation2 + $0x4f] sm:$0xff]  ;;  %v1204_v18 = vld [vmem:[#allocation2 + $0x47] sm:$0xff] }
 0x194   : > { %v951_v54 = vpop.f32.mrf.mxu2  ;;  %v5271_v24 = vsel %vm1036_vm1, %v1444_v21, 0  ;;  %v1537_v15 = vld [vmem:[#allocation2 + $0x49] sm:$0xff]  ;;  %v1538_v16 = vld [vmem:[#allocation2 + $0x51] sm:$0xff]  ;;  %v1236_v21 = vpack.c.bf16 %v1205_v11, %v1204_v18 }
 0x195   : > { %v952_v55 = vadd.f32 %v5092_v17, %v951_v54  ;;  %v5276_v26 = vsel %vm1036_vm1, %v1573_v22, 0  ;;  %v1675_v27 = vld [vmem:[#allocation2 + $0xd2] sm:$0xff] }
 0x196   : > { %v5324_v30 = vsel %vm1036_vm1, %v1236_v21, 0 }
 0x197   : > { %v1015_v56 = vmax.f32 %v952_v55, 0.0  ;;  %v5304_v55 = vsel %vm1036_vm1, %v1571_v51, 0  ;;  %v1533_v51 = vld [vmem:[#allocation2 + $0x9] sm:$0xff] }
 0x198   : > { %v1214_v61 = vld [vmem:[#allocation2 + $0xe7] sm:$0xff] }
 0x199   : > { %1130 = vst.msk [vmem:[#allocation2 + $0xf0] sm:$0xff] %vm1036_vm1, %v1015_v56  ;;  %v1418_v62 = vld [vmem:[#allocation2 + $0xe8] sm:$0xff] }
 0x19a   : > { %v1207_v56 = vld [vmem:[#allocation2 + $0x6f] sm:$0xff] }
 0x19c   : > { %v954_v57 = vpop.f32.mrf.mxu2 }
 0x19d   : > { %v955_v58 = vadd.f32 %v5092_v17, %v954_v57  ;;  %v1411_v57 = vld [vmem:[#allocation2 + $0x70] sm:$0xff] }
 0x19f   : > { %v1016_v59 = vmax.f32 %v955_v58, 0.0 }
 0x1a0   : > { %v1215_v63 = vld [vmem:[#allocation2 + $0xef] sm:$0xff] }
 0x1a1   : > { %v1419_v0 = vld [vmem:[#allocation2 + $0xf0] sm:$0xff]  ;;  %1131 = vst.msk [vmem:[#allocation2 + $0x108] sm:$0xff] %vm1036_vm1, %v1016_v59  ;;  %v1241_v2 = vpack.c.bf16 %v1215_v63, %v1214_v61  ;;  %v1410_v63 = vld [vmem:[#allocation2 + $0x68] sm:$0xff] }
 0x1a2   : > { %v1547_v1 = vld [vmem:[#allocation2 + $0xe9] sm:$0xff]  ;;  %v1445_v3 = vpack.c.bf16 %v1419_v0, %v1418_v62  ;;  %v1548_v4 = vld [vmem:[#allocation2 + $0xf1] sm:$0xff] }
 0x1a3   : > { %v1574_v5 = vpack.c.bf16 %v1548_v4, %v1547_v1  ;;  %v5254_v6 = vsel %vm1036_vm1, %v1241_v2, 0  ;;  %v1539_v59 = vld [vmem:[#allocation2 + $0x69] sm:$0xff]  ;;  %v1540_v61 = vld [vmem:[#allocation2 + $0x71] sm:$0xff]  ;;  %v1441_v2 = vpack.c.bf16 %v1411_v57, %v1410_v63 }
 0x1a4   : > { %v5257_v7 = vsel %vm1036_vm1, %v1445_v3, 0  ;;  %v956_v8 = vpop.f32.mrf.mxu2  ;;  %1301 = vmatpush.bf16.xpose.msra.mxu3 %v5254_v6  ;;  %v1206_v62 = vld [vmem:[#allocation2 + $0x67] sm:$0xff]  ;;  %v1570_v3 = vpack.c.bf16 %v1540_v61, %v1539_v59  ;;  %v1677_v61 = vld [vmem:[#allocation2 + $0xf2] sm:$0xff] }
 0x1a5   : > { %1505 = vmatpush.bf16.xpose.msrb.mxu2 %v5257_v7  ;;  %v5262_v9 = vsel %vm1036_vm1, %v1574_v5, 0  ;;  %v957_v13 = vadd.f32 %v5092_v17, %v956_v8  ;;  %v1237_v1 = vpack.c.bf16 %v1207_v56, %v1206_v62  ;;  %v5313_v5 = vsel %vm1036_vm1, %v1441_v2, 0  ;;  %v1676_v59 = vld [vmem:[#allocation2 + $0xea] sm:$0xff] }
 0x1a6   : > { %1634 = vmatpush.bf16.xpose.msrb.mxu1 %v5262_v9  ;;  %v5318_v10 = vsel %vm1036_vm1, %v1570_v3, 0 }
 0x1a7   : > { %v1017_v19 = vmax.f32 %v957_v13, 0.0  ;;  %v5310_v4 = vsel %vm1036_vm1, %v1237_v1, 0  ;;  %v1409_v13 = vld [vmem:[#allocation2 + $0x50] sm:$0xff] }
 0x1a8   : > { %v1806_v12 = vld [vmem:[#allocation2 + $0x106] sm:$0xff] }
 0x1a9   : > { %1132 = vst.msk [vmem:[#allocation2 + $0x110] sm:$0xff] %vm1036_vm1, %v1017_v19  ;;  %v1408_v19 = vld [vmem:[#allocation2 + $0x48] sm:$0xff] }
 0x1aa   : > { %v1440_v22 = vpack.c.bf16 %v1409_v13, %v1408_v19 }
 0x1ac   : > { %v959_v25 = vpop.f32.mrf.mxu2  ;;  %1302 = vmatpush.bf16.xpose.msra.mxu3 %v5268_v23  ;;  %v5327_v31 = vsel %vm1036_vm1, %v1440_v22, 0 }
 0x1ad   : > { %1506 = vmatpush.bf16.xpose.msrb.mxu2 %v5271_v24  ;;  %v960_v29 = vadd.f32 %v5092_v17, %v959_v25  ;;  %v1569_v25 = vpack.c.bf16 %v1538_v16, %v1537_v15  ;;  %v688_v15 = vpop.f32.mrf.mxu0 }
 0x1ae   : > { %1635 = vmatpush.bf16.xpose.msrb.mxu1 %v5276_v26  ;;  %v689_v33 = vadd.f32 %v4815_v32, %v688_v15 }
 0x1af   : > { %v1018_v34 = vmax.f32 %v960_v29, 0.0  ;;  %v1407_v29 = vld [vmem:[#allocation2 + $0x30] sm:$0xff]  ;;  %v5332_v35 = vsel %vm1036_vm1, %v1569_v25, 0 }
 0x1b0   : > { %v1439_v37 = vpack.c.bf16 %v1407_v29, %v1406_v28  ;;  %v1674_v25 = vld [vmem:[#allocation2 + $0xca] sm:$0xff] }
 0x1b1   : > { %1133 = vst.msk [vmem:[#allocation2 + $0x128] sm:$0xff] %vm1036_vm1, %v1018_v34  ;;  %v1805_v29 = vld [vmem:[#allocation2 + $0xee] sm:$0xff] }
 0x1b2   : > { %v5339_v44 = vsel %vm1036_vm1, %v1439_v37, 0  ;;  %v1804_v37 = vld [vmem:[#allocation2 + $0xe6] sm:$0xff] }
 0x1b4   : > { %v961_v40 = vpop.f32.mrf.mxu2  ;;  %1303 = vmatpush.bf16.xpose.msra.mxu3 %v5282_v38 }
 0x1b5   : > { %1507 = vmatpush.bf16.xpose.msrb.mxu2 %v5285_v39  ;;  %v962_v43 = vadd.f32 %v5092_v17, %v961_v40  ;;  %v772_v40 = vpop.f32.mrf.mxu1  ;;  %v690_v42 = vpop.f32.mrf.mxu0 }
 0x1b6   : > { %1636 = vmatpush.bf16.xpose.msrb.mxu1 %v5290_v41  ;;  %v773_v49 = vadd.f32 %v772_v40, %v684_v60  ;;  %v1832_v40 = vpack.c.bf16 %v1805_v29, %v1804_v37  ;;  %v1668_v29 = vld [vmem:[#allocation2 + $0x6a] sm:$0xff] }
 0x1b7   : > { %v1019_v48 = vmax.f32 %v962_v43, 0.0  ;;  %v1798_v37 = vld [vmem:[#allocation2 + $0x86] sm:$0xff] }
 0x1b8   : > { %v810_v1 = vmax.f32 %v773_v49, 0.0  ;;  %v5371_v49 = vsel %vm1036_vm1, %v1832_v40, 0 }
 0x1b9   : > { %1134 = vst.msk [vmem:[#allocation2 + $0x130] sm:$0xff] %vm1036_vm1, %v1019_v48  ;;  %v1405_v48 = vld [vmem:[#allocation2 + $0x10] sm:$0xff] }
 0x1bc   : > { %v964_v54 = vpop.f32.mrf.mxu2  ;;  %1304 = vmatpush.bf16.xpose.msra.mxu3 %v5296_v52 }
 0x1bd   : > { %1508 = vmatpush.bf16.xpose.msrb.mxu2 %v5299_v53  ;;  %v965_v58 = vadd.f32 %v5092_v17, %v964_v54  ;;  %v1534_v54 = vld [vmem:[#allocation2 + $0x11] sm:$0xff]  ;;  %v774_v62 = vpop.f32.mrf.mxu1 }
 0x1be   : > { %1637 = vmatpush.bf16.xpose.msrb.mxu1 %v5304_v55  ;;  %v1567_v63 = vpack.c.bf16 %v1534_v54, %v1533_v51  ;;  %v775_v2 = vadd.f32 %v774_v62, %v686_v50  ;;  %v1672_v50 = vld [vmem:[#allocation2 + $0xaa] sm:$0xff]  ;;  %v1673_v51 = vld [vmem:[#allocation2 + $0xb2] sm:$0xff] }
 0x1bf   : > { %v1020_v0 = vmax.f32 %v965_v58, 0.0  ;;  %v1438_v58 = vpack.c.bf16 %v1405_v48, %v1404_v47  ;;  %v1802_v62 = vld [vmem:[#allocation2 + $0xc6] sm:$0xff] }
 0x1c0   : > { %v811_v11 = vmax.f32 %v775_v2, 0.0  ;;  %v1587_v16 = vsel %vm1036_vm1, %v1567_v63, 0 }
 0x1c1   : > { %1135 = vst.msk [vmem:[#allocation2 + $0x148] sm:$0xff] %vm1036_vm1, %v1020_v0  ;;  %v1807_v0 = vld [vmem:[#allocation2 + $0x10e] sm:$0xff]  ;;  %v1458_v13 = vsel %vm1036_vm1, %v1438_v58, 0 }
 0x1c2   : > { %v828_v18 = vpack.c.bf16 %v811_v11, %v810_v1  ;;  %v1670_v11 = vld [vmem:[#allocation2 + $0x8a] sm:$0xff] }
 0x1c4   : > { %v966_v8 = vpop.f32.mrf.mxu2  ;;  %1305 = vmatpush.bf16.xpose.msra.mxu3 %v5310_v4  ;;  %4670 = vmatmul.msk.bf16.gmra.mxu2 %vm866_vm0, %v828_v18  ;;  %v1800_v18 = vld [vmem:[#allocation2 + $0xa6] sm:$0xff] }
 0x1c5   : > { %1509 = vmatpush.bf16.xpose.msrb.mxu2 %v5313_v5  ;;  %v967_v14 = vadd.f32 %v5092_v17, %v966_v8  ;;  %v1703_v8 = vpack.c.bf16 %v1677_v61, %v1676_v59  ;;  %v777_v28 = vpop.f32.mrf.mxu1  ;;  %v1701_v61 = vpack.c.bf16 %v1673_v51, %v1672_v50 }
 0x1c6   : > { %1638 = vmatpush.bf16.xpose.msrb.mxu1 %v5318_v10  ;;  %v778_v60 = vadd.f32 %v777_v28, %v689_v33  ;;  %v1799_v33 = vld [vmem:[#allocation2 + $0x8e] sm:$0xff] }
 0x1c7   : > { %v1021_v20 = vmax.f32 %v967_v14, 0.0  ;;  %v1833_v14 = vpack.c.bf16 %v1807_v0, %v1806_v12  ;;  %v1829_v40 = vpack.c.bf16 %v1799_v33, %v1798_v37  ;;  %v1794_v33 = vld [vmem:[#allocation2 + $0x46] sm:$0xff] }
 0x1c8   : > { %v1662_v37 = vld [vmem:[#allocation2 + $0xa] sm:$0xff] }
 0x1c9   : > { %1136 = vst.msk [vmem:[#allocation2 + $0x150] sm:$0xff] %vm1036_vm1, %v1021_v20  ;;  %v5352_v20 = vsel %vm1036_vm1, %v1703_v8, 0  ;;  %v5357_v22 = vsel %vm1036_vm1, %v1833_v14, 0  ;;  %v1801_v14 = vld [vmem:[#allocation2 + $0xae] sm:$0xff] }
 0x1cc   : > { %v969_v34 = vpop.f32.mrf.mxu2  ;;  %1306 = vmatpush.bf16.xpose.msra.mxu3 %v5324_v30 }
 0x1cd   : > { %1510 = vmatpush.bf16.xpose.msrb.mxu2 %v5327_v31  ;;  %v970_v36 = vadd.f32 %v5092_v17, %v969_v34  ;;  %v779_v54 = vpop.f32.mrf.mxu1 }
 0x1ce   : > { %1639 = vmatpush.bf16.xpose.msrb.mxu1 %v5332_v35 }
 0x1cf   : > { %v1022_v43 = vmax.f32 %v970_v36, 0.0  ;;  %v1702_v36 = vpack.c.bf16 %v1675_v27, %v1674_v25 }
 0x1d1   : > { %1137 = vst.msk [vmem:[#allocation2 + $0x168] sm:$0xff] %vm1036_vm1, %v1022_v43  ;;  %v691_v43 = vadd.f32 %v4815_v32, %v690_v42  ;;  %v5366_v47 = vsel %vm1036_vm1, %v1702_v36, 0  ;;  %v1669_v32 = vld [vmem:[#allocation2 + $0x72] sm:$0xff]  ;;  %v4680_v42 = vld [vmem:[%s6263_s5 + $0xc] sm:$0xf] }
 0x1d2   : > { %v1699_v36 = vpack.c.bf16 %v1669_v32, %v1668_v29  ;;  %v1795_v29 = vld [vmem:[#allocation2 + $0x4e] sm:$0xff] }
 0x1d3   : > { %v780_v58 = vadd.f32 %v779_v54, %v691_v43  ;;  %v1202_v43 = vld [vmem:[#allocation2 + $0x27] sm:$0xff] }
 0x1d4   : > { %v971_v56 = vpop.f32.mrf.mxu2  ;;  %v5406_v50 = vsel %vm1036_vm1, %v1699_v36, 0 }
 0x1d5   : > { %1511 = vmatpush.bf16.xpose.msrb.mxu2 %v5339_v44  ;;  %v972_v57 = vadd.f32 %v5092_v17, %v971_v56  ;;  %v1803_v56 = vld [vmem:[#allocation2 + $0xce] sm:$0xff]  ;;  %v813_v63 = vmax.f32 %v780_v58, 0.0 }
 0x1d6   : > { %1640 = vmatpush.bf16.xpose.msrb.mxu1 %v5342_v46  ;;  %v1831_v0 = vpack.c.bf16 %v1803_v56, %v1802_v62  ;;  %v5411_v56 = vsel %vm1036_vm1, %v1829_v40, 0  ;;  %v1667_v58 = vld [vmem:[#allocation2 + $0x52] sm:$0xff] }
 0x1d7   : > { %v1023_v3 = vmax.f32 %v972_v57, 0.0  ;;  %v812_v57 = vmax.f32 %v778_v60, 0.0  ;;  %v5402_v60 = vld [vmem:[%s6263_s5 + $0x8] sm:$0xf]  ;;  %v1663_v40 = vld [vmem:[#allocation2 + $0x12] sm:$0xff] }
 0x1d8   : > { %v5381_v12 = vsel %vm1036_vm1, %v1831_v0, 0  ;;  %v1201_v0 = vld [vmem:[#allocation2 + $0xf] sm:$0xff] }
 0x1d9   : > { %1138 = vst.msk [vmem:[#allocation2 + $0x170] sm:$0xff] %vm1036_vm1, %v1023_v3  ;;  %v829_v1 = vpack.c.bf16 %v813_v63, %v812_v57  ;;  %v5376_v3 = vsel %vm1036_vm1, %v1701_v61, 0  ;;  %v1666_v57 = vld [vmem:[#allocation2 + $0x4a] sm:$0xff] }
 0x1da   : > { %v1200_v63 = vld [vmem:[#allocation2 + $0x7] sm:$0xff] }
 0x1db   : > { %4671 = vmatmul.msk.bf16.gmra.mxu2 %vm866_vm0, %v829_v1  ;;  %v1698_v1 = vpack.c.bf16 %v1667_v58, %v1666_v57  ;;  %v1936_v57 = vld [vmem:[#allocation2 + $0x10f] sm:$0xff] }
 0x1dc   : > { %v974_v19 = vpop.f32.mrf.mxu2 }
 0x1dd   : > { %1512 = vmatpush.bf16.xpose.msrb.mxu2 %v1458_v13  ;;  %v975_v21 = vadd.f32 %v5092_v17, %v974_v19  ;;  %v1671_v13 = vld [vmem:[#allocation2 + $0x92] sm:$0xff]  ;;  %v1830_v19 = vpack.c.bf16 %v1801_v14, %v1800_v18 }
 0x1de   : > { %1641 = vmatpush.bf16.xpose.msrb.mxu1 %v1587_v16  ;;  %v1700_v16 = vpack.c.bf16 %v1671_v13, %v1670_v11  ;;  %v1664_v13 = vld [vmem:[#allocation2 + $0x2a] sm:$0xff]  ;;  %v1665_v14 = vld [vmem:[#allocation2 + $0x32] sm:$0xff] }
 0x1df   : > { %v1024_v34 = vmax.f32 %v975_v21, 0.0  ;;  %v5392_v28 = vsel %vm1036_vm1, %v1830_v19, 0 }
 0x1e0   : > { %v5387_v25 = vsel %vm1036_vm1, %v1700_v16, 0  ;;  %v5422_v16 = vsel %vm1036_vm1, %v1698_v1, 0  ;;  %v2064_v1 = vld [vmem:[#allocation2 + $0x108] sm:$0xff] }
 0x1e1   : > { %1139 = vst.msk [vmem:[#allocation2 + $0x188] sm:$0xff] %vm1036_vm1, %v1024_v34 }
 0x1e4   : > { %v976_v45 = vpop.f32.mrf.mxu2 }
 0x1e5   : > { %1763 = vmatpush.bf16.xpose.msra.mxu2 %v5352_v20  ;;  %v977_v48 = vadd.f32 %v5092_v17, %v976_v45  ;;  %4681 = vmatmul.msk.bf16.vlgmr.msrb.gmra.mxu1 %vm1036_vm1, %v4680_v42  ;;  %v1203_v45 = vld [vmem:[#allocation2 + $0x2f] sm:$0xff] }
 0x1e6   : > { %1893 = vmatpush.bf16.xpose.msra.mxu1 %v5357_v22  ;;  %v1235_v51 = vpack.c.bf16 %v1203_v45, %v1202_v43  ;;  %v1792_v43 = vld [vmem:[#allocation2 + $0x26] sm:$0xff]  ;;  %v1793_v45 = vld [vmem:[#allocation2 + $0x2e] sm:$0xff] }
 0x1e7   : > { %v1025_v59 = vmax.f32 %v977_v48, 0.0 }
 0x1e8   : > { %v5417_v61 = vsel %vm1036_vm1, %v1235_v51, 0 }
 0x1e9   : > { %1140 = vst.msk [vmem:[#allocation2 + $0x190] sm:$0xff] %vm1036_vm1, %v1025_v59  ;;  %v1797_v59 = vld [vmem:[#allocation2 + $0x6e] sm:$0xff]  ;;  %1307 = vmatpush.bf16.xpose.msra.mxu3 %v5417_v61 }
 0x1eb   : > { %4678 = vmatmul.msk.bf16.vlgmr.msrb.gmra.mxu2 %vm1036_vm1, %v5402_v60 }
 0x1ec   : > { %v979_v2 = vpop.f32.mrf.mxu2 }
 0x1ed   : > { %1764 = vmatpush.bf16.xpose.msra.mxu2 %v5366_v47  ;;  %v980_v8 = vadd.f32 %v5092_v17, %v979_v2  ;;  %v1796_v2 = vld [vmem:[#allocation2 + $0x66] sm:$0xff] }
 0x1ee   : > { %1894 = vmatpush.bf16.xpose.msra.mxu1 %v5371_v49  ;;  %v1828_v11 = vpack.c.bf16 %v1797_v59, %v1796_v2  ;;  %v1826_v59 = vpack.c.bf16 %v1793_v45, %v1792_v43 }
 0x1ef   : > { %v1026_v15 = vmax.f32 %v980_v8, 0.0  ;;  %v1234_v8 = vpack.c.bf16 %v1201_v0, %v1200_v63  ;;  %v1935_v63 = vld [vmem:[#allocation2 + $0x107] sm:$0xff] }
 0x1f0   : > { %v1962_v0 = vpack.c.bf16 %v1936_v57, %v1935_v63 }
 0x1f1   : > { %1141 = vst.msk [vmem:[#allocation2 + $0x1a8] sm:$0xff] %vm1036_vm1, %v1026_v15  ;;  %v1254_v18 = vsel %vm1036_vm1, %v1234_v8, 0 }
 0x1f2   : > { %1308 = vmatpush.bf16.xpose.msra.mxu3 %v1254_v18 }
 0x1f4   : > { %v981_v21 = vpop.f32.mrf.mxu2 }
 0x1f5   : > { %1765 = vmatpush.bf16.xpose.msra.mxu2 %v5376_v3  ;;  %v982_v27 = vadd.f32 %v5092_v17, %v981_v21  ;;  %v5428_v21 = vsel %vm1036_vm1, %v1828_v11, 0  ;;  %v5444_v11 = vsel %vm1036_vm1, %v1826_v59, 0 }
 0x1f6   : > { %1895 = vmatpush.bf16.xpose.msra.mxu1 %v5381_v12 }
 0x1f7   : > { %v1027_v34 = vmax.f32 %v982_v27, 0.0  ;;  %v1697_v27 = vpack.c.bf16 %v1665_v14, %v1664_v13 }
 0x1f9   : > { %1142 = vst.msk [vmem:[#allocation2 + $0x1b0] sm:$0xff] %vm1036_vm1, %v1027_v34  ;;  %v1827_v34 = vpack.c.bf16 %v1795_v29, %v1794_v33  ;;  %v5433_v36 = vsel %vm1036_vm1, %v1697_v27, 0 }
 0x1fb   : > { %v5438_v51 = vsel %vm1036_vm1, %v1827_v34, 0 }
 0x1fc   : > { %v984_v48 = vpop.f32.mrf.mxu2 }
 0x1fd   : > { %1766 = vmatpush.bf16.xpose.msra.mxu2 %v5387_v25  ;;  %v985_v54 = vadd.f32 %v5092_v17, %v984_v48 }
 0x1fe   : > { %1896 = vmatpush.bf16.xpose.msra.mxu1 %v5392_v28 }
 0x1ff   : > { %v1028_v62 = vmax.f32 %v985_v54, 0.0  ;;  %v1696_v54 = vpack.c.bf16 %v1663_v40, %v1662_v37 }
 0x200   : > { %v1431_v59 = vld [vmem:[#allocation2 + $0x1b0] sm:$0xff] }
 0x201   : > { %1143 = vst.msk [vmem:[#allocation2 + $0x1c8] sm:$0xff] %vm1036_vm1, %v1028_v62  ;;  %v2065_v62 = vld [vmem:[#allocation2 + $0x110] sm:$0xff]  ;;  %v1716_v2 = vsel %vm1036_vm1, %v1696_v54, 0 }
 0x202   : > { %v2091_v8 = vpack.c.bf16 %v2065_v62, %v2064_v1  ;;  %v1226_v62 = vld [vmem:[#allocation2 + $0x1a7] sm:$0xff]  ;;  %v4686_v1 = vld [vmem:[%s6263_s5 + $0x14] sm:$0xf] }
 0x204   : > { %v986_v15 = vpop.f32.mrf.mxu2  ;;  %v5453_v18 = vsel %vm1036_vm1, %v2091_v8, 0  ;;  %v1429_v8 = vld [vmem:[#allocation2 + $0x190] sm:$0xff] }
 0x205   : > { %1767 = vmatpush.bf16.xpose.msra.mxu2 %v5406_v50  ;;  %v987_v19 = vadd.f32 %v5092_v17, %v986_v15  ;;  %v5448_v15 = vsel %vm1036_vm1, %v1962_v0, 0  ;;  %v5476_v0 = vld [vmem:[%s6263_s5 + $0x10] sm:$0xf] }
 0x206   : > { %1897 = vmatpush.bf16.xpose.msra.mxu1 %v5411_v56 }
 0x207   : > { %v1029_v32 = vmax.f32 %v987_v19, 0.0 }
 0x209   : > { %1144 = vst.msk [vmem:[#allocation2 + $0x1d0] sm:$0xff] %vm1036_vm1, %v1029_v32 }
 0x20c   : > { %v989_v42 = vpop.f32.mrf.mxu2 }
 0x20d   : > { %1768 = vmatpush.bf16.xpose.msra.mxu2 %v5422_v16  ;;  %v990_v48 = vadd.f32 %v5092_v17, %v989_v42 }
 0x20e   : > { %1898 = vmatpush.bf16.xpose.msra.mxu1 %v5428_v21 }
 0x20f   : > { %v1030_v58 = vmax.f32 %v990_v48, 0.0 }
 0x210   : > { %v1229_v42 = vld [vmem:[#allocation2 + $0x1cf] sm:$0xff] }
 0x211   : > { %1145 = vst.msk [vmem:[#allocation2 + $0x1e8] sm:$0xff] %vm1036_vm1, %v1030_v58  ;;  %v1433_v43 = vld [vmem:[#allocation2 + $0x1d0] sm:$0xff] }
 0x212   : > { %v1227_v58 = vld [vmem:[#allocation2 + $0x1af] sm:$0xff] }
 0x213   : > { %v1247_v63 = vpack.c.bf16 %v1227_v58, %v1226_v62  ;;  %v2193_v58 = vld [vmem:[#allocation2 + $0x109] sm:$0xff] }
 0x214   : > { %v991_v13 = vpop.f32.mrf.mxu2  ;;  %v2322_v62 = vld [vmem:[#allocation2 + $0x10a] sm:$0xff] }
 0x215   : > { %1769 = vmatpush.bf16.xpose.msra.mxu2 %v5433_v36  ;;  %v992_v14 = vadd.f32 %v5092_v17, %v991_v13  ;;  %v5492_v13 = vld [vmem:[%s6263_s5 + $0x4] sm:$0xf] }
 0x216   : > { %1899 = vmatpush.bf16.xpose.msra.mxu1 %v5438_v51  ;;  %4673 = vmatmul.msk.bf16.vlgmr.msra.gmra.mxu3 %vm1036_vm1, %v5492_v13 }
 0x217   : > { %v1031_v19 = vmax.f32 %v992_v14, 0.0  ;;  %v1224_v14 = vld [vmem:[#allocation2 + $0x187] sm:$0xff] }
 0x218   : > { %v1230_v17 = vld [vmem:[#allocation2 + $0x1e7] sm:$0xff] }
 0x219   : > { %1146 = vst.msk [vmem:[#allocation2 + $0x1f0] sm:$0xff] %vm1036_vm1, %v1031_v19  ;;  %v1434_v29 = vld [vmem:[#allocation2 + $0x1e8] sm:$0xff] }
 0x21a   : > { %v1428_v19 = vld [vmem:[#allocation2 + $0x188] sm:$0xff] }
 0x21d   : > { %1770 = vmatpush.bf16.xpose.msra.mxu2 %v1716_v2  ;;  %v1225_v2 = vld [vmem:[#allocation2 + $0x18f] sm:$0xff] }
 0x21e   : > { %1900 = vmatpush.bf16.xpose.msra.mxu1 %v5444_v11 }
 0x220   : > { %v1231_v27 = vld [vmem:[#allocation2 + $0x1ef] sm:$0xff] }
 0x221   : > { %v1435_v32 = vld [vmem:[#allocation2 + $0x1f0] sm:$0xff]  ;;  %v1249_v33 = vpack.c.bf16 %v1231_v27, %v1230_v17  ;;  %v1246_v17 = vpack.c.bf16 %v1225_v2, %v1224_v14  ;;  %v1450_v27 = vpack.c.bf16 %v1429_v8, %v1428_v19  ;;  %v1218_v8 = vld [vmem:[#allocation2 + $0x127] sm:$0xff] }
 0x222   : > { %v1453_v34 = vpack.c.bf16 %v1435_v32, %v1434_v29  ;;  %v1423_v2 = vld [vmem:[#allocation2 + $0x130] sm:$0xff]  ;;  %v1422_v14 = vld [vmem:[#allocation2 + $0x128] sm:$0xff] }
 0x223   : > { %v5460_v37 = vsel %vm1036_vm1, %v1249_v33, 0  ;;  %v5499_v29 = vsel %vm1036_vm1, %v1246_v17, 0  ;;  %v1494_v32 = vsel %vm1036_vm1, %v1450_v27, 0  ;;  %v1223_v33 = vld [vmem:[#allocation2 + $0x16f] sm:$0xff]  ;;  %v1447_v27 = vpack.c.bf16 %v1423_v2, %v1422_v14  ;;  %v2451_v2 = vld [vmem:[#allocation2 + $0x126] sm:$0xff] }
 0x224   : > { %v1503_v40 = vsel %vm1036_vm1, %v1453_v34, 0  ;;  %1314 = vmatpush.bf16.xpose.msrb.mxu3 %v5460_v37  ;;  %4684 = vmatmul.msk.bf16.vlgmr.msra.gmra.mxu2 %vm1036_vm1, %v5476_v0  ;;  %v1427_v34 = vld [vmem:[#allocation2 + $0x170] sm:$0xff] }
 0x225   : > { %2022 = vmatpush.bf16.xpose.msrb.mxu2 %v5448_v15  ;;  %1518 = vmatpush.bf16.xpose.msrb.mxu0 %v1503_v40  ;;  %v1222_v40 = vld [vmem:[#allocation2 + $0x167] sm:$0xff]  ;;  %v1681_v14 = vld [vmem:[#allocation2 + $0x132] sm:$0xff] }
 0x226   : > { %2151 = vmatpush.bf16.xpose.msrb.mxu1 %v5453_v18 }
 0x227   : > { %4687 = vmatmul.msk.bf16.vlgmr.msra.gmra.mxu1 %vm1036_vm1, %v4686_v1 }
 0x22d   : > { %2023 = vmatpush.bf16.xpose.msrb.mxu2 %v5254_v6  ;;  %v1228_v6 = vld [vmem:[#allocation2 + $0x1c7] sm:$0xff] }
 0x22e   : > { %2152 = vmatpush.bf16.xpose.msrb.mxu1 %v5257_v7  ;;  %v1432_v7 = vld [vmem:[#allocation2 + $0x1c8] sm:$0xff]  ;;  %v1248_v45 = vpack.c.bf16 %v1229_v42, %v1228_v6  ;;  %v1245_v42 = vpack.c.bf16 %v1223_v33, %v1222_v40  ;;  %v1693_v33 = vld [vmem:[#allocation2 + $0x1f2] sm:$0xff] }
 0x22f   : > { %v1452_v48 = vpack.c.bf16 %v1433_v43, %v1432_v7  ;;  %v1221_v7 = vld [vmem:[#allocation2 + $0x14f] sm:$0xff] }
 0x230   : > { %v5467_v54 = vsel %vm1036_vm1, %v1248_v45, 0  ;;  %v5506_v43 = vsel %vm1036_vm1, %v1245_v42, 0  ;;  %v1425_v45 = vld [vmem:[#allocation2 + $0x150] sm:$0xff] }
 0x231   : > { %v1500_v57 = vsel %vm1036_vm1, %v1452_v48, 0  ;;  %1315 = vmatpush.bf16.xpose.msrb.mxu3 %v5467_v54  ;;  %v1220_v48 = vld [vmem:[#allocation2 + $0x147] sm:$0xff]  ;;  %v1691_v42 = vld [vmem:[#allocation2 + $0x1d2] sm:$0xff] }
 0x232   : > { %1519 = vmatpush.bf16.xpose.msrb.mxu0 %v1500_v57  ;;  %v1244_v57 = vpack.c.bf16 %v1221_v7, %v1220_v48  ;;  %v1689_v7 = vld [vmem:[#allocation2 + $0x1b2] sm:$0xff] }
 0x235   : > { %2024 = vmatpush.bf16.xpose.msrb.mxu2 %v5268_v23  ;;  %v1430_v23 = vld [vmem:[#allocation2 + $0x1a8] sm:$0xff] }
 0x236   : > { %2153 = vmatpush.bf16.xpose.msrb.mxu1 %v5271_v24  ;;  %v1451_v24 = vpack.c.bf16 %v1431_v59, %v1430_v23  ;;  %v2194_v59 = vld [vmem:[#allocation2 + $0x111] sm:$0xff] }
 0x237   : > { %v2323_v23 = vld [vmem:[#allocation2 + $0x112] sm:$0xff] }
 0x23d   : > { %2025 = vmatpush.bf16.xpose.msrb.mxu2 %v5282_v38  ;;  %v5485_v38 = vsel %vm1036_vm1, %v1247_v63, 0  ;;  %v2220_v63 = vpack.c.bf16 %v2194_v59, %v2193_v58 }
 0x23e   : > { %2154 = vmatpush.bf16.xpose.msrb.mxu1 %v5285_v39  ;;  %v1497_v39 = vsel %vm1036_vm1, %v1451_v24, 0  ;;  %1316 = vmatpush.bf16.xpose.msrb.mxu3 %v5485_v38  ;;  %v5513_v24 = vsel %vm1036_vm1, %v1244_v57, 0  ;;  %v1686_v57 = vld [vmem:[#allocation2 + $0x18a] sm:$0xff] }
 0x23f   : > { %1520 = vmatpush.bf16.xpose.msrb.mxu0 %v1497_v39  ;;  %v2349_v39 = vpack.c.bf16 %v2323_v23, %v2322_v62  ;;  %v1684_v62 = vld [vmem:[#allocation2 + $0x16a] sm:$0xff]  ;;  %v1685_v23 = vld [vmem:[#allocation2 + $0x172] sm:$0xff] }
 0x241   : > { %v5524_v19 = vsel %vm1036_vm1, %v2349_v39, 0 }
 0x245   : > { %2026 = vmatpush.bf16.xpose.msrb.mxu2 %v5296_v52  ;;  %v1426_v52 = vld [vmem:[#allocation2 + $0x168] sm:$0xff] }
 0x246   : > { %2155 = vmatpush.bf16.xpose.msrb.mxu1 %v5299_v53  ;;  %1317 = vmatpush.bf16.xpose.msrb.mxu3 %v5499_v29  ;;  %v1449_v53 = vpack.c.bf16 %v1427_v34, %v1426_v52  ;;  %v1690_v52 = vld [vmem:[#allocation2 + $0x1ca] sm:$0xff] }
 0x247   : > { %1521 = vmatpush.bf16.xpose.msrb.mxu0 %v1494_v32 }
 0x248   : > { %v1491_v6 = vsel %vm1036_vm1, %v1449_v53, 0  ;;  %v1710_v53 = vpack.c.bf16 %v1691_v42, %v1690_v52  ;;  %v1181_v42 = vld [vmem:[#allocation2 + $0x1e6] sm:$0xff] }
 0x24d   : > { %2027 = vmatpush.bf16.xpose.msrb.mxu2 %v5310_v4  ;;  %v1424_v4 = vld [vmem:[#allocation2 + $0x148] sm:$0xff] }
 0x24e   : > { %2156 = vmatpush.bf16.xpose.msrb.mxu1 %v5313_v5  ;;  %1318 = vmatpush.bf16.xpose.msrb.mxu3 %v5506_v43  ;;  %v1448_v5 = vpack.c.bf16 %v1425_v45, %v1424_v4 }
 0x24f   : > { %1522 = vmatpush.bf16.xpose.msrb.mxu0 %v1491_v6  ;;  %v1758_v6 = vsel %vm1036_vm1, %v1710_v53, 0 }
 0x250   : > { %v1488_v1 = vsel %vm1036_vm1, %v1448_v5, 0  ;;  %v1687_v5 = vld [vmem:[#allocation2 + $0x192] sm:$0xff] }
 0x251   : > { %v1708_v58 = vpack.c.bf16 %v1687_v5, %v1686_v57  ;;  %v1177_v5 = vld [vmem:[#allocation2 + $0x1a6] sm:$0xff] }
 0x253   : > { %v1752_v59 = vsel %vm1036_vm1, %v1708_v58, 0 }
 0x255   : > { %2028 = vmatpush.bf16.xpose.msrb.mxu2 %v5324_v30  ;;  %v1219_v30 = vld [vmem:[#allocation2 + $0x12f] sm:$0xff] }
 0x256   : > { %2157 = vmatpush.bf16.xpose.msrb.mxu1 %v5327_v31  ;;  %1319 = vmatpush.bf16.xpose.msrb.mxu3 %v5513_v24  ;;  %v5519_v31 = vsel %vm1036_vm1, %v2220_v63, 0  ;;  %v1243_v17 = vpack.c.bf16 %v1219_v30, %v1218_v8  ;;  %v1707_v63 = vpack.c.bf16 %v1685_v23, %v1684_v62  ;;  %v2452_v30 = vld [vmem:[#allocation2 + $0x12e] sm:$0xff] }
 0x257   : > { %1523 = vmatpush.bf16.xpose.msrb.mxu0 %v1488_v1  ;;  %v2478_v8 = vpack.c.bf16 %v2452_v30, %v2451_v2  ;;  %v2572_v62 = vld [vmem:[#allocation2 + $0xa7] sm:$0xff] }
 0x258   : > { %v5528_v32 = vsel %vm1036_vm1, %v1243_v17, 0  ;;  %v1749_v1 = vsel %vm1036_vm1, %v1707_v63, 0  ;;  %v1176_v63 = vld [vmem:[#allocation2 + $0x18e] sm:$0xff] }
 0x259   : > { %v5587_v17 = vsel %vm1036_vm1, %v2478_v8, 0  ;;  %v1174_v2 = vld [vmem:[#allocation2 + $0x16e] sm:$0xff] }
 0x25d   : > { %2029 = vmatpush.bf16.xpose.msrb.mxu2 %v5417_v61  ;;  %v5531_v61 = vsel %vm1036_vm1, %v1447_v27, 0  ;;  %v1152_v27 = vld [vmem:[#allocation2 + $0xe] sm:$0xff] }
 0x25e   : > { %2158 = vmatpush.bf16.xpose.msrb.mxu1 %v5339_v44  ;;  %1320 = vmatpush.bf16.xpose.msrb.mxu3 %v5528_v32  ;;  %v1692_v44 = vld [vmem:[#allocation2 + $0x1ea] sm:$0xff] }
 0x25f   : > { %1524 = vmatpush.bf16.xpose.msrb.mxu0 %v5531_v61  ;;  %v1711_v34 = vpack.c.bf16 %v1693_v33, %v1692_v44  ;;  %v5595_v44 = vld [vmem:[%s6263_s5 + $0x20] sm:$0xf] }
 0x261   : > { %v1761_v40 = vsel %vm1036_vm1, %v1711_v34, 0 }
 0x265   : > { %2280 = vmatpush.bf16.xpose.msra.mxu2 %v5519_v31 }
 0x266   : > { %2409 = vmatpush.bf16.xpose.msra.mxu1 %v5524_v19  ;;  %1321 = vmatpush.bf16.xpose.msrb.mxu3 %v5448_v15 }
 0x267   : > { %1525 = vmatpush.bf16.xpose.msrb.mxu0 %v5453_v18 }
 0x26d   : > { %2281 = vmatpush.bf16.xpose.msra.mxu2 %v5262_v9  ;;  %v994_v9 = vpop.f32.mrf.mxu2  ;;  %4674 = vmatmul.msk.bf16.vlgmr.msrb.gmra.mxu3 %vm1036_vm1, %v5492_v13  ;;  %v5561_v13 = vld [vmem:[%s6263_s5 + $0x18] sm:$0xf] }
 0x26e   : > { %2410 = vmatpush.bf16.xpose.msra.mxu1 %v5352_v20  ;;  %1378 = vmatpush.bf16.xpose.msra.mxu3 %v5371_v49  ;;  %v5546_v20 = vld [vmem:[%s6262_s4] ss:$0 sm:$0xff] }
 0x26f   : > { %1776 = vmatpush.bf16.xpose.msra.mxu0 %v1761_v40  ;;  %v995_v18 = vadd.f32 %v5546_v20, %v994_v9  ;;  %4690 = vmatmul.msk.bf16.vlgmr.msrb.gmra.mxu2 %vm1036_vm1, %v5561_v13  ;;  %v1182_v40 = vld [vmem:[#allocation2 + $0x1ee] sm:$0xff] }
 0x270   : > { %4679 = vmatmul.msk.bf16.vlgmr.msrb.gmra.mxu0 %vm1036_vm1, %v5402_v60  ;;  %v4692_v60 = vld [vmem:[%s6263_s5 + $0x1c] sm:$0xf]  ;;  %v1199_v53 = vpack.c.bf16 %v1182_v40, %v1181_v42  ;;  %v2577_v9 = vld [vmem:[#allocation2 + $0xef] sm:$0xff] }
 0x271   : > { %4693 = vmatmul.msk.bf16.vlgmr.msrb.gmra.mxu1 %vm1036_vm1, %v4692_v60  ;;  %v5622_v60 = vld [vmem:[%s6263_s5] sm:$0xf]  ;;  %v2839_v40 = vld [vmem:[#allocation2 + $0x131] sm:$0xff] }
 0x275   : > { %2282 = vmatpush.bf16.xpose.msra.mxu2 %v5276_v26  ;;  %v1032_v26 = vmax.f32 %v995_v18, 0.0  ;;  %v996_v48 = vpop.f32.mrf.mxu2  ;;  %v4698_v18 = vld [vmem:[%s6263_s5 + $0x24] sm:$0xf] }
 0x276   : > { %2411 = vmatpush.bf16.xpose.msra.mxu1 %v5366_v47  ;;  %1379 = vmatpush.bf16.xpose.msra.mxu3 %v5381_v12  ;;  %v1688_v47 = vld [vmem:[#allocation2 + $0x1aa] sm:$0xff] }
 0x277   : > { %1777 = vmatpush.bf16.xpose.msra.mxu0 %v1758_v6  ;;  %1147 = vst.msk [vmem:[#allocation2 + $0x208] sm:$0xff] %vm1036_vm1, %v1032_v26  ;;  %v1709_v45 = vpack.c.bf16 %v1689_v7, %v1688_v47  ;;  %v2576_v26 = vld [vmem:[#allocation2 + $0xe7] sm:$0xff] }
 0x278   : > { %v2605_v47 = vpack.c.bf16 %v2577_v9, %v2576_v26  ;;  %v5673_v26 = vld [vmem:[%s6263_s5 + $0x28] sm:$0xf] }
 0x27a   : > { %v2635_v7 = vsel %vm1036_vm1, %v2605_v47, 0 }
 0x27d   : > { %2283 = vmatpush.bf16.xpose.msra.mxu2 %v5290_v41  ;;  %v997_v41 = vadd.f32 %v5546_v20, %v996_v48 }
 0x27e   : > { %2412 = vmatpush.bf16.xpose.msra.mxu1 %v5376_v3  ;;  %v1755_v3 = vsel %vm1036_vm1, %v1709_v45, 0  ;;  %1380 = vmatpush.bf16.xpose.msra.mxu3 %v5392_v28  ;;  %v1179_v45 = vld [vmem:[#allocation2 + $0x1c6] sm:$0xff] }
 0x27f   : > { %v1033_v4 = vmax.f32 %v997_v41, 0.0  ;;  %1778 = vmatpush.bf16.xpose.msra.mxu0 %v1755_v3  ;;  %v2574_v41 = vld [vmem:[#allocation2 + $0xc7] sm:$0xff] }
 0x281   : > { %1148 = vst.msk [vmem:[#allocation2 + $0x210] sm:$0xff] %vm1036_vm1, %v1033_v4  ;;  %v1178_v4 = vld [vmem:[#allocation2 + $0x1ae] sm:$0xff] }
 0x282   : > { %v1197_v58 = vpack.c.bf16 %v1178_v4, %v1177_v5  ;;  %v2706_v4 = vld [vmem:[#allocation2 + $0xf0] sm:$0xff] }
 0x283   : > { %v2835_v5 = vld [vmem:[#allocation2 + $0xf1] sm:$0xff] }
 0x285   : > { %2284 = vmatpush.bf16.xpose.msra.mxu2 %v5304_v55  ;;  %v1682_v55 = vld [vmem:[#allocation2 + $0x14a] sm:$0xff] }
 0x286   : > { %2413 = vmatpush.bf16.xpose.msra.mxu1 %v5387_v25  ;;  %1381 = vmatpush.bf16.xpose.msra.mxu3 %v5411_v56  ;;  %v1683_v25 = vld [vmem:[#allocation2 + $0x152] sm:$0xff] }
 0x287   : > { %1779 = vmatpush.bf16.xpose.msra.mxu0 %v1752_v59  ;;  %v1706_v39 = vpack.c.bf16 %v1683_v25, %v1682_v55  ;;  %v2573_v59 = vld [vmem:[#allocation2 + $0xaf] sm:$0xff]  ;;  %v2570_v25 = vld [vmem:[#allocation2 + $0x87] sm:$0xff] }
 0x288   : > { %v1952_v34 = vld [vmem:[#allocation2 + $0x20f] sm:$0xff]  ;;  %v2603_v23 = vpack.c.bf16 %v2573_v59, %v2572_v62 }
 0x289   : > { %v2571_v55 = vld [vmem:[#allocation2 + $0x8f] sm:$0xff] }
 0x28a   : > { %v2210_v47 = vld [vmem:[#allocation2 + $0x211] sm:$0xff]  ;;  %v2705_v59 = vld [vmem:[#allocation2 + $0xe8] sm:$0xff] }
 0x28d   : > { %2285 = vmatpush.bf16.xpose.msra.mxu2 %v5318_v10  ;;  %v1746_v10 = vsel %vm1036_vm1, %v1706_v39, 0  ;;  %v2602_v39 = vpack.c.bf16 %v2571_v55, %v2570_v25  ;;  %v1561_v55 = vld [vmem:[#allocation2 + $0x1c9] sm:$0xff]  ;;  %v1562_v25 = vld [vmem:[#allocation2 + $0x1d1] sm:$0xff] }
 0x28e   : > { %2414 = vmatpush.bf16.xpose.msra.mxu1 %v5406_v50  ;;  %1382 = vmatpush.bf16.xpose.msra.mxu3 %v5428_v21  ;;  %v1680_v50 = vld [vmem:[#allocation2 + $0x12a] sm:$0xff] }
 0x28f   : > { %1780 = vmatpush.bf16.xpose.msra.mxu0 %v1749_v1 }
 0x295   : > { %2286 = vmatpush.bf16.xpose.msra.mxu2 %v5332_v35  ;;  %v1705_v35 = vpack.c.bf16 %v1681_v14, %v1680_v50  ;;  %v2568_v50 = vld [vmem:[#allocation2 + $0x67] sm:$0xff] }
 0x296   : > { %2415 = vmatpush.bf16.xpose.msra.mxu1 %v5422_v16  ;;  %1383 = vmatpush.bf16.xpose.msra.mxu3 %v5438_v51  ;;  %v1151_v16 = vld [vmem:[#allocation2 + $0x6] sm:$0xff] }
 0x297   : > { %1781 = vmatpush.bf16.xpose.msra.mxu0 %v1746_v10  ;;  %v5598_v33 = vsel %vm1036_vm1, %v1705_v35, 0  ;;  %v2569_v10 = vld [vmem:[#allocation2 + $0x6f] sm:$0xff] }
 0x298   : > { %v2601_v14 = vpack.c.bf16 %v2569_v10, %v2568_v50  ;;  %v2703_v50 = vld [vmem:[#allocation2 + $0xc8] sm:$0xff] }
 0x29d   : > { %2287 = vmatpush.bf16.xpose.msra.mxu2 %v5342_v46  ;;  %v1951_v46 = vld [vmem:[#allocation2 + $0x207] sm:$0xff] }
 0x29e   : > { %2416 = vmatpush.bf16.xpose.msra.mxu1 %v5433_v36  ;;  %1384 = vmatpush.bf16.xpose.msra.mxu3 %v5444_v11  ;;  %v1184_v36 = vpack.c.bf16 %v1152_v27, %v1151_v16  ;;  %v1970_v52 = vpack.c.bf16 %v1952_v34, %v1951_v46  ;;  %v1172_v16 = vld [vmem:[#allocation2 + $0x14e] sm:$0xff]  ;;  %v5656_v27 = vpop.f32.mrf.mxu3 }
 0x29f   : > { %1782 = vmatpush.bf16.xpose.msra.mxu0 %v5598_v33  ;;  %v2567_v34 = vld [vmem:[#allocation2 + $0x4f] sm:$0xff] }
 0x2a0   : > { %v1331_v11 = vsel %vm1036_vm1, %v1184_v36, 0  ;;  %v2020_v6 = vsel %vm1036_vm1, %v1970_v52, 0  ;;  %v2838_v36 = vld [vmem:[#allocation2 + $0x129] sm:$0xff] }
 0x2a1   : > { %v2566_v52 = vld [vmem:[#allocation2 + $0x47] sm:$0xff]  ;;  %v2865_v9 = vpack.c.bf16 %v2839_v40, %v2838_v36  ;;  %v1560_v36 = vld [vmem:[#allocation2 + $0x1b1] sm:$0xff] }
 0x2a2   : > { %v2600_v42 = vpack.c.bf16 %v2567_v34, %v2566_v52  ;;  %v1559_v34 = vld [vmem:[#allocation2 + $0x1a9] sm:$0xff] }
 0x2a3   : > { %v1580_v52 = vpack.c.bf16 %v1560_v36, %v1559_v34  ;;  %v2824_v34 = vld [vmem:[#allocation2 + $0x49] sm:$0xff]  ;;  %v2825_v36 = vld [vmem:[#allocation2 + $0x51] sm:$0xff] }
 0x2a4   : > { %4696 = vmatmul.msk.bf16.vlgmr.msra.gmra.mxu2 %vm1036_vm1, %v5595_v44 }
 0x2a5   : > { %2538 = vmatpush.bf16.xpose.msrb.mxu2 %v5587_v17  ;;  %4699 = vmatmul.msk.bf16.vlgmr.msra.gmra.mxu1 %vm1036_vm1, %v4698_v18  ;;  %v5667_v18 = vsel %vm1036_vm1, %v2865_v9, 0  ;;  %v2701_v9 = vld [vmem:[#allocation2 + $0xa8] sm:$0xff] }
 0x2a6   : > { %2667 = vmatpush.bf16.xpose.msrb.mxu1 %v5528_v32  ;;  %1385 = vmatpush.bf16.xpose.msra.mxu3 %v1331_v11  ;;  %v2708_v11 = vld [vmem:[#allocation2 + $0x110] sm:$0xff] }
 0x2a7   : > { %1783 = vmatpush.bf16.xpose.msra.mxu0 %v5524_v19  ;;  %v2575_v19 = vld [vmem:[#allocation2 + $0xcf] sm:$0xff] }
 0x2a8   : > { %v2604_v3 = vpack.c.bf16 %v2575_v19, %v2574_v41  ;;  %v1167_v19 = vld [vmem:[#allocation2 + $0x106] sm:$0xff] }
 0x2aa   : > { %v2632_v57 = vsel %vm1036_vm1, %v2604_v3, 0 }
 0x2ad   : > { %2539 = vmatpush.bf16.xpose.msrb.mxu2 %v5357_v22  ;;  %v5614_v22 = vsel %vm1036_vm1, %v1199_v53, 0  ;;  %4675 = vmatmul.msk.bf16.vlgmr.msra.gmra.mxu3 %vm1036_vm1, %v5622_v60 }
 0x2ae   : > { %2668 = vmatpush.bf16.xpose.msrb.mxu1 %v5448_v15  ;;  %1391 = vmatpush.bf16.xpose.msrb.mxu3 %v5614_v22  ;;  %v1180_v15 = vld [vmem:[#allocation2 + $0x1ce] sm:$0xff] }
 0x2af   : > { %2035 = vmatpush.bf16.xpose.msrb.mxu0 %v2020_v6  ;;  %v1198_v48 = vpack.c.bf16 %v1180_v15, %v1179_v45  ;;  %v2707_v6 = vld [vmem:[#allocation2 + $0x108] sm:$0xff]  ;;  %v1564_v45 = vld [vmem:[#allocation2 + $0x1f1] sm:$0xff] }
 0x2b0   : > { %4685 = vmatmul.msk.bf16.vlgmr.msra.gmra.mxu0 %vm1036_vm1, %v5476_v0  ;;  %v5636_v0 = vsel %vm1036_vm1, %v1197_v58, 0  ;;  %v4704_v15 = vld [vmem:[%s6263_s5 + $0x2c] sm:$0xf]  ;;  %v999_v58 = vpop.f32.mrf.mxu2 }
 0x2b1   : > { %v1000_v62 = vadd.f32 %v5546_v20, %v999_v58 }
 0x2b5   : > { %2540 = vmatpush.bf16.xpose.msrb.mxu2 %v5371_v49  ;;  %v5629_v49 = vsel %vm1036_vm1, %v1198_v48, 0 }
 0x2b6   : > { %2669 = vmatpush.bf16.xpose.msrb.mxu1 %v2635_v7  ;;  %1392 = vmatpush.bf16.xpose.msrb.mxu3 %v5629_v49  ;;  %v1563_v7 = vld [vmem:[#allocation2 + $0x1e9] sm:$0xff] }
 0x2b7   : > { %2036 = vmatpush.bf16.xpose.msrb.mxu0 %v5460_v37  ;;  %v1175_v37 = vld [vmem:[#allocation2 + $0x186] sm:$0xff] }
 0x2b8   : > { %v1196_v1 = vpack.c.bf16 %v1176_v63, %v1175_v37  ;;  %v2734_v63 = vpack.c.bf16 %v2706_v4, %v2705_v59  ;;  %v1001_v10 = vpop.f32.mrf.mxu2  ;;  %v1555_v59 = vld [vmem:[#allocation2 + $0x169] sm:$0xff] }
 0x2ba   : > { %v5643_v30 = vsel %vm1036_vm1, %v1196_v1, 0  ;;  %v1034_v1 = vmax.f32 %v1000_v62, 0.0  ;;  %v1556_v62 = vld [vmem:[#allocation2 + $0x171] sm:$0xff] }
 0x2bc   : > { %1149 = vst.msk [vmem:[#allocation2 + $0x228] sm:$0xff] %vm1036_vm1, %v1034_v1  ;;  %v1578_v1 = vpack.c.bf16 %v1556_v62, %v1555_v59  ;;  %v2963_v62 = vld [vmem:[#allocation2 + $0xea] sm:$0xff] }
 0x2bd   : > { %2541 = vmatpush.bf16.xpose.msrb.mxu2 %v5381_v12  ;;  %v2629_v12 = vsel %vm1036_vm1, %v2603_v23, 0 }
 0x2be   : > { %2670 = vmatpush.bf16.xpose.msrb.mxu1 %v2632_v57  ;;  %1393 = vmatpush.bf16.xpose.msrb.mxu3 %v5636_v0  ;;  %v2834_v57 = vld [vmem:[#allocation2 + $0xe9] sm:$0xff] }
 0x2bf   : > { %2037 = vmatpush.bf16.xpose.msrb.mxu0 %v5467_v54  ;;  %v1173_v54 = vld [vmem:[#allocation2 + $0x166] sm:$0xff]  ;;  %v2863_v37 = vpack.c.bf16 %v2835_v5, %v2834_v57 }
 0x2c0   : > { %v1195_v8 = vpack.c.bf16 %v1174_v2, %v1173_v54  ;;  %v1581_v54 = vpack.c.bf16 %v1562_v25, %v1561_v55  ;;  %v2827_v55 = vld [vmem:[#allocation2 + $0x71] sm:$0xff]  ;;  %v2697_v25 = vld [vmem:[#allocation2 + $0x68] sm:$0xff] }
 0x2c1   : > { %v2893_v2 = vsel %vm1036_vm1, %v2863_v37, 0  ;;  %v2698_v37 = vld [vmem:[#allocation2 + $0x70] sm:$0xff] }
 0x2c2   : > { %v5650_v35 = vsel %vm1036_vm1, %v1195_v8, 0  ;;  %v2832_v8 = vld [vmem:[#allocation2 + $0xc9] sm:$0xff] }
 0x2c5   : > { %2542 = vmatpush.bf16.xpose.msrb.mxu2 %v5392_v28  ;;  %v2626_v28 = vsel %vm1036_vm1, %v2602_v39, 0  ;;  %v5698_v39 = vsel %vm1036_vm1, %v2734_v63, 0 }
 0x2c6   : > { %2671 = vmatpush.bf16.xpose.msrb.mxu1 %v2629_v12  ;;  %1394 = vmatpush.bf16.xpose.msrb.mxu3 %v5643_v30 }
 0x2c7   : > { %2038 = vmatpush.bf16.xpose.msrb.mxu0 %v5485_v38  ;;  %v1171_v38 = vld [vmem:[#allocation2 + $0x146] sm:$0xff] }
 0x2c8   : > { %v1194_v46 = vpack.c.bf16 %v1172_v16, %v1171_v38 }
 0x2ca   : > { %v5659_v53 = vsel %vm1036_vm1, %v1194_v46, 0  ;;  %v1629_v46 = vsel %vm1036_vm1, %v1581_v54, 0 }
 0x2cd   : > { %2543 = vmatpush.bf16.xpose.msrb.mxu2 %v5411_v56  ;;  %v2623_v56 = vsel %vm1036_vm1, %v2601_v14, 0  ;;  %v1002_v14 = vadd.f32 %v5546_v20, %v1001_v10 }
 0x2ce   : > { %2672 = vmatpush.bf16.xpose.msrb.mxu1 %v2626_v28  ;;  %1395 = vmatpush.bf16.xpose.msrb.mxu3 %v5650_v35  ;;  %v2704_v28 = vld [vmem:[#allocation2 + $0xd0] sm:$0xff] }
 0x2cf   : > { %2039 = vmatpush.bf16.xpose.msrb.mxu0 %v5499_v29  ;;  %v1312_v29 = vpop.f32.mrf.mxu3  ;;  %v2733_v16 = vpack.c.bf16 %v2704_v28, %v2703_v50  ;;  %v1035_v38 = vmax.f32 %v1002_v14, 0.0  ;;  %v2730_v28 = vpack.c.bf16 %v2698_v37, %v2697_v25  ;;  %v1553_v50 = vld [vmem:[#allocation2 + $0x149] sm:$0xff]  ;;  %v1554_v14 = vld [vmem:[#allocation2 + $0x151] sm:$0xff] }
 0x2d0   : > { %v5716_v29 = vpop.f32.mrf.mxu1 }
 0x2d1   : > { %1150 = vst.msk [vmem:[#allocation2 + $0x230] sm:$0xff] %vm1036_vm1, %v1035_v38  ;;  %v5710_v40 = vsel %vm1036_vm1, %v2733_v16, 0  ;;  %v5738_v16 = vsel %vm1036_vm1, %v2730_v28, 0  ;;  %v2696_v38 = vld [vmem:[#allocation2 + $0x50] sm:$0xff] }
 0x2d5   : > { %2544 = vmatpush.bf16.xpose.msrb.mxu2 %v5428_v21  ;;  %v2620_v21 = vsel %vm1036_vm1, %v2600_v42, 0  ;;  %v2830_v42 = vld [vmem:[#allocation2 + $0xa9] sm:$0xff] }
 0x2d6   : > { %2673 = vmatpush.bf16.xpose.msrb.mxu1 %v2623_v56  ;;  %1396 = vmatpush.bf16.xpose.msrb.mxu3 %v5659_v53 }
 0x2d7   : > { %2040 = vmatpush.bf16.xpose.msrb.mxu0 %v5506_v43  ;;  %v2735_v43 = vpack.c.bf16 %v2708_v11, %v2707_v6 }
 0x2d9   : > { %v5683_v48 = vsel %vm1036_vm1, %v2735_v43, 0  ;;  %v1626_v43 = vsel %vm1036_vm1, %v1580_v52, 0 }
 0x2dd   : > { %2545 = vmatpush.bf16.xpose.msrb.mxu2 %v5438_v51  ;;  %v2209_v51 = vld [vmem:[#allocation2 + $0x209] sm:$0xff] }
 0x2de   : > { %2674 = vmatpush.bf16.xpose.msrb.mxu1 %v2620_v21  ;;  %1397 = vmatpush.bf16.xpose.msrb.mxu3 %v5587_v17  ;;  %v2228_v41 = vpack.c.bf16 %v2210_v47, %v2209_v51  ;;  %v5714_v21 = vpop.f32.mrf.mxu2  ;;  %v1557_v51 = vld [vmem:[#allocation2 + $0x189] sm:$0xff]  ;;  %v1558_v47 = vld [vmem:[#allocation2 + $0x191] sm:$0xff] }
 0x2df   : > { %2041 = vmatpush.bf16.xpose.msrb.mxu0 %v5513_v24  ;;  %v1582_v24 = vpack.c.bf16 %v1564_v45, %v1563_v7  ;;  %v2700_v7 = vld [vmem:[#allocation2 + $0x90] sm:$0xff]  ;;  %v1579_v45 = vpack.c.bf16 %v1558_v47, %v1557_v51 }
 0x2e0   : > { %v2278_v23 = vsel %vm1036_vm1, %v2228_v41, 0  ;;  %v2829_v41 = vld [vmem:[#allocation2 + $0x91] sm:$0xff] }
 0x2e1   : > { %v1623_v58 = vsel %vm1036_vm1, %v1579_v45, 0  ;;  %v2965_v51 = vld [vmem:[#allocation2 + $0x10a] sm:$0xff]  ;;  %v2966_v47 = vld [vmem:[#allocation2 + $0x112] sm:$0xff] }
 0x2e2   : > { %v2993_v45 = vpack.c.bf16 %v2966_v47, %v2965_v51  ;;  %v2957_v47 = vld [vmem:[#allocation2 + $0x8a] sm:$0xff] }
 0x2e4   : > { %4702 = vmatmul.msk.bf16.vlgmr.msrb.gmra.mxu2 %vm1036_vm1, %v5673_v26 }
 0x2e5   : > { %2796 = vmatpush.bf16.xpose.msra.mxu2 %v5531_v61  ;;  %v1168_v61 = vld [vmem:[#allocation2 + $0x10e] sm:$0xff]  ;;  %4705 = vmatmul.msk.bf16.vlgmr.msrb.gmra.mxu1 %vm1036_vm1, %v4704_v15 }
 0x2e6   : > { %2925 = vmatpush.bf16.xpose.msra.mxu1 %v5667_v18  ;;  %v1192_v3 = vpack.c.bf16 %v1168_v61, %v1167_v19  ;;  %v2828_v19 = vld [vmem:[#allocation2 + $0x89] sm:$0xff]  ;;  %v1516_v4 = vpop.f32.mrf.mxu2 }
 0x2e7   : > { %2042 = vmatpush.bf16.xpose.msrb.mxu0 %v5528_v32  ;;  %v2833_v32 = vld [vmem:[#allocation2 + $0xd1] sm:$0xff]  ;;  %v2860_v5 = vpack.c.bf16 %v2829_v41, %v2828_v19  ;;  %v2467_v19 = vld [vmem:[#allocation2 + $0x226] sm:$0xff] }
 0x2e8   : > { %v5691_v12 = vsel %vm1036_vm1, %v1192_v3, 0  ;;  %v2862_v56 = vpack.c.bf16 %v2833_v32, %v2832_v8  ;;  %v2699_v3 = vld [vmem:[#allocation2 + $0x88] sm:$0xff]  ;;  %v1620_v8 = vsel %vm1036_vm1, %v1578_v1, 0  ;;  %v1550_v4 = vld [vmem:[#allocation2 + $0x111] sm:$0xff] }
 0x2e9   : > { %1398 = vmatpush.bf16.xpose.msrb.mxu3 %v5691_v12  ;;  %v2731_v57 = vpack.c.bf16 %v2700_v7, %v2699_v3  ;;  %v2884_v63 = vsel %vm1036_vm1, %v2860_v5, 0  ;;  %v5755_v7 = vld [vmem:[%s6263_s5 + $0x30] sm:$0xf]  ;;  %v4710_v3 = vld [vmem:[%s6263_s5 + $0x34] sm:$0xf]  ;;  %v5765_v5 = vsel %vm1036_vm1, %v2993_v45, 0 }
 0x2ea   : > { %v2890_v20 = vsel %vm1036_vm1, %v2862_v56, 0  ;;  %v2468_v41 = vld [vmem:[#allocation2 + $0x22e] sm:$0xff] }
 0x2eb   : > { %v2958_v45 = vld [vmem:[#allocation2 + $0x92] sm:$0xff] }
 0x2ed   : > { %2797 = vmatpush.bf16.xpose.msra.mxu2 %v5683_v48 }
 0x2ee   : > { %2926 = vmatpush.bf16.xpose.msra.mxu1 %v5519_v31  ;;  %v1632_v31 = vsel %vm1036_vm1, %v1582_v24, 0  ;;  %4691 = vmatmul.msk.bf16.vlgmr.msrb.gmra.mxu0 %vm1036_vm1, %v5561_v13  ;;  %v2831_v13 = vld [vmem:[#allocation2 + $0xb1] sm:$0xff]  ;;  %v1645_v24 = vpop.f32.mrf.mxu1 }
 0x2ef   : > { %2293 = vmatpush.bf16.xpose.msra.mxu0 %v2278_v23  ;;  %v2861_v6 = vpack.c.bf16 %v2831_v13, %v2830_v42  ;;  %v5726_v23 = vsel %vm1036_vm1, %v2731_v57, 0  ;;  %v2858_v42 = vpack.c.bf16 %v2825_v36, %v2824_v34  ;;  %v1822_v24 = vld [vmem:[#allocation2 + $0x206] sm:$0xff]  ;;  %v1823_v57 = vld [vmem:[#allocation2 + $0x20e] sm:$0xff] }
 0x2f0   : > { %4676 = vmatmul.msk.bf16.vlgmr.msrb.gmra.mxu3 %vm1036_vm1, %v5622_v60  ;;  %v2702_v60 = vld [vmem:[#allocation2 + $0xb0] sm:$0xff]  ;;  %v5733_v32 = vpop.f32.mrf.mxu3  ;;  %v1841_v37 = vpack.c.bf16 %v1823_v57, %v1822_v24 }
 0x2f1   : > { %1647 = vmatpush.bf16.xpose.msra.mxu3 %v1632_v31  ;;  %v2732_v11 = vpack.c.bf16 %v2702_v60, %v2701_v9  ;;  %v2887_v61 = vsel %vm1036_vm1, %v2861_v6, 0 }
 0x2f2   : > { %v1891_v28 = vsel %vm1036_vm1, %v1841_v37, 0 }
 0x2f3   : > { %v5720_v15 = vsel %vm1036_vm1, %v2732_v11, 0 }
 0x2f5   : > { %2798 = vmatpush.bf16.xpose.msra.mxu2 %v5698_v39 }
 0x2f6   : > { %2927 = vmatpush.bf16.xpose.msra.mxu1 %v2893_v2  ;;  %v5730_v2 = vpop.f32.mrf.mxu2  ;;  %v5735_v10 = vpop.f32.mrf.mxu1 }
 0x2f7   : > { %2294 = vmatpush.bf16.xpose.msra.mxu0 %v1632_v31  ;;  %v2826_v31 = vld [vmem:[#allocation2 + $0x69] sm:$0xff] }
 0x2f8   : > { %v2859_v54 = vpack.c.bf16 %v2827_v55, %v2826_v31  ;;  %v1325_v9 = vpop.f32.mrf.mxu3 }
 0x2f9   : > { %1648 = vmatpush.bf16.xpose.msra.mxu3 %v1629_v46 }
 0x2fa   : > { %v2881_v56 = vsel %vm1036_vm1, %v2859_v54, 0 }
 0x2fd   : > { %2799 = vmatpush.bf16.xpose.msra.mxu2 %v5710_v40 }
 0x2fe   : > { %2928 = vmatpush.bf16.xpose.msra.mxu1 %v2890_v20  ;;  %v2695_v20 = vld [vmem:[#allocation2 + $0x48] sm:$0xff]  ;;  %v1774_v60 = vpop.f32.mrf.mxu2  ;;  %v1904_v11 = vpop.f32.mrf.mxu1 }
 0x2ff   : > { %2295 = vmatpush.bf16.xpose.msra.mxu0 %v1629_v46  ;;  %v1577_v46 = vpack.c.bf16 %v1554_v14, %v1553_v50  ;;  %v2729_v52 = vpack.c.bf16 %v2696_v38, %v2695_v20  ;;  %v3092_v14 = vld [vmem:[#allocation2 + $0xee] sm:$0xff]  ;;  %v3091_v38 = vld [vmem:[#allocation2 + $0xe6] sm:$0xff] }
 0x300   : > { %v2959_v20 = vld [vmem:[#allocation2 + $0xaa] sm:$0xff]  ;;  %v2960_v60 = vld [vmem:[#allocation2 + $0xb2] sm:$0xff] }
 0x301   : > { %1649 = vmatpush.bf16.xpose.msra.mxu3 %v1626_v43  ;;  %v5743_v13 = vsel %vm1036_vm1, %v1577_v46, 0  ;;  %v2749_v6 = vsel %vm1036_vm1, %v2729_v52, 0  ;;  %v3121_v46 = vpack.c.bf16 %v3092_v14, %v3091_v38  ;;  %v2990_v9 = vpack.c.bf16 %v2960_v60, %v2959_v20  ;;  %v3089_v11 = vld [vmem:[#allocation2 + $0xc6] sm:$0xff]  ;;  %v2954_v38 = vld [vmem:[#allocation2 + $0x52] sm:$0xff] }
 0x302   : > { %v3083_v20 = vld [vmem:[#allocation2 + $0x66] sm:$0xff] }
 0x303   : > { %v3149_v36 = vsel %vm1036_vm1, %v3121_v46, 0  ;;  %v3356_v46 = vld [vmem:[#allocation2 + $0x150] sm:$0xff] }
 0x305   : > { %2800 = vmatpush.bf16.xpose.msra.mxu2 %v5720_v15 }
 0x306   : > { %2929 = vmatpush.bf16.xpose.msra.mxu1 %v2887_v61  ;;  %v5750_v61 = vpop.f32.mrf.mxu2  ;;  %v5781_v50 = vpop.f32.mrf.mxu1 }
 0x307   : > { %2296 = vmatpush.bf16.xpose.msra.mxu0 %v1626_v43  ;;  %v2878_v43 = vsel %vm1036_vm1, %v2858_v42, 0  ;;  %v3090_v42 = vld [vmem:[#allocation2 + $0xce] sm:$0xff] }
 0x309   : > { %1650 = vmatpush.bf16.xpose.msra.mxu3 %v1623_v58 }
 0x30d   : > { %2801 = vmatpush.bf16.xpose.msra.mxu2 %v5726_v23 }
 0x30e   : > { %2930 = vmatpush.bf16.xpose.msra.mxu1 %v2884_v63  ;;  %v2964_v63 = vld [vmem:[#allocation2 + $0xf2] sm:$0xff]  ;;  %v2033_v1 = vpop.f32.mrf.mxu2  ;;  %v2162_v52 = vpop.f32.mrf.mxu1 }
 0x30f   : > { %2297 = vmatpush.bf16.xpose.msra.mxu0 %v1623_v58  ;;  %v2486_v58 = vpack.c.bf16 %v2468_v41, %v2467_v19  ;;  %v2992_v55 = vpack.c.bf16 %v2964_v63, %v2963_v62  ;;  %v3088_v41 = vld [vmem:[#allocation2 + $0xae] sm:$0xff] }
 0x310   : > { %v2955_v62 = vld [vmem:[#allocation2 + $0x6a] sm:$0xff]  ;;  %v2956_v63 = vld [vmem:[#allocation2 + $0x72] sm:$0xff] }
 0x311   : > { %1651 = vmatpush.bf16.xpose.msra.mxu3 %v1620_v8  ;;  %v2536_v31 = vsel %vm1036_vm1, %v2486_v58, 0  ;;  %v5778_v54 = vsel %vm1036_vm1, %v2992_v55, 0  ;;  %v3086_v1 = vld [vmem:[#allocation2 + $0x8e] sm:$0xff]  ;;  %v3085_v55 = vld [vmem:[#allocation2 + $0x86] sm:$0xff] }
 0x315   : > { %2802 = vmatpush.bf16.xpose.msra.mxu2 %v5738_v16 }
 0x316   : > { %2931 = vmatpush.bf16.xpose.msra.mxu1 %v2881_v56 }
 0x317   : > { %2298 = vmatpush.bf16.xpose.msra.mxu0 %v1620_v8  ;;  %v2962_v8 = vld [vmem:[#allocation2 + $0xd2] sm:$0xff] }
 0x319   : > { %1652 = vmatpush.bf16.xpose.msra.mxu3 %v5743_v13 }
 0x31d   : > { %2803 = vmatpush.bf16.xpose.msra.mxu2 %v2749_v6  ;;  %v3120_v6 = vpack.c.bf16 %v3090_v42, %v3089_v11 }
 0x31e   : > { %2932 = vmatpush.bf16.xpose.msra.mxu1 %v2878_v43 }
 0x31f   : > { %2299 = vmatpush.bf16.xpose.msra.mxu0 %v5743_v13  ;;  %v3146_v51 = vsel %vm1036_vm1, %v3120_v6, 0 }
 0x321   : > { %1653 = vmatpush.bf16.xpose.msra.mxu3 %v5667_v18 }
 0x322   : > { %v2418_v19 = vpop.f32.mrf.mxu1 }
 0x324   : > { %4708 = vmatmul.msk.bf16.vlgmr.msra.gmra.mxu2 %vm1036_vm1, %v5755_v7 }
 0x325   : > { %3054 = vmatpush.bf16.xpose.msrb.mxu2 %v5598_v33  ;;  %v1549_v33 = vld [vmem:[#allocation2 + $0x109] sm:$0xff]  ;;  %4711 = vmatmul.msk.bf16.vlgmr.msra.gmra.mxu1 %vm1036_vm1, %v4710_v3  ;;  %v2989_v3 = vpack.c.bf16 %v2958_v45, %v2957_v47 }
 0x326   : > { %3184 = vmatpush.bf16.xpose.msrb.mxu1 %v5659_v53  ;;  %v1575_v59 = vpack.c.bf16 %v1550_v4, %v1549_v33  ;;  %v3087_v33 = vld [vmem:[#allocation2 + $0xa6] sm:$0xff]  ;;  %v3354_v47 = vld [vmem:[#allocation2 + $0x130] sm:$0xff] }
 0x327   : > { %2300 = vmatpush.bf16.xpose.msra.mxu0 %v5667_v18  ;;  %v4817_v18 = vld [vmem:[%s6263_s5 + $0xc] sm:$0xf]  ;;  %v3119_v4 = vpack.c.bf16 %v3088_v41, %v3087_v33 }
 0x328   : > { %v5772_v25 = vsel %vm1036_vm1, %v1575_v59, 0  ;;  %v3224_v45 = vld [vmem:[#allocation2 + $0x127] sm:$0xff] }
 0x329   : > { %1654 = vmatpush.bf16.xpose.msra.mxu3 %v5772_v25  ;;  %v3143_v59 = vsel %vm1036_vm1, %v3119_v4, 0  ;;  %v3353_v41 = vld [vmem:[#allocation2 + $0x128] sm:$0xff]  ;;  %v2726_v4 = vld [vmem:[#allocation2 + $0x230] sm:$0xff] }
 0x32a   : > { %v2420_v37 = vpop.f32.mrf.mxu1  ;;  %v2725_v33 = vld [vmem:[#allocation2 + $0x228] sm:$0xff] }
 0x32b   : > { %v1808_v37 = vld [vmem:[#allocation2 + $0x126] sm:$0xff] }
 0x32d   : > { %3055 = vmatpush.bf16.xpose.msrb.mxu2 %v5765_v5 }
 0x32e   : > { %3185 = vmatpush.bf16.xpose.msrb.mxu1 %v5587_v17  ;;  %v2961_v17 = vld [vmem:[#allocation2 + $0xca] sm:$0xff]  ;;  %4697 = vmatmul.msk.bf16.vlgmr.msra.gmra.mxu0 %vm1036_vm1, %v5595_v44  ;;  %v5799_v44 = vsel %vm1036_vm1, %v2990_v9, 0 }
 0x32f   : > { %2551 = vmatpush.bf16.xpose.msrb.mxu0 %v2536_v31  ;;  %v2991_v56 = vpack.c.bf16 %v2962_v8, %v2961_v17  ;;  %v2988_v31 = vpack.c.bf16 %v2956_v63, %v2955_v62  ;;  %v3355_v9 = vld [vmem:[#allocation2 + $0x148] sm:$0xff]  ;;  %v5850_v62 = vpop.f32.mrf.mxu0 }
 0x330   : > { %4682 = vmatmul.msk.bf16.vlgmr.msra.gmra.mxu3 %vm1036_vm1, %v4817_v18  ;;  %v1387_v24 = vpop.f32.mrf.mxu3  ;;  %v3227_v18 = vld [vmem:[#allocation2 + $0x14f] sm:$0xff] }
 0x331   : > { %1906 = vmatpush.bf16.xpose.msrb.mxu3 %v1891_v28  ;;  %v5792_v34 = vsel %vm1036_vm1, %v2991_v56, 0  ;;  %v1388_v57 = vadd.f32 %v1387_v24, %v5656_v27  ;;  %v2953_v56 = vld [vmem:[#allocation2 + $0x4a] sm:$0xff]  ;;  %v4716_v24 = vld [vmem:[%s6263_s5 + $0x3c] sm:$0xf] }
 0x333   : > { %v1531_v58 = vadd.f32 %v5714_v21, %v1388_v57  ;;  %v5818_v21 = vsel %vm1036_vm1, %v2988_v31, 0  ;;  %v1809_v57 = vld [vmem:[#allocation2 + $0x12e] sm:$0xff] }
 0x334   : > { %v3223_v31 = vld [vmem:[#allocation2 + $0x10f] sm:$0xff] }
 0x335   : > { %3056 = vmatpush.bf16.xpose.msrb.mxu2 %v5778_v54  ;;  %v1660_v27 = vadd.f32 %v5716_v29, %v1531_v58  ;;  %v2080_v58 = vld [vmem:[#allocation2 + $0x208] sm:$0xff] }
 0x336   : > { %3186 = vmatpush.bf16.xpose.msrb.mxu1 %v5691_v12  ;;  %v2289_v12 = vpop.f32.mrf.mxu2 }
 0x337   : > { %2552 = vmatpush.bf16.xpose.msrb.mxu0 %v1891_v28  ;;  %v3118_v28 = vpack.c.bf16 %v3086_v1, %v3085_v55  ;;  %v2744_v1 = vpack.c.bf16 %v2726_v4, %v2725_v33  ;;  %v3217_v33 = vld [vmem:[#allocation2 + $0xaf] sm:$0xff]  ;;  %v3216_v4 = vld [vmem:[#allocation2 + $0xa7] sm:$0xff] }
 0x338   : > { %v1389_v17 = vpop.f32.mrf.mxu3 }
 0x339   : > { %1907 = vmatpush.bf16.xpose.msrb.mxu3 %v5614_v22  ;;  %v3140_v29 = vsel %vm1036_vm1, %v3118_v28, 0  ;;  %v2794_v28 = vsel %vm1036_vm1, %v2744_v1, 0 }
 0x33d   : > { %3057 = vmatpush.bf16.xpose.msrb.mxu2 %v5792_v34 }
 0x33e   : > { %3187 = vmatpush.bf16.xpose.msrb.mxu1 %v3149_v36  ;;  %v2291_v43 = vpop.f32.mrf.mxu2  ;;  %v2987_v36 = vpack.c.bf16 %v2954_v38, %v2953_v56  ;;  %v1529_v56 = vpop.f32.mrf.mxu0 }
 0x33f   : > { %2553 = vmatpush.bf16.xpose.msrb.mxu0 %v5614_v22  ;;  %v5807_v22 = vsel %vm1036_vm1, %v2989_v3, 0  ;;  %v3381_v3 = vpack.c.bf16 %v3354_v47, %v3353_v41  ;;  %v3213_v56 = vld [vmem:[#allocation2 + $0x6f] sm:$0xff] }
 0x340   : > { %v3007_v6 = vsel %vm1036_vm1, %v2987_v36, 0 }
 0x341   : > { %1908 = vmatpush.bf16.xpose.msrb.mxu3 %v5629_v49 }
 0x345   : > { %3058 = vmatpush.bf16.xpose.msrb.mxu2 %v5799_v44 }
 0x346   : > { %3188 = vmatpush.bf16.xpose.msrb.mxu1 %v3146_v51  ;;  %v3225_v51 = vld [vmem:[#allocation2 + $0x12f] sm:$0xff] }
 0x347   : > { %2554 = vmatpush.bf16.xpose.msrb.mxu0 %v5629_v49  ;;  %v1789_v49 = vadd.f32 %v5730_v2, %v1660_v27  ;;  %v3084_v2 = vld [vmem:[#allocation2 + $0x6e] sm:$0xff]  ;;  %v5858_v27 = vsel %vm1036_vm1, %v3381_v3, 0 }
 0x348   : > { %v3117_v52 = vpack.c.bf16 %v3084_v2, %v3083_v20  ;;  %v2078_v2 = vld [vmem:[#allocation2 + $0x1e8] sm:$0xff] }
 0x349   : > { %1909 = vmatpush.bf16.xpose.msrb.mxu3 %v5636_v0  ;;  %v1919_v8 = vadd.f32 %v5735_v10, %v1789_v49  ;;  %v3222_v49 = vld [vmem:[#allocation2 + $0x107] sm:$0xff] }
 0x34a   : > { %v3251_v17 = vpack.c.bf16 %v3223_v31, %v3222_v49  ;;  %v2074_v3 = vld [vmem:[#allocation2 + $0x1a8] sm:$0xff] }
 0x34b   : > { %v2048_v14 = vadd.f32 %v5750_v61, %v1919_v8  ;;  %v3382_v61 = vpack.c.bf16 %v3356_v46, %v3355_v9  ;;  %v3220_v46 = vld [vmem:[#allocation2 + $0xe7] sm:$0xff]  ;;  %v3215_v31 = vld [vmem:[#allocation2 + $0x8f] sm:$0xff] }
 0x34c   : > { %v5869_v38 = vsel %vm1036_vm1, %v3251_v17, 0  ;;  %v2076_v9 = vld [vmem:[#allocation2 + $0x1c8] sm:$0xff] }
 0x34d   : > { %3059 = vmatpush.bf16.xpose.msrb.mxu2 %v5807_v22  ;;  %v2177_v10 = vadd.f32 %v5781_v50, %v2048_v14  ;;  %v3137_v50 = vsel %vm1036_vm1, %v3117_v52, 0  ;;  %v3214_v49 = vld [vmem:[#allocation2 + $0x87] sm:$0xff] }
 0x34e   : > { %3189 = vmatpush.bf16.xpose.msrb.mxu1 %v3143_v59  ;;  %v2081_v59 = vld [vmem:[#allocation2 + $0x210] sm:$0xff] }
 0x34f   : > { %2555 = vmatpush.bf16.xpose.msrb.mxu0 %v5636_v0  ;;  %v3226_v0 = vld [vmem:[#allocation2 + $0x147] sm:$0xff]  ;;  %v2306_v60 = vadd.f32 %v2289_v12, %v2177_v10  ;;  %v5835_v12 = vsel %vm1036_vm1, %v3382_v61, 0  ;;  %v2099_v55 = vpack.c.bf16 %v2081_v59, %v2080_v58  ;;  %v3219_v61 = vld [vmem:[#allocation2 + $0xcf] sm:$0xff] }
 0x350   : > { %v3253_v42 = vpack.c.bf16 %v3227_v18, %v3226_v0  ;;  %v3221_v18 = vld [vmem:[#allocation2 + $0xef] sm:$0xff] }
 0x351   : > { %1910 = vmatpush.bf16.xpose.msrb.mxu3 %v5643_v30  ;;  %v5824_v11 = vadd.f32 %v2418_v19, %v2306_v60  ;;  %v3252_v19 = vpack.c.bf16 %v3225_v51, %v3224_v45  ;;  %v2149_v14 = vsel %vm1036_vm1, %v2099_v55, 0  ;;  %v3250_v20 = vpack.c.bf16 %v3221_v18, %v3220_v46  ;;  %v2077_v60 = vld [vmem:[#allocation2 + $0x1d0] sm:$0xff] }
 0x352   : > { %v5831_v43 = vsel %vm1036_vm1, %v3253_v42, 0  ;;  %v3613_v18 = vld [vmem:[#allocation2 + $0x14a] sm:$0xff] }
 0x353   : > { %v5853_v63 = vsel %vm1036_vm1, %v3252_v19, 0  ;;  %v2075_v19 = vld [vmem:[#allocation2 + $0x1b0] sm:$0xff] }
 0x355   : > { %3060 = vmatpush.bf16.xpose.msrb.mxu2 %v5818_v21 }
 0x356   : > { %3190 = vmatpush.bf16.xpose.msrb.mxu1 %v3140_v29  ;;  %v2079_v29 = vld [vmem:[#allocation2 + $0x1f0] sm:$0xff] }
 0x357   : > { %2556 = vmatpush.bf16.xpose.msrb.mxu0 %v5643_v30  ;;  %v5841_v30 = vld [vmem:[%s6263_s5 + $0x38] sm:$0xf]  ;;  %v2098_v10 = vpack.c.bf16 %v2079_v29, %v2078_v2 }
 0x359   : > { %1911 = vmatpush.bf16.xpose.msrb.mxu3 %v5650_v35  ;;  %v2146_v0 = vsel %vm1036_vm1, %v2098_v10, 0  ;;  %v3614_v10 = vld [vmem:[#allocation2 + $0x152] sm:$0xff] }
 0x35d   : > { %3061 = vmatpush.bf16.xpose.msrb.mxu2 %v3007_v6  ;;  %v2097_v6 = vpack.c.bf16 %v2077_v60, %v2076_v9  ;;  %v3483_v60 = vld [vmem:[#allocation2 + $0x131] sm:$0xff]  ;;  %v5924_v9 = vld [vmem:[%s6263_s5 + $0x40] sm:$0xf] }
 0x35e   : > { %3191 = vmatpush.bf16.xpose.msrb.mxu1 %v3137_v50 }
 0x35f   : > { %2557 = vmatpush.bf16.xpose.msrb.mxu0 %v5650_v35  ;;  %v1834_v35 = vpack.c.bf16 %v1809_v57, %v1808_v37  ;;  %v2143_v45 = vsel %vm1036_vm1, %v2097_v6, 0  ;;  %v2073_v37 = vld [vmem:[#allocation2 + $0x190] sm:$0xff] }
 0x361   : > { %1912 = vmatpush.bf16.xpose.msrb.mxu3 %v5659_v53  ;;  %v5863_v8 = vsel %vm1036_vm1, %v1834_v35, 0 }
 0x362   : > { %v2676_v36 = vpop.f32.mrf.mxu1 }
 0x364   : > { %4714 = vmatmul.msk.bf16.vlgmr.msrb.gmra.mxu2 %vm1036_vm1, %v5841_v30 }
 0x365   : > { %3313 = vmatpush.bf16.xpose.msra.mxu2 %v5831_v43  ;;  %4717 = vmatmul.msk.bf16.vlgmr.msrb.gmra.mxu1 %vm1036_vm1, %v4716_v24  ;;  %v3248_v24 = vpack.c.bf16 %v3217_v33, %v3216_v4 }
 0x366   : > { %3442 = vmatpush.bf16.xpose.msra.mxu1 %v5835_v12 }
 0x367   : > { %2558 = vmatpush.bf16.xpose.msrb.mxu0 %v5659_v53  ;;  %v4818_v53 = vld [vmem:[%s6263_s5 + $0x14] sm:$0xf]  ;;  %v2547_v52 = vpop.f32.mrf.mxu2  ;;  %v5897_v1 = vsel %vm1036_vm1, %v3248_v24, 0  ;;  %v2336_v24 = vld [vmem:[#allocation2 + $0x1ea] sm:$0xff] }
 0x368   : > { %v2564_v42 = vadd.f32 %v2547_v52, %v5824_v11  ;;  %v3611_v52 = vld [vmem:[#allocation2 + $0x12a] sm:$0xff] }
 0x369   : > { %1913 = vmatpush.bf16.xpose.msrb.mxu3 %v5863_v8 }
 0x36a   : > { %v5886_v50 = vadd.f32 %v2676_v36, %v2564_v42  ;;  %v2678_v51 = vpop.f32.mrf.mxu1  ;;  %v3612_v42 = vld [vmem:[#allocation2 + $0x132] sm:$0xff] }
 0x36b   : > { %v3639_v6 = vpack.c.bf16 %v3612_v42, %v3611_v52  ;;  %v2983_v51 = vld [vmem:[#allocation2 + $0x22a] sm:$0xff] }
 0x36d   : > { %3314 = vmatpush.bf16.xpose.msra.mxu2 %v5853_v63 }
 0x36e   : > { %3443 = vmatpush.bf16.xpose.msra.mxu1 %v5858_v27  ;;  %4703 = vmatmul.msk.bf16.vlgmr.msrb.gmra.mxu0 %vm1036_vm1, %v5673_v26  ;;  %v3218_v26 = vld [vmem:[#allocation2 + $0xc7] sm:$0xff] }
 0x36f   : > { %2809 = vmatpush.bf16.xpose.msra.mxu0 %v2794_v28  ;;  %v3249_v47 = vpack.c.bf16 %v3219_v61, %v3218_v26  ;;  %v2549_v11 = vpop.f32.mrf.mxu2  ;;  %v3247_v28 = vpack.c.bf16 %v3215_v31, %v3214_v49  ;;  %v2339_v26 = vld [vmem:[#allocation2 + $0x212] sm:$0xff] }
 0x370   : > { %4688 = vmatmul.msk.bf16.vlgmr.msrb.gmra.mxu3 %vm1036_vm1, %v4818_v53  ;;  %v5941_v11 = vsel %vm1036_vm1, %v3639_v6, 0  ;;  %v2335_v49 = vld [vmem:[#allocation2 + $0x1d2] sm:$0xff] }
 0x371   : > { %2164 = vmatpush.bf16.xpose.msra.mxu3 %v2149_v14  ;;  %v5890_v41 = vsel %vm1036_vm1, %v3249_v47, 0  ;;  %v5906_v29 = vsel %vm1036_vm1, %v3247_v28, 0  ;;  %v2984_v47 = vld [vmem:[#allocation2 + $0x232] sm:$0xff] }
 0x372   : > { %v3002_v33 = vpack.c.bf16 %v2984_v47, %v2983_v51  ;;  %v2331_v6 = vld [vmem:[#allocation2 + $0x192] sm:$0xff] }
 0x373   : > { %v1400_v57 = vpop.f32.mrf.mxu3 }
 0x374   : > { %v1401_v59 = vadd.f32 %v1400_v57, %v5733_v32  ;;  %v3052_v4 = vsel %vm1036_vm1, %v3002_v33, 0  ;;  %v2337_v57 = vld [vmem:[#allocation2 + $0x1f2] sm:$0xff]  ;;  %v2328_v33 = vld [vmem:[#allocation2 + $0x16a] sm:$0xff] }
 0x375   : > { %3315 = vmatpush.bf16.xpose.msra.mxu2 %v5869_v38 }
 0x376   : > { %3444 = vmatpush.bf16.xpose.msra.mxu1 %v5683_v48  ;;  %v5881_v48 = vsel %vm1036_vm1, %v3250_v20, 0  ;;  %v5900_v35 = vadd.f32 %v5850_v62, %v1401_v59  ;;  %v2070_v62 = vld [vmem:[#allocation2 + $0x168] sm:$0xff]  ;;  %v3640_v20 = vpack.c.bf16 %v3614_v10, %v3613_v18  ;;  %v2333_v10 = vld [vmem:[#allocation2 + $0x1b2] sm:$0xff] }
 0x377   : > { %2810 = vmatpush.bf16.xpose.msra.mxu0 %v2149_v14  ;;  %v2071_v14 = vld [vmem:[#allocation2 + $0x170] sm:$0xff] }
 0x378   : > { %v2094_v2 = vpack.c.bf16 %v2071_v14, %v2070_v62  ;;  %v3478_v59 = vld [vmem:[#allocation2 + $0xe9] sm:$0xff]  ;;  %v3477_v14 = vld [vmem:[#allocation2 + $0xd1] sm:$0xff] }
 0x379   : > { %2165 = vmatpush.bf16.xpose.msra.mxu3 %v2146_v0  ;;  %v2332_v18 = vld [vmem:[#allocation2 + $0x1aa] sm:$0xff] }
 0x37a   : > { %v5911_v36 = vsel %vm1036_vm1, %v2094_v2, 0 }
 0x37b   : > { %v1402_v17 = vpop.f32.mrf.mxu3 }
 0x37c   : > { %v3476_v17 = vld [vmem:[#allocation2 + $0xc9] sm:$0xff] }
 0x37d   : > { %3316 = vmatpush.bf16.xpose.msra.mxu2 %v5881_v48  ;;  %v3507_v2 = vpack.c.bf16 %v3477_v14, %v3476_v17  ;;  %v3242_v14 = vld [vmem:[#allocation2 + $0x247] sm:$0xff] }
 0x37e   : > { %3445 = vmatpush.bf16.xpose.msra.mxu1 %v5698_v39  ;;  %v2096_v39 = vpack.c.bf16 %v2075_v19, %v2074_v3 }
 0x37f   : > { %2811 = vmatpush.bf16.xpose.msra.mxu0 %v2146_v0  ;;  %v3482_v0 = vld [vmem:[#allocation2 + $0x129] sm:$0xff] }
 0x380   : > { %v2140_v58 = vsel %vm1036_vm1, %v2096_v39, 0  ;;  %v3510_v61 = vpack.c.bf16 %v3483_v60, %v3482_v0 }
 0x381   : > { %2166 = vmatpush.bf16.xpose.msra.mxu3 %v2143_v45 }
 0x382   : > { %v5936_v19 = vsel %vm1036_vm1, %v3510_v61, 0  ;;  %v2330_v61 = vld [vmem:[#allocation2 + $0x18a] sm:$0xff] }
 0x383   : > { %v2353_v51 = vpack.c.bf16 %v2331_v6, %v2330_v61 }
 0x385   : > { %3317 = vmatpush.bf16.xpose.msra.mxu2 %v5890_v41 }
 0x386   : > { %3446 = vmatpush.bf16.xpose.msra.mxu1 %v5710_v40  ;;  %v2072_v40 = vld [vmem:[#allocation2 + $0x188] sm:$0xff] }
 0x387   : > { %2812 = vmatpush.bf16.xpose.msra.mxu0 %v2143_v45  ;;  %v2095_v55 = vpack.c.bf16 %v2073_v37, %v2072_v40  ;;  %v5933_v45 = vpop.f32.mrf.mxu0  ;;  %v3479_v37 = vld [vmem:[#allocation2 + $0xf1] sm:$0xff]  ;;  %v2356_v40 = vpack.c.bf16 %v2337_v57, %v2336_v24 }
 0x388   : > { %v3471_v24 = vld [vmem:[#allocation2 + $0x71] sm:$0xff] }
 0x389   : > { %2167 = vmatpush.bf16.xpose.msra.mxu3 %v2140_v58  ;;  %v2137_v32 = vsel %vm1036_vm1, %v2095_v55, 0  ;;  %v2404_v55 = vsel %vm1036_vm1, %v2356_v40, 0 }
 0x38d   : > { %3318 = vmatpush.bf16.xpose.msra.mxu2 %v5897_v1 }
 0x38e   : > { %3447 = vmatpush.bf16.xpose.msra.mxu1 %v5720_v15  ;;  %v3212_v15 = vld [vmem:[#allocation2 + $0x67] sm:$0xff] }
 0x38f   : > { %2813 = vmatpush.bf16.xpose.msra.mxu0 %v2140_v58  ;;  %v3246_v46 = vpack.c.bf16 %v3213_v56, %v3212_v15  ;;  %v1787_v58 = vpop.f32.mrf.mxu0 }
 0x390   : > { %v3873_v58 = vld [vmem:[#allocation2 + $0x16f] sm:$0xff] }
 0x391   : > { %2168 = vmatpush.bf16.xpose.msra.mxu3 %v2137_v32  ;;  %v3266_v53 = vsel %vm1036_vm1, %v3246_v46, 0  ;;  %v5967_v46 = vsel %vm1036_vm1, %v3507_v2, 0  ;;  %v2597_v2 = vld [vmem:[#allocation2 + $0x22f] sm:$0xff] }
 0x395   : > { %3319 = vmatpush.bf16.xpose.msra.mxu2 %v5906_v29 }
 0x396   : > { %3448 = vmatpush.bf16.xpose.msra.mxu1 %v5726_v23  ;;  %v5918_v23 = vsel %vm1036_vm1, %v3640_v20, 0  ;;  %v3474_v20 = vld [vmem:[#allocation2 + $0xa9] sm:$0xff] }
 0x397   : > { %2814 = vmatpush.bf16.xpose.msra.mxu0 %v2137_v32 }
 0x399   : > { %2169 = vmatpush.bf16.xpose.msra.mxu3 %v5911_v36 }
 0x39d   : > { %3320 = vmatpush.bf16.xpose.msra.mxu2 %v3266_v53  ;;  %v3475_v53 = vld [vmem:[#allocation2 + $0xb1] sm:$0xff] }
 0x39e   : > { %3449 = vmatpush.bf16.xpose.msra.mxu1 %v5738_v16  ;;  %v4722_v16 = vld [vmem:[%s6263_s5 + $0x44] sm:$0xf]  ;;  %v3506_v0 = vpack.c.bf16 %v3475_v53, %v3474_v20 }
 0x39f   : > { %2815 = vmatpush.bf16.xpose.msra.mxu0 %v5911_v36 }
 0x3a1   : > { %2170 = vmatpush.bf16.xpose.msra.mxu3 %v5835_v12 }
 0x3a2   : > { %v2934_v31 = vpop.f32.mrf.mxu1 }
 0x3a4   : > { %4720 = vmatmul.msk.bf16.vlgmr.msra.gmra.mxu2 %vm1036_vm1, %v5924_v9 }
 0x3a5   : > { %3571 = vmatpush.bf16.xpose.msrb.mxu2 %v5743_v13  ;;  %v2338_v13 = vld [vmem:[#allocation2 + $0x20a] sm:$0xff]  ;;  %4723 = vmatmul.msk.bf16.vlgmr.msra.gmra.mxu1 %vm1036_vm1, %v4722_v16  ;;  %v5974_v16 = vsel %vm1036_vm1, %v3506_v0, 0 }
 0x3a6   : > { %3700 = vmatpush.bf16.xpose.msrb.mxu1 %v5918_v23  ;;  %v2357_v3 = vpack.c.bf16 %v2339_v26, %v2338_v13  ;;  %v3473_v26 = vld [vmem:[#allocation2 + $0x91] sm:$0xff] }
 0x3a7   : > { %2816 = vmatpush.bf16.xpose.msra.mxu0 %v5835_v12  ;;  %v4819_v12 = vld [vmem:[%s6263_s5 + $0x1c] sm:$0xf]  ;;  %v2805_v28 = vpop.f32.mrf.mxu2  ;;  %v2595_v0 = vld [vmem:[#allocation2 + $0x20f] sm:$0xff] }
 0x3a8   : > { %v2407_v39 = vsel %vm1036_vm1, %v2357_v3, 0  ;;  %v2822_v32 = vadd.f32 %v2805_v28, %v5886_v50  ;;  %v3741_v28 = vld [vmem:[#allocation2 + $0x146] sm:$0xff] }
 0x3a9   : > { %2171 = vmatpush.bf16.xpose.msra.mxu3 %v5858_v27  ;;  %v3508_v27 = vpack.c.bf16 %v3479_v37, %v3478_v59  ;;  %v3743_v37 = vld [vmem:[#allocation2 + $0x166] sm:$0xff] }
 0x3aa   : > { %v2936_v56 = vpop.f32.mrf.mxu1 }
 0x3ab   : > { %v2596_v56 = vld [vmem:[#allocation2 + $0x227] sm:$0xff] }
 0x3ad   : > { %3572 = vmatpush.bf16.xpose.msrb.mxu2 %v5936_v19 }
 0x3ae   : > { %3701 = vmatpush.bf16.xpose.msrb.mxu1 %v5941_v11  ;;  %4709 = vmatmul.msk.bf16.vlgmr.msra.gmra.mxu0 %vm1036_vm1, %v5755_v7  ;;  %v5963_v7 = vadd.f32 %v2934_v31, %v2822_v32  ;;  %v3872_v31 = vld [vmem:[#allocation2 + $0x167] sm:$0xff] }
 0x3af   : > { %3067 = vmatpush.bf16.xpose.msrb.mxu0 %v3052_v4  ;;  %v2807_v50 = vpop.f32.mrf.mxu2  ;;  %v6004_v32 = vld [vmem:[%s6263_s5 + $0x48] sm:$0xf] }
 0x3b0   : > { %4694 = vmatmul.msk.bf16.vlgmr.msra.gmra.mxu3 %vm1036_vm1, %v4819_v12  ;;  %v3899_v12 = vpack.c.bf16 %v3873_v58, %v3872_v31  ;;  %v2615_v50 = vpack.c.bf16 %v2597_v2, %v2596_v56  ;;  %v3734_v58 = vld [vmem:[#allocation2 + $0xce] sm:$0xff] }
 0x3b1   : > { %2422 = vmatpush.bf16.xpose.msrb.mxu3 %v2407_v39 }
 0x3b2   : > { %v2665_v53 = vsel %vm1036_vm1, %v2615_v50, 0  ;;  %v2586_v50 = vld [vmem:[#allocation2 + $0x187] sm:$0xff] }
 0x3b3   : > { %v1656_v60 = vpop.f32.mrf.mxu3 }
 0x3b4   : > { %v1661_v42 = vadd.f32 %v1656_v60, %v5900_v35  ;;  %v2395_v35 = vsel %vm1036_vm1, %v2353_v51, 0  ;;  %v2592_v51 = vld [vmem:[#allocation2 + $0x1e7] sm:$0xff] }
 0x3b5   : > { %3573 = vmatpush.bf16.xpose.msrb.mxu2 %v5772_v25  ;;  %v2334_v25 = vld [vmem:[#allocation2 + $0x1ca] sm:$0xff] }
 0x3b6   : > { %3702 = vmatpush.bf16.xpose.msrb.mxu1 %v5765_v5  ;;  %v5958_v5 = vsel %vm1036_vm1, %v3508_v27, 0  ;;  %v2355_v62 = vpack.c.bf16 %v2335_v49, %v2334_v25  ;;  %v5977_v13 = vadd.f32 %v5933_v45, %v1661_v42  ;;  %v3470_v45 = vld [vmem:[#allocation2 + $0x69] sm:$0xff] }
 0x3b7   : > { %3068 = vmatpush.bf16.xpose.msrb.mxu0 %v2407_v39  ;;  %v2329_v39 = vld [vmem:[#allocation2 + $0x172] sm:$0xff]  ;;  %v3504_v59 = vpack.c.bf16 %v3471_v24, %v3470_v45  ;;  %v3737_v42 = vld [vmem:[#allocation2 + $0x106] sm:$0xff] }
 0x3b8   : > { %v2401_v15 = vsel %vm1036_vm1, %v2355_v62, 0  ;;  %v2352_v57 = vpack.c.bf16 %v2329_v39, %v2328_v33  ;;  %v3742_v49 = vld [vmem:[#allocation2 + $0x14e] sm:$0xff]  ;;  %v3735_v33 = vld [vmem:[#allocation2 + $0xe6] sm:$0xff] }
 0x3b9   : > { %2423 = vmatpush.bf16.xpose.msrb.mxu3 %v2404_v55  ;;  %v3769_v17 = vpack.c.bf16 %v3742_v49, %v3741_v28  ;;  %v3243_v62 = vld [vmem:[#allocation2 + $0x24f] sm:$0xff] }
 0x3ba   : > { %v5988_v27 = vsel %vm1036_vm1, %v2352_v57, 0  ;;  %v2591_v24 = vld [vmem:[#allocation2 + $0x1cf] sm:$0xff] }
 0x3bb   : > { %v1658_v3 = vpop.f32.mrf.mxu3 }
 0x3bd   : > { %3574 = vmatpush.bf16.xpose.msrb.mxu2 %v5958_v5 }
 0x3be   : > { %3703 = vmatpush.bf16.xpose.msrb.mxu1 %v5778_v54  ;;  %v2354_v54 = vpack.c.bf16 %v2333_v10, %v2332_v18  ;;  %v3801_v18 = vsel %vm1036_vm1, %v3769_v17, 0  ;;  %v3261_v10 = vpack.c.bf16 %v3243_v62, %v3242_v14  ;;  %v2588_v17 = vld [vmem:[#allocation2 + $0x1a7] sm:$0xff] }
 0x3bf   : > { %3069 = vmatpush.bf16.xpose.msrb.mxu0 %v2404_v55  ;;  %v3524_v55 = vsel %vm1036_vm1, %v3504_v59, 0  ;;  %v3733_v59 = vld [vmem:[#allocation2 + $0xc6] sm:$0xff]  ;;  %v3732_v14 = vld [vmem:[#allocation2 + $0xae] sm:$0xff] }
 0x3c0   : > { %v2398_v52 = vsel %vm1036_vm1, %v2354_v54, 0  ;;  %v3311_v20 = vsel %vm1036_vm1, %v3261_v10, 0  ;;  %v2594_v54 = vld [vmem:[#allocation2 + $0x207] sm:$0xff] }
 0x3c1   : > { %2424 = vmatpush.bf16.xpose.msrb.mxu3 %v2401_v15  ;;  %v3731_v62 = vld [vmem:[#allocation2 + $0xa6] sm:$0xff] }
 0x3c2   : > { %v3764_v56 = vpack.c.bf16 %v3732_v14, %v3731_v62  ;;  %v4124_v14 = vld [vmem:[#allocation2 + $0x109] sm:$0xff] }
 0x3c3   : > { %v3995_v62 = vld [vmem:[#allocation2 + $0x108] sm:$0xff] }
 0x3c4   : > { %v3786_v10 = vsel %vm1036_vm1, %v3764_v56, 0 }
 0x3c5   : > { %3575 = vmatpush.bf16.xpose.msrb.mxu2 %v5967_v46 }
 0x3c6   : > { %3704 = vmatpush.bf16.xpose.msrb.mxu1 %v5792_v34  ;;  %v3472_v34 = vld [vmem:[#allocation2 + $0x89] sm:$0xff] }
 0x3c7   : > { %3070 = vmatpush.bf16.xpose.msrb.mxu0 %v2401_v15  ;;  %v3505_v47 = vpack.c.bf16 %v3473_v26, %v3472_v34  ;;  %v2044_v15 = vpop.f32.mrf.mxu0 }
 0x3c9   : > { %2425 = vmatpush.bf16.xpose.msrb.mxu3 %v2398_v52  ;;  %v5983_v4 = vsel %vm1036_vm1, %v3505_v47, 0  ;;  %v3736_v47 = vld [vmem:[#allocation2 + $0xee] sm:$0xff] }
 0x3ca   : > { %v3766_v39 = vpack.c.bf16 %v3736_v47, %v3735_v33  ;;  %v2855_v47 = vld [vmem:[#allocation2 + $0x231] sm:$0xff] }
 0x3cc   : > { %v3792_v57 = vsel %vm1036_vm1, %v3766_v39, 0 }
 0x3cd   : > { %3576 = vmatpush.bf16.xpose.msrb.mxu2 %v5974_v16 }
 0x3ce   : > { %3705 = vmatpush.bf16.xpose.msrb.mxu1 %v5799_v44  ;;  %v3744_v44 = vld [vmem:[#allocation2 + $0x16e] sm:$0xff] }
 0x3cf   : > { %3071 = vmatpush.bf16.xpose.msrb.mxu0 %v2398_v52  ;;  %v3770_v40 = vpack.c.bf16 %v3744_v44, %v3743_v37  ;;  %v2046_v60 = vpop.f32.mrf.mxu0  ;;  %v3738_v52 = vld [vmem:[#allocation2 + $0x10e] sm:$0xff]  ;;  %v3765_v37 = vpack.c.bf16 %v3734_v58, %v3733_v59 }
 0x3d0   : > { %v3767_v6 = vpack.c.bf16 %v3738_v52, %v3737_v42 }
 0x3d1   : > { %2426 = vmatpush.bf16.xpose.msrb.mxu3 %v2395_v35  ;;  %v5993_v25 = vsel %vm1036_vm1, %v3770_v40, 0  ;;  %v3789_v49 = vsel %vm1036_vm1, %v3765_v37, 0 }
 0x3d5   : > { %3577 = vmatpush.bf16.xpose.msrb.mxu2 %v5983_v4 }
 0x3d6   : > { %3706 = vmatpush.bf16.xpose.msrb.mxu1 %v5807_v22  ;;  %v5998_v22 = vsel %vm1036_vm1, %v3899_v12, 0 }
 0x3d7   : > { %3072 = vmatpush.bf16.xpose.msrb.mxu0 %v2395_v35 }
 0x3d9   : > { %2427 = vmatpush.bf16.xpose.msrb.mxu3 %v5988_v27 }
 0x3dd   : > { %3578 = vmatpush.bf16.xpose.msrb.mxu2 %v3524_v55  ;;  %v2589_v55 = vld [vmem:[#allocation2 + $0x1af] sm:$0xff] }
 0x3de   : > { %3707 = vmatpush.bf16.xpose.msrb.mxu1 %v5818_v21  ;;  %v6009_v21 = vld [vmem:[%s6263_s5 + $0x4c] sm:$0xf] }
 0x3df   : > { %3073 = vmatpush.bf16.xpose.msrb.mxu0 %v5988_v27 }
 0x3e1   : > { %2428 = vmatpush.bf16.xpose.msrb.mxu3 %v5918_v23 }
 0x3e2   : > { %v3193_v61 = vpop.f32.mrf.mxu1 }
 0x3e4   : > { %4726 = vmatmul.msk.bf16.vlgmr.msrb.gmra.mxu2 %vm1036_vm1, %v6004_v32 }
 0x3e5   : > { %3830 = vmatpush.bf16.xpose.msra.mxu2 %v5993_v25  ;;  %4729 = vmatmul.msk.bf16.vlgmr.msrb.gmra.mxu1 %vm1036_vm1, %v6009_v21 }
 0x3e6   : > { %3959 = vmatpush.bf16.xpose.msra.mxu1 %v5998_v22 }
 0x3e7   : > { %3074 = vmatpush.bf16.xpose.msrb.mxu0 %v5918_v23  ;;  %v4820_v23 = vld [vmem:[%s6263_s5 + $0x24] sm:$0xf]  ;;  %v3063_v34 = vpop.f32.mrf.mxu2 }
 0x3e8   : > { %v3080_v26 = vadd.f32 %v3063_v34, %v5963_v7  ;;  %v2590_v7 = vld [vmem:[#allocation2 + $0x1c7] sm:$0xff] }
 0x3e9   : > { %2429 = vmatpush.bf16.xpose.msrb.mxu3 %v5941_v11 }
 0x3ea   : > { %v6035_v3 = vadd.f32 %v3193_v61, %v3080_v26  ;;  %v4128_v61 = vld [vmem:[#allocation2 + $0x149] sm:$0xff] }
 0x3eb   : > { %v2583_v26 = vld [vmem:[#allocation2 + $0x14f] sm:$0xff] }
 0x3ed   : > { %3831 = vmatpush.bf16.xpose.msra.mxu2 %v3801_v18 }
 0x3ee   : > { %3960 = vmatpush.bf16.xpose.msra.mxu1 %v5831_v43  ;;  %v2614_v43 = vpack.c.bf16 %v2595_v0, %v2594_v54  ;;  %4715 = vmatmul.msk.bf16.vlgmr.msrb.gmra.mxu0 %vm1036_vm1, %v5841_v30  ;;  %v3195_v30 = vpop.f32.mrf.mxu1  ;;  %v4130_v54 = vld [vmem:[#allocation2 + $0x169] sm:$0xff] }
 0x3ef   : > { %3326 = vmatpush.bf16.xpose.msra.mxu0 %v3311_v20  ;;  %v3065_v44 = vpop.f32.mrf.mxu2  ;;  %v2582_v30 = vld [vmem:[#allocation2 + $0x147] sm:$0xff] }
 0x3f0   : > { %4700 = vmatmul.msk.bf16.vlgmr.msrb.gmra.mxu3 %vm1036_vm1, %v4820_v23  ;;  %v2662_v11 = vsel %vm1036_vm1, %v2614_v43, 0  ;;  %v3999_v23 = vld [vmem:[#allocation2 + $0x148] sm:$0xff] }
 0x3f1   : > { %2680 = vmatpush.bf16.xpose.msra.mxu3 %v2665_v53 }
 0x3f3   : > { %v1915_v40 = vpop.f32.mrf.mxu3 }
 0x3f4   : > { %v1920_v12 = vadd.f32 %v1915_v40, %v5977_v13  ;;  %v2587_v13 = vld [vmem:[#allocation2 + $0x18f] sm:$0xff] }
 0x3f5   : > { %3832 = vmatpush.bf16.xpose.msra.mxu2 %v5863_v8  ;;  %v2593_v8 = vld [vmem:[#allocation2 + $0x1ef] sm:$0xff]  ;;  %v2610_v20 = vpack.c.bf16 %v2587_v13, %v2586_v50 }
 0x3f6   : > { %3961 = vmatpush.bf16.xpose.msra.mxu1 %v5853_v63  ;;  %v3795_v63 = vsel %vm1036_vm1, %v3767_v6, 0  ;;  %v2613_v35 = vpack.c.bf16 %v2593_v8, %v2592_v51  ;;  %v6043_v28 = vadd.f32 %v2044_v15, %v1920_v12  ;;  %v3730_v15 = vld [vmem:[#allocation2 + $0x8e] sm:$0xff] }
 0x3f7   : > { %3327 = vmatpush.bf16.xpose.msra.mxu0 %v2665_v53  ;;  %v3729_v53 = vld [vmem:[#allocation2 + $0x86] sm:$0xff]  ;;  %v2650_v60 = vsel %vm1036_vm1, %v2610_v20, 0  ;;  %v4129_v6 = vld [vmem:[#allocation2 + $0x151] sm:$0xff] }
 0x3f8   : > { %v2659_v45 = vsel %vm1036_vm1, %v2613_v35, 0  ;;  %v3763_v0 = vpack.c.bf16 %v3730_v15, %v3729_v53  ;;  %v4156_v34 = vpack.c.bf16 %v4129_v6, %v4128_v61  ;;  %v2854_v51 = vld [vmem:[#allocation2 + $0x229] sm:$0xff]  ;;  %v6070_v35 = vpop.f32.mrf.mxu0  ;;  %v2849_v61 = vld [vmem:[#allocation2 + $0x1d1] sm:$0xff] }
 0x3f9   : > { %2681 = vmatpush.bf16.xpose.msra.mxu3 %v2662_v11  ;;  %v2873_v44 = vpack.c.bf16 %v2855_v47, %v2854_v51  ;;  %v2852_v40 = vld [vmem:[#allocation2 + $0x209] sm:$0xff] }
 0x3fa   : > { %v3783_v43 = vsel %vm1036_vm1, %v3763_v0, 0  ;;  %v2846_v47 = vld [vmem:[#allocation2 + $0x1a9] sm:$0xff] }
 0x3fb   : > { %v1917_v18 = vpop.f32.mrf.mxu3  ;;  %v2923_v37 = vsel %vm1036_vm1, %v2873_v44, 0 }
 0x3fd   : > { %3833 = vmatpush.bf16.xpose.msra.mxu2 %v3795_v63  ;;  %v3500_v63 = vld [vmem:[#allocation2 + $0x249] sm:$0xff] }
 0x3fe   : > { %3962 = vmatpush.bf16.xpose.msra.mxu1 %v5869_v38  ;;  %v2612_v38 = vpack.c.bf16 %v2591_v24, %v2590_v7  ;;  %v2608_v24 = vpack.c.bf16 %v2583_v26, %v2582_v30  ;;  %v3997_v7 = vld [vmem:[#allocation2 + $0x128] sm:$0xff] }
 0x3ff   : > { %3328 = vmatpush.bf16.xpose.msra.mxu0 %v2662_v11  ;;  %v6060_v11 = vld [vmem:[%s6263_s5 + $0x50] sm:$0xf] }
 0x400   : > { %v2656_v31 = vsel %vm1036_vm1, %v2612_v38, 0  ;;  %v2644_v59 = vsel %vm1036_vm1, %v2608_v24, 0  ;;  %v2304_v12 = vpop.f32.mrf.mxu0 }
 0x401   : > { %2682 = vmatpush.bf16.xpose.msra.mxu3 %v2659_v45 }
 0x405   : > { %3834 = vmatpush.bf16.xpose.msra.mxu2 %v3792_v57  ;;  %v3998_v57 = vld [vmem:[#allocation2 + $0x130] sm:$0xff] }
 0x406   : > { %3963 = vmatpush.bf16.xpose.msra.mxu1 %v5881_v48  ;;  %v2611_v48 = vpack.c.bf16 %v2589_v55, %v2588_v17  ;;  %v4026_v38 = vpack.c.bf16 %v3998_v57, %v3997_v7  ;;  %v3989_v57 = vld [vmem:[#allocation2 + $0xa8] sm:$0xff] }
 0x407   : > { %3329 = vmatpush.bf16.xpose.msra.mxu0 %v2659_v45  ;;  %v6076_v45 = vsel %vm1036_vm1, %v4156_v34, 0  ;;  %v3991_v34 = vld [vmem:[#allocation2 + $0xc8] sm:$0xff] }
 0x408   : > { %v2653_v2 = vsel %vm1036_vm1, %v2611_v48, 0  ;;  %v4056_v55 = vsel %vm1036_vm1, %v4026_v38, 0  ;;  %v4125_v48 = vld [vmem:[#allocation2 + $0x111] sm:$0xff] }
 0x409   : > { %2683 = vmatpush.bf16.xpose.msra.mxu3 %v2656_v31  ;;  %v4154_v18 = vpack.c.bf16 %v4125_v48, %v4124_v14  ;;  %v2845_v38 = vld [vmem:[#allocation2 + $0x191] sm:$0xff]  ;;  %v3113_v14 = vld [vmem:[#allocation2 + $0x246] sm:$0xff] }
 0x40a   : > { %v3114_v48 = vld [vmem:[#allocation2 + $0x24e] sm:$0xff] }
 0x40b   : > { %v4182_v53 = vsel %vm1036_vm1, %v4154_v18, 0 }
 0x40d   : > { %3835 = vmatpush.bf16.xpose.msra.mxu2 %v3789_v49  ;;  %v3996_v49 = vld [vmem:[#allocation2 + $0x110] sm:$0xff] }
 0x40e   : > { %3964 = vmatpush.bf16.xpose.msra.mxu1 %v5890_v41  ;;  %v4131_v41 = vld [vmem:[#allocation2 + $0x171] sm:$0xff] }
 0x40f   : > { %3330 = vmatpush.bf16.xpose.msra.mxu0 %v2656_v31  ;;  %v4157_v52 = vpack.c.bf16 %v4131_v41, %v4130_v54  ;;  %v2853_v31 = vld [vmem:[#allocation2 + $0x211] sm:$0xff] }
 0x410   : > { %v2872_v17 = vpack.c.bf16 %v2853_v31, %v2852_v40  ;;  %v3994_v54 = vld [vmem:[#allocation2 + $0xf0] sm:$0xff] }
 0x411   : > { %2684 = vmatpush.bf16.xpose.msra.mxu3 %v2653_v2  ;;  %v6054_v42 = vsel %vm1036_vm1, %v4157_v52, 0 }
 0x412   : > { %v2920_v13 = vsel %vm1036_vm1, %v2872_v17, 0 }
 0x415   : > { %3836 = vmatpush.bf16.xpose.msra.mxu2 %v3786_v10  ;;  %v2851_v10 = vld [vmem:[#allocation2 + $0x1f1] sm:$0xff] }
 0x416   : > { %3965 = vmatpush.bf16.xpose.msra.mxu1 %v5897_v1  ;;  %v4000_v1 = vld [vmem:[#allocation2 + $0x150] sm:$0xff] }
 0x417   : > { %3331 = vmatpush.bf16.xpose.msra.mxu0 %v2653_v2  ;;  %v4027_v8 = vpack.c.bf16 %v4000_v1, %v3999_v23  ;;  %v4025_v2 = vpack.c.bf16 %v3996_v49, %v3995_v62  ;;  %v2848_v1 = vld [vmem:[#allocation2 + $0x1c9] sm:$0xff]  ;;  %v4258_v49 = vld [vmem:[#allocation2 + $0x152] sm:$0xff] }
 0x418   : > { %v3992_v23 = vld [vmem:[#allocation2 + $0xd0] sm:$0xff]  ;;  %v3759_v62 = vld [vmem:[#allocation2 + $0x266] sm:$0xff] }
 0x419   : > { %2685 = vmatpush.bf16.xpose.msra.mxu3 %v2650_v60  ;;  %v4059_v33 = vsel %vm1036_vm1, %v4027_v8, 0  ;;  %v4053_v15 = vsel %vm1036_vm1, %v4025_v2, 0  ;;  %v2870_v8 = vpack.c.bf16 %v2849_v61, %v2848_v1  ;;  %v6133_v2 = vld [vmem:[%s6263_s5 + $0x5c] sm:$0xf]  ;;  %v4822_v61 = vld [vmem:[%s6263_s5 + $0x34] sm:$0xf] }
 0x41b   : > { %v6101_v26 = vsel %vm1036_vm1, %v2870_v8, 0 }
 0x41d   : > { %3837 = vmatpush.bf16.xpose.msra.mxu2 %v3783_v43 }
 0x41e   : > { %3966 = vmatpush.bf16.xpose.msra.mxu1 %v5906_v29  ;;  %v3501_v29 = vld [vmem:[#allocation2 + $0x251] sm:$0xff] }
 0x41f   : > { %3332 = vmatpush.bf16.xpose.msra.mxu0 %v2650_v60  ;;  %v3519_v39 = vpack.c.bf16 %v3501_v29, %v3500_v63  ;;  %v4023_v63 = vpack.c.bf16 %v3992_v23, %v3991_v34  ;;  %v4251_v34 = vld [vmem:[#allocation2 + $0xea] sm:$0xff] }
 0x421   : > { %2686 = vmatpush.bf16.xpose.msra.mxu3 %v5998_v22  ;;  %v3569_v58 = vsel %vm1036_vm1, %v3519_v39, 0  ;;  %v4047_v30 = vsel %vm1036_vm1, %v4023_v63, 0  ;;  %v4252_v63 = vld [vmem:[#allocation2 + $0xf2] sm:$0xff] }
 0x422   : > { %v3451_v56 = vpop.f32.mrf.mxu1 }
 0x424   : > { %4732 = vmatmul.msk.bf16.vlgmr.msra.gmra.mxu2 %vm1036_vm1, %v6060_v11 }
 0x425   : > { %4088 = vmatpush.bf16.xpose.msrb.mxu2 %v5911_v36  ;;  %v6065_v36 = vld [vmem:[%s6263_s5 + $0x54] sm:$0xf] }
 0x426   : > { %4217 = vmatpush.bf16.xpose.msrb.mxu1 %v6054_v42 }
 0x427   : > { %4735 = vmatmul.msk.bf16.vlgmr.msra.gmra.mxu1 %vm1036_vm1, %v6065_v36  ;;  %3333 = vmatpush.bf16.xpose.msra.mxu0 %v5998_v22  ;;  %v4821_v22 = vld [vmem:[%s6263_s5 + $0x2c] sm:$0xf]  ;;  %v3322_v50 = vpop.f32.mrf.mxu2 }
 0x428   : > { %v3339_v20 = vadd.f32 %v3322_v50, %v6035_v3 }
 0x429   : > { %2687 = vmatpush.bf16.xpose.msra.mxu3 %v2644_v59  ;;  %v3988_v59 = vld [vmem:[#allocation2 + $0x90] sm:$0xff] }
 0x42a   : > { %v6095_v0 = vadd.f32 %v3451_v56, %v3339_v20  ;;  %v3453_v60 = vpop.f32.mrf.mxu1  ;;  %v3760_v56 = vld [vmem:[#allocation2 + $0x26e] sm:$0xff]  ;;  %v3111_v20 = vld [vmem:[#allocation2 + $0x226] sm:$0xff] }
 0x42b   : > { %v3778_v18 = vpack.c.bf16 %v3760_v56, %v3759_v62  ;;  %v4254_v60 = vld [vmem:[#allocation2 + $0x112] sm:$0xff] }
 0x42c   : > { %v3104_v56 = vld [vmem:[#allocation2 + $0x1ae] sm:$0xff] }
 0x42d   : > { %4089 = vmatpush.bf16.xpose.msrb.mxu2 %v4059_v33  ;;  %v2847_v33 = vld [vmem:[#allocation2 + $0x1b1] sm:$0xff]  ;;  %v3828_v50 = vsel %vm1036_vm1, %v3778_v18, 0 }
 0x42e   : > { %4218 = vmatpush.bf16.xpose.msrb.mxu1 %v6076_v45  ;;  %4721 = vmatmul.msk.bf16.vlgmr.msra.gmra.mxu0 %vm1036_vm1, %v5924_v9  ;;  %v3993_v9 = vld [vmem:[#allocation2 + $0xe8] sm:$0xff]  ;;  %v2869_v24 = vpack.c.bf16 %v2847_v33, %v2846_v47  ;;  %v4282_v33 = vpack.c.bf16 %v4252_v63, %v4251_v34  ;;  %v4246_v18 = vld [vmem:[#allocation2 + $0x92] sm:$0xff] }
 0x42f   : > { %3584 = vmatpush.bf16.xpose.msrb.mxu0 %v3569_v58  ;;  %v4024_v52 = vpack.c.bf16 %v3994_v54, %v3993_v9  ;;  %v3324_v3 = vpop.f32.mrf.mxu2  ;;  %v2844_v58 = vld [vmem:[#allocation2 + $0x189] sm:$0xff] }
 0x430   : > { %4706 = vmatmul.msk.bf16.vlgmr.msra.gmra.mxu3 %vm1036_vm1, %v4821_v22  ;;  %v6111_v7 = vsel %vm1036_vm1, %v2869_v24, 0  ;;  %v3132_v22 = vpack.c.bf16 %v3114_v48, %v3113_v14  ;;  %v4253_v9 = vld [vmem:[#allocation2 + $0x10a] sm:$0xff] }
 0x431   : > { %2938 = vmatpush.bf16.xpose.msrb.mxu3 %v2923_v37  ;;  %v4050_v6 = vsel %vm1036_vm1, %v4024_v52, 0  ;;  %v4283_v1 = vpack.c.bf16 %v4254_v60, %v4253_v9  ;;  %v3371_v9 = vld [vmem:[#allocation2 + $0x248] sm:$0xff] }
 0x433   : > { %v2173_v29 = vpop.f32.mrf.mxu3  ;;  %v4311_v23 = vsel %vm1036_vm1, %v4283_v1, 0  ;;  %v4018_v1 = vld [vmem:[#allocation2 + $0x270] sm:$0xff] }
 0x434   : > { %v2178_v51 = vadd.f32 %v2173_v29, %v6043_v28 }
 0x435   : > { %4090 = vmatpush.bf16.xpose.msrb.mxu2 %v4056_v55  ;;  %v4257_v55 = vld [vmem:[#allocation2 + $0x14a] sm:$0xff] }
 0x436   : > { %4219 = vmatpush.bf16.xpose.msrb.mxu1 %v5936_v19  ;;  %v2850_v19 = vld [vmem:[#allocation2 + $0x1e9] sm:$0xff]  ;;  %v6107_v39 = vadd.f32 %v6070_v35, %v2178_v51  ;;  %v4285_v17 = vpack.c.bf16 %v4258_v49, %v4257_v55  ;;  %v4248_v49 = vld [vmem:[#allocation2 + $0xb2] sm:$0xff] }
 0x437   : > { %3585 = vmatpush.bf16.xpose.msrb.mxu0 %v2923_v37  ;;  %v2871_v41 = vpack.c.bf16 %v2851_v10, %v2850_v19  ;;  %v3987_v37 = vld [vmem:[#allocation2 + $0x88] sm:$0xff]  ;;  %v4256_v19 = vld [vmem:[#allocation2 + $0x132] sm:$0xff]  ;;  %v3182_v10 = vsel %vm1036_vm1, %v3132_v22, 0 }
 0x438   : > { %v4021_v40 = vpack.c.bf16 %v3988_v59, %v3987_v37  ;;  %v4247_v55 = vld [vmem:[#allocation2 + $0xaa] sm:$0xff] }
 0x439   : > { %2939 = vmatpush.bf16.xpose.msrb.mxu3 %v2920_v13  ;;  %v2917_v43 = vsel %vm1036_vm1, %v2871_v41, 0  ;;  %v4280_v14 = vpack.c.bf16 %v4248_v49, %v4247_v55  ;;  %v4245_v22 = vld [vmem:[#allocation2 + $0x8a] sm:$0xff] }
 0x43a   : > { %v4041_v12 = vsel %vm1036_vm1, %v4021_v40, 0 }
 0x43b   : > { %v2175_v28 = vpop.f32.mrf.mxu3 }
 0x43d   : > { %4091 = vmatpush.bf16.xpose.msrb.mxu2 %v4053_v15 }
 0x43e   : > { %4220 = vmatpush.bf16.xpose.msrb.mxu1 %v4182_v53  ;;  %v3112_v53 = vld [vmem:[#allocation2 + $0x22e] sm:$0xff] }
 0x43f   : > { %3586 = vmatpush.bf16.xpose.msrb.mxu0 %v2920_v13  ;;  %v4255_v13 = vld [vmem:[#allocation2 + $0x12a] sm:$0xff]  ;;  %v3131_v52 = vpack.c.bf16 %v3112_v53, %v3111_v20 }
 0x440   : > { %v4284_v15 = vpack.c.bf16 %v4256_v19, %v4255_v13  ;;  %v4374_v13 = vld [vmem:[%s6264_s6] sm:$0xff]  ;;  %v4834_v19 = vmov 0  }
 0x441   : > { %2940 = vmatpush.bf16.xpose.msrb.mxu3 %v2917_v43  ;;  %4812 = vset.pattern.permute.xlu0 %v4834_v19  ;;  %v3101_v53 = vld [vmem:[#allocation2 + $0x186] sm:$0xff]  ;;  %v4276_v19 = vld [vmem:[#allocation2 + $0x272] sm:$0xff] }
 0x442   : > { %v4314_v41 = vsel %vm1036_vm1, %v4284_v15, 0  ;;  %4377 = vperm.xlu0 %4812, %v4374_v13   ;;  %v3102_v15 = vld [vmem:[#allocation2 + $0x18e] sm:$0xff] }
 0x443   : > { %v4275_v13 = vld [vmem:[#allocation2 + $0x26a] sm:$0xff] }
 0x445   : > { %4092 = vmatpush.bf16.xpose.msrb.mxu2 %v4050_v6  ;;  %v3110_v6 = vld [vmem:[#allocation2 + $0x20e] sm:$0xff] }
 0x446   : > { %4221 = vmatpush.bf16.xpose.msrb.mxu1 %v5958_v5  ;;  %v3990_v5 = vld [vmem:[#allocation2 + $0xb0] sm:$0xff] }
 0x447   : > { %3587 = vmatpush.bf16.xpose.msrb.mxu0 %v2917_v43  ;;  %v4022_v44 = vpack.c.bf16 %v3990_v5, %v3989_v57  ;;  %v4308_v5 = vsel %vm1036_vm1, %v4282_v33, 0  ;;  %v3107_v57 = vld [vmem:[#allocation2 + $0x1e6] sm:$0xff] }
 0x449   : > { %2941 = vmatpush.bf16.xpose.msrb.mxu3 %v6101_v26  ;;  %v4044_v35 = vsel %vm1036_vm1, %v4022_v44, 0  ;;  %v4249_v44 = vld [vmem:[#allocation2 + $0xca] sm:$0xff] }
 0x44d   : > { %4093 = vmatpush.bf16.xpose.msrb.mxu2 %v4047_v30  ;;  %v3108_v30 = vld [vmem:[#allocation2 + $0x1ee] sm:$0xff] }
 0x44e   : > { %4222 = vmatpush.bf16.xpose.msrb.mxu1 %v5967_v46  ;;  %v2868_v46 = vpack.c.bf16 %v2845_v38, %v2844_v58  ;;  %v3129_v28 = vpack.c.bf16 %v3108_v30, %v3107_v57 }
 0x44f   : > { %3588 = vmatpush.bf16.xpose.msrb.mxu0 %v6101_v26 }
 0x450   : > { %v6118_v31 = vsel %vm1036_vm1, %v2868_v46, 0  ;;  %v3106_v46 = vld [vmem:[#allocation2 + $0x1ce] sm:$0xff] }
 0x451   : > { %2942 = vmatpush.bf16.xpose.msrb.mxu3 %v6111_v7 }
 0x455   : > { %4094 = vmatpush.bf16.xpose.msrb.mxu2 %v4044_v35  ;;  %v3173_v35 = vsel %vm1036_vm1, %v3129_v28, 0  ;;  %v3366_v28 = vld [vmem:[#allocation2 + $0x1f0] sm:$0xff] }
 0x456   : > { %4223 = vmatpush.bf16.xpose.msrb.mxu1 %v5974_v16  ;;  %v6128_v16 = vld [vmem:[%s6263_s5 + $0x58] sm:$0xf] }
 0x457   : > { %3589 = vmatpush.bf16.xpose.msrb.mxu0 %v6111_v7 }
 0x459   : > { %2943 = vmatpush.bf16.xpose.msrb.mxu3 %v6118_v31 }
 0x45d   : > { %4095 = vmatpush.bf16.xpose.msrb.mxu2 %v4041_v12  ;;  %v3105_v12 = vld [vmem:[#allocation2 + $0x1c6] sm:$0xff] }
 0x45e   : > { %4224 = vmatpush.bf16.xpose.msrb.mxu1 %v5983_v4  ;;  %v2560_v4 = vpop.f32.mrf.mxu0 }
 0x45f   : > { %3590 = vmatpush.bf16.xpose.msrb.mxu0 %v6118_v31 }
 0x461   : > { %2944 = vmatpush.bf16.xpose.msrb.mxu3 %v6054_v42 }
 0x462   : > { %v3709_v43 = vpop.f32.mrf.mxu1 }
 0x464   : > { %4738 = vmatmul.msk.bf16.vlgmr.msrb.gmra.mxu2 %vm1036_vm1, %v6128_v16 }
 0x465   : > { %4346 = vmatpush.bf16.xpose.msra.mxu2 %v5988_v27  ;;  %v4317_v27 = vsel %vm1036_vm1, %v4285_v17, 0  ;;  %4741 = vmatmul.msk.bf16.vlgmr.msrb.gmra.mxu1 %vm1036_vm1, %v6133_v2  ;;  %v3128_v17 = vpack.c.bf16 %v3106_v46, %v3105_v12  ;;  %v3363_v12 = vld [vmem:[#allocation2 + $0x1c8] sm:$0xff] }
 0x466   : > { %v2562_v54 = vpop.f32.mrf.mxu0 }
 0x467   : > { %3591 = vmatpush.bf16.xpose.msrb.mxu0 %v6054_v42  ;;  %v3179_v42 = vsel %vm1036_vm1, %v3131_v52, 0  ;;  %v3580_v3 = vpop.f32.mrf.mxu2  ;;  %v3170_v48 = vsel %vm1036_vm1, %v3128_v17, 0  ;;  %v3126_v54 = vpack.c.bf16 %v3102_v15, %v3101_v53  ;;  %v3372_v52 = vld [vmem:[#allocation2 + $0x250] sm:$0xff]  ;;  %v3357_v15 = vld [vmem:[#allocation2 + $0x168] sm:$0xff]  ;;  %v4294_v53 = vpack.c.bf16 %v4276_v19, %v4275_v13 }
 0x468   : > { %v3597_v8 = vadd.f32 %v3580_v3, %v6095_v0  ;;  %v4250_v0 = vld [vmem:[#allocation2 + $0xd2] sm:$0xff] }
 0x469   : > { %2945 = vmatpush.bf16.xpose.msrb.mxu3 %v6076_v45  ;;  %v3109_v45 = vld [vmem:[#allocation2 + $0x206] sm:$0xff]  ;;  %v4281_v58 = vpack.c.bf16 %v4250_v0, %v4249_v44  ;;  %v3164_v60 = vsel %vm1036_vm1, %v3126_v54, 0 }
 0x46a   : > { %v3130_v29 = vpack.c.bf16 %v3110_v6, %v3109_v45  ;;  %v6156_v51 = vadd.f32 %v3709_v43, %v3597_v8  ;;  %v3711_v47 = vpop.f32.mrf.mxu1  ;;  %v4017_v43 = vld [vmem:[#allocation2 + $0x268] sm:$0xff]  ;;  %v3370_v8 = vld [vmem:[#allocation2 + $0x230] sm:$0xff] }
 0x46b   : > { %v4305_v37 = vsel %vm1036_vm1, %v4281_v58, 0  ;;  %v4036_v45 = vpack.c.bf16 %v4018_v1, %v4017_v43  ;;  %v4823_v47 = vld [vmem:[%s6263_s5 + $0x3c] sm:$0xf]  ;;  %v3627_v43 = vld [vmem:[#allocation2 + $0x22a] sm:$0xff]  ;;  %v3628_v1 = vld [vmem:[#allocation2 + $0x232] sm:$0xff] }
 0x46d   : > { %4347 = vmatpush.bf16.xpose.msra.mxu2 %v4317_v27  ;;  %v3103_v27 = vld [vmem:[#allocation2 + $0x1a6] sm:$0xff]  ;;  %v4086_v3 = vsel %vm1036_vm1, %v4036_v45, 0 }
 0x46e   : > { %4727 = vmatmul.msk.bf16.vlgmr.msrb.gmra.mxu0 %vm1036_vm1, %v6004_v32  ;;  %v3176_v32 = vsel %vm1036_vm1, %v3130_v29, 0 }
 0x46f   : > { %3843 = vmatpush.bf16.xpose.msra.mxu0 %v3828_v50  ;;  %v3582_v24 = vpop.f32.mrf.mxu2 }
 0x470   : > { %4712 = vmatmul.msk.bf16.vlgmr.msrb.gmra.mxu3 %vm1036_vm1, %v4822_v61  ;;  %v2818_v61 = vpop.f32.mrf.mxu0 }
 0x471   : > { %3197 = vmatpush.bf16.xpose.msra.mxu3 %v3182_v10 }
 0x473   : > { %v2431_v38 = vpop.f32.mrf.mxu3 }
 0x474   : > { %v2436_v59 = vadd.f32 %v2431_v38, %v6107_v39  ;;  %v4302_v39 = vsel %vm1036_vm1, %v4280_v14, 0  ;;  %v3362_v14 = vld [vmem:[#allocation2 + $0x1b0] sm:$0xff] }
 0x475   : > { %4348 = vmatpush.bf16.xpose.msra.mxu2 %v4314_v41  ;;  %v6175_v41 = vld [vmem:[%s6263_s5 + $0x60] sm:$0xf] }
 0x476   : > { %v6163_v40 = vadd.f32 %v2560_v4, %v2436_v59  ;;  %v3127_v4 = vpack.c.bf16 %v3104_v56, %v3103_v27 }
 0x477   : > { %3844 = vmatpush.bf16.xpose.msra.mxu0 %v3182_v10  ;;  %v4279_v10 = vpack.c.bf16 %v4246_v18, %v4245_v22  ;;  %v3629_v22 = vld [vmem:[#allocation2 + $0x24a] sm:$0xff] }
 0x478   : > { %v3167_v50 = vsel %vm1036_vm1, %v3127_v4, 0  ;;  %v2820_v34 = vpop.f32.mrf.mxu0  ;;  %v3630_v4 = vld [vmem:[#allocation2 + $0x252] sm:$0xff] }
 0x479   : > { %3198 = vmatpush.bf16.xpose.msra.mxu3 %v3179_v42  ;;  %v4299_v20 = vsel %vm1036_vm1, %v4279_v10, 0  ;;  %v3358_v10 = vld [vmem:[#allocation2 + $0x170] sm:$0xff] }
 0x47a   : > { %v3383_v54 = vpack.c.bf16 %v3358_v10, %v3357_v15 }
 0x47b   : > { %v2433_v62 = vpop.f32.mrf.mxu3 }
 0x47d   : > { %4349 = vmatpush.bf16.xpose.msra.mxu2 %v4311_v23  ;;  %v3369_v23 = vld [vmem:[#allocation2 + $0x228] sm:$0xff] }
 0x47e   : > { %v3389_v63 = vpack.c.bf16 %v3370_v8, %v3369_v23  ;;  %v3625_v23 = vld [vmem:[#allocation2 + $0x20a] sm:$0xff]  ;;  %v3626_v8 = vld [vmem:[#allocation2 + $0x212] sm:$0xff] }
 0x47f   : > { %3845 = vmatpush.bf16.xpose.msra.mxu0 %v3179_v42  ;;  %v3390_v42 = vpack.c.bf16 %v3372_v52, %v3371_v9  ;;  %v3419_v52 = vsel %vm1036_vm1, %v3383_v54, 0 }
 0x480   : > { %v3437_v33 = vsel %vm1036_vm1, %v3389_v63, 0  ;;  %v3646_v63 = vpack.c.bf16 %v3626_v8, %v3625_v23  ;;  %v3880_v8 = vld [vmem:[#allocation2 + $0x1e7] sm:$0xff] }
 0x481   : > { %3199 = vmatpush.bf16.xpose.msra.mxu3 %v3176_v32  ;;  %v3440_v6 = vsel %vm1036_vm1, %v3390_v42, 0  ;;  %v3647_v42 = vpack.c.bf16 %v3628_v1, %v3627_v43  ;;  %v3883_v43 = vld [vmem:[#allocation2 + $0x20f] sm:$0xff] }
 0x485   : > { %4350 = vmatpush.bf16.xpose.msra.mxu2 %v4308_v5 }
 0x487   : > { %3846 = vmatpush.bf16.xpose.msra.mxu0 %v3176_v32  ;;  %v3368_v32 = vld [vmem:[#allocation2 + $0x210] sm:$0xff] }
 0x489   : > { %3200 = vmatpush.bf16.xpose.msra.mxu3 %v3173_v35 }
 0x48d   : > { %4351 = vmatpush.bf16.xpose.msra.mxu2 %v4305_v37 }
 0x48f   : > { %3847 = vmatpush.bf16.xpose.msra.mxu0 %v3173_v35 }
 0x491   : > { %3201 = vmatpush.bf16.xpose.msra.mxu3 %v3170_v48 }
 0x495   : > { %4352 = vmatpush.bf16.xpose.msra.mxu2 %v4302_v39  ;;  %v3360_v39 = vld [vmem:[#allocation2 + $0x190] sm:$0xff] }
 0x497   : > { %3848 = vmatpush.bf16.xpose.msra.mxu0 %v3170_v48  ;;  %v3361_v48 = vld [vmem:[#allocation2 + $0x1a8] sm:$0xff] }
 0x498   : > { %v3385_v62 = vpack.c.bf16 %v3362_v14, %v3361_v48  ;;  %v3889_v14 = vld [vmem:[#allocation2 + $0x26f] sm:$0xff] }
 0x499   : > { %3202 = vmatpush.bf16.xpose.msra.mxu3 %v3167_v50  ;;  %v3615_v48 = vld [vmem:[#allocation2 + $0x16a] sm:$0xff] }
 0x49a   : > { %v3425_v56 = vsel %vm1036_vm1, %v3385_v62, 0  ;;  %v3616_v62 = vld [vmem:[#allocation2 + $0x172] sm:$0xff] }
 0x49d   : > { %4353 = vmatpush.bf16.xpose.msra.mxu2 %v4299_v20  ;;  %v3648_v20 = vpack.c.bf16 %v3630_v4, %v3629_v22  ;;  %v3887_v4 = vld [vmem:[#allocation2 + $0x24f] sm:$0xff] }
 0x49f   : > { %3849 = vmatpush.bf16.xpose.msra.mxu0 %v3167_v50  ;;  %v3076_v50 = vpop.f32.mrf.mxu0  ;;  %v3698_v9 = vsel %vm1036_vm1, %v3648_v20, 0  ;;  %v3884_v20 = vld [vmem:[#allocation2 + $0x227] sm:$0xff] }
 0x4a1   : > { %3203 = vmatpush.bf16.xpose.msra.mxu3 %v3164_v60 }
 0x4a4   : > { %4744 = vmatmul.msk.bf16.vlgmr.msra.gmra.mxu2 %vm1036_vm1, %v6175_v41  ;;  %v3968_v29 = vpop.f32.mrf.mxu1 }
 0x4a7   : > { %3850 = vmatpush.bf16.xpose.msra.mxu0 %v3164_v60  ;;  %v3839_v30 = vpop.f32.mrf.mxu2  ;;  %v4344_v60 = vsel %vm1036_vm1, %v4294_v53, 0  ;;  %v3885_v53 = vld [vmem:[#allocation2 + $0x22f] sm:$0xff] }
 0x4a8   : > { %v3856_v5 = vadd.f32 %v3839_v30, %v6156_v51  ;;  %v3364_v51 = vld [vmem:[#allocation2 + $0x1d0] sm:$0xff] }
 0x4a9   : > { %3204 = vmatpush.bf16.xpose.msra.mxu3 %v5993_v25  ;;  %v3367_v25 = vld [vmem:[#allocation2 + $0x208] sm:$0xff]  ;;  %v3386_v55 = vpack.c.bf16 %v3364_v51, %v3363_v12 }
 0x4aa   : > { %v3388_v24 = vpack.c.bf16 %v3368_v32, %v3367_v25  ;;  %v6191_v57 = vadd.f32 %v3968_v29, %v3856_v5  ;;  %v3624_v25 = vld [vmem:[#allocation2 + $0x1f2] sm:$0xff]  ;;  %v3617_v12 = vld [vmem:[#allocation2 + $0x18a] sm:$0xff] }
 0x4ab   : > { %v3428_v49 = vsel %vm1036_vm1, %v3386_v55, 0 }
 0x4ac   : > { %v3970_v44 = vpop.f32.mrf.mxu1  ;;  %v3434_v0 = vsel %vm1036_vm1, %v3388_v24, 0 }
 0x4ad   : > { %v3621_v44 = vld [vmem:[#allocation2 + $0x1ca] sm:$0xff] }
 0x4ae   : > { %4733 = vmatmul.msk.bf16.vlgmr.msra.gmra.mxu0 %vm1036_vm1, %v6060_v11  ;;  %v3365_v11 = vld [vmem:[#allocation2 + $0x1e8] sm:$0xff] }
 0x4af   : > { %4101 = vmatpush.bf16.xpose.msrb.mxu0 %v4086_v3  ;;  %v3841_v58 = vpop.f32.mrf.mxu2  ;;  %v3387_v38 = vpack.c.bf16 %v3366_v28, %v3365_v11  ;;  %v3695_v3 = vsel %vm1036_vm1, %v3647_v42, 0 }
 0x4b0   : > { %4718 = vmatmul.msk.bf16.vlgmr.msra.gmra.mxu3 %vm1036_vm1, %v4823_v47  ;;  %v3692_v47 = vsel %vm1036_vm1, %v3646_v63, 0 }
 0x4b1   : > { %3455 = vmatpush.bf16.xpose.msrb.mxu3 %v3440_v6  ;;  %v3431_v59 = vsel %vm1036_vm1, %v3387_v38, 0 }
 0x4b3   : > { %v2689_v35 = vpop.f32.mrf.mxu3 }
 0x4b4   : > { %v2694_v46 = vadd.f32 %v2689_v35, %v6163_v40  ;;  %v3359_v40 = vld [vmem:[#allocation2 + $0x188] sm:$0xff] }
 0x4b5   : > { %v3384_v27 = vpack.c.bf16 %v3360_v39, %v3359_v40  ;;  %v3619_v35 = vld [vmem:[#allocation2 + $0x1aa] sm:$0xff]  ;;  %v3641_v40 = vpack.c.bf16 %v3616_v62, %v3615_v48 }
 0x4b6   : > { %v2823_v37 = vadd.f32 %v2818_v61, %v2694_v46  ;;  %v3078_v61 = vpop.f32.mrf.mxu0 }
 0x4b7   : > { %4102 = vmatpush.bf16.xpose.msrb.mxu0 %v3440_v6  ;;  %v3422_v18 = vsel %vm1036_vm1, %v3384_v27, 0  ;;  %v4824_v6 = vld [vmem:[%s6263_s5 + $0x44] sm:$0xf]  ;;  %v3677_v22 = vsel %vm1036_vm1, %v3641_v40, 0 }
 0x4b9   : > { %3456 = vmatpush.bf16.xpose.msrb.mxu3 %v3437_v33 }
 0x4bb   : > { %v2691_v17 = vpop.f32.mrf.mxu3 }
 0x4bc   : > { %v3888_v17 = vld [vmem:[#allocation2 + $0x267] sm:$0xff] }
 0x4bd   : > { %v3907_v39 = vpack.c.bf16 %v3889_v14, %v3888_v17  ;;  %v4142_v17 = vld [vmem:[#allocation2 + $0x229] sm:$0xff]  ;;  %v4143_v14 = vld [vmem:[#allocation2 + $0x231] sm:$0xff] }
 0x4be   : > { %v4163_v48 = vpack.c.bf16 %v4143_v14, %v4142_v17 }
 0x4bf   : > { %4103 = vmatpush.bf16.xpose.msrb.mxu0 %v3437_v33  ;;  %v3623_v33 = vld [vmem:[#allocation2 + $0x1ea] sm:$0xff]  ;;  %v3957_v27 = vsel %vm1036_vm1, %v3907_v39, 0 }
 0x4c0   : > { %v3645_v30 = vpack.c.bf16 %v3624_v25, %v3623_v33  ;;  %v3878_v33 = vld [vmem:[#allocation2 + $0x1c7] sm:$0xff]  ;;  %v4209_v62 = vsel %vm1036_vm1, %v4163_v48, 0  ;;  %v4141_v39 = vld [vmem:[#allocation2 + $0x211] sm:$0xff] }
 0x4c1   : > { %3457 = vmatpush.bf16.xpose.msrb.mxu3 %v3434_v0 }
 0x4c7   : > { %4104 = vmatpush.bf16.xpose.msrb.mxu0 %v3434_v0  ;;  %v3622_v0 = vld [vmem:[#allocation2 + $0x1d2] sm:$0xff] }
 0x4c8   : > { %v3644_v58 = vpack.c.bf16 %v3622_v0, %v3621_v44  ;;  %v4146_v44 = vld [vmem:[#allocation2 + $0x269] sm:$0xff]  ;;  %v4147_v0 = vld [vmem:[#allocation2 + $0x271] sm:$0xff] }
 0x4c9   : > { %3458 = vmatpush.bf16.xpose.msrb.mxu3 %v3431_v59 }
 0x4ca   : > { %v3686_v11 = vsel %vm1036_vm1, %v3644_v58, 0 }
 0x4cf   : > { %4105 = vmatpush.bf16.xpose.msrb.mxu0 %v3431_v59  ;;  %v3620_v59 = vld [vmem:[#allocation2 + $0x1b2] sm:$0xff] }
 0x4d0   : > { %v3643_v46 = vpack.c.bf16 %v3620_v59, %v3619_v35 }
 0x4d1   : > { %3459 = vmatpush.bf16.xpose.msrb.mxu3 %v3428_v49 }
 0x4d2   : > { %v3683_v51 = vsel %vm1036_vm1, %v3643_v46, 0 }
 0x4d7   : > { %4106 = vmatpush.bf16.xpose.msrb.mxu0 %v3428_v49 }
 0x4d9   : > { %3460 = vmatpush.bf16.xpose.msrb.mxu3 %v3425_v56 }
 0x4df   : > { %4107 = vmatpush.bf16.xpose.msrb.mxu0 %v3425_v56  ;;  %v3335_v56 = vpop.f32.mrf.mxu0 }
 0x4e1   : > { %3461 = vmatpush.bf16.xpose.msrb.mxu3 %v3422_v18 }
 0x4e2   : > { %v6202_v45 = vpop.f32.mrf.mxu1 }
 0x4e7   : > { %4108 = vmatpush.bf16.xpose.msrb.mxu0 %v3422_v18  ;;  %v4097_v34 = vpop.f32.mrf.mxu2  ;;  %v3886_v18 = vld [vmem:[#allocation2 + $0x247] sm:$0xff]  ;;  %v3337_v13 = vpop.f32.mrf.mxu0 }
 0x4e8   : > { %v3906_v19 = vpack.c.bf16 %v3887_v4, %v3886_v18  ;;  %v4114_v10 = vadd.f32 %v4097_v34, %v6191_v57  ;;  %v4138_v4 = vld [vmem:[#allocation2 + $0x1e9] sm:$0xff]  ;;  %v4139_v13 = vld [vmem:[#allocation2 + $0x1f1] sm:$0xff] }
 0x4e9   : > { %3462 = vmatpush.bf16.xpose.msrb.mxu3 %v3419_v52  ;;  %v3882_v52 = vld [vmem:[#allocation2 + $0x207] sm:$0xff] }
 0x4ea   : > { %v4228_v29 = vpop.f32.mrf.mxu1  ;;  %v4243_v15 = vadd.f32 %v6202_v45, %v4114_v10  ;;  %v3904_v61 = vpack.c.bf16 %v3883_v43, %v3882_v52  ;;  %v4161_v10 = vpack.c.bf16 %v4139_v13, %v4138_v4 }
 0x4ec   : > { %v3948_v45 = vsel %vm1036_vm1, %v3904_v61, 0 }
 0x4ee   : > { %4739 = vmatmul.msk.bf16.vlgmr.msrb.gmra.mxu0 %vm1036_vm1, %v6128_v16  ;;  %v3689_v16 = vsel %vm1036_vm1, %v3645_v30, 0  ;;  %v3877_v30 = vld [vmem:[#allocation2 + $0x1af] sm:$0xff] }
 0x4ef   : > { %4359 = vmatpush.bf16.xpose.msra.mxu0 %v4344_v60  ;;  %v4099_v32 = vpop.f32.mrf.mxu2  ;;  %v3593_v58 = vpop.f32.mrf.mxu0 }
 0x4f0   : > { %4724 = vmatmul.msk.bf16.vlgmr.msrb.gmra.mxu3 %vm1036_vm1, %v4824_v6 }
 0x4f1   : > { %3713 = vmatpush.bf16.xpose.msra.mxu3 %v3698_v9 }
 0x4f3   : > { %v2947_v5 = vpop.f32.mrf.mxu3 }
 0x4f4   : > { %v2952_v24 = vadd.f32 %v2947_v5, %v2823_v37  ;;  %v3618_v37 = vld [vmem:[#allocation2 + $0x192] sm:$0xff]  ;;  %v3876_v5 = vld [vmem:[#allocation2 + $0x1a7] sm:$0xff] }
 0x4f5   : > { %v3642_v55 = vpack.c.bf16 %v3618_v37, %v3617_v12  ;;  %v4145_v12 = vld [vmem:[#allocation2 + $0x251] sm:$0xff] }
 0x4f6   : > { %v3081_v28 = vadd.f32 %v3076_v50, %v2952_v24  ;;  %v3954_v50 = vsel %vm1036_vm1, %v3906_v19, 0 }
 0x4f7   : > { %4360 = vmatpush.bf16.xpose.msra.mxu0 %v3698_v9  ;;  %v3680_v49 = vsel %vm1036_vm1, %v3642_v55, 0  ;;  %v6226_v9 = vpop.permute.xlu0 %4377  ;;  %v3595_v37 = vpop.f32.mrf.mxu0 }
 0x4f9   : > { %3714 = vmatpush.bf16.xpose.msra.mxu3 %v3695_v3 }
 0x4fb   : > { %v2949_v38 = vpop.f32.mrf.mxu3 }
 0x4fc   : > { %v4165_v38 = vpack.c.bf16 %v4147_v0, %v4146_v44 }
 0x4fe   : > { %v4215_v59 = vsel %vm1036_vm1, %v4165_v38, 0 }
 0x4ff   : > { %4361 = vmatpush.bf16.xpose.msra.mxu0 %v3695_v3  ;;  %v3881_v3 = vld [vmem:[#allocation2 + $0x1ef] sm:$0xff] }
 0x500   : > { %v3903_v34 = vpack.c.bf16 %v3881_v3, %v3880_v8 }
 0x501   : > { %3715 = vmatpush.bf16.xpose.msra.mxu3 %v3692_v47 }
 0x502   : > { %v3945_v63 = vsel %vm1036_vm1, %v3903_v34, 0 }
 0x507   : > { %4362 = vmatpush.bf16.xpose.msra.mxu0 %v3692_v47  ;;  %v3879_v47 = vld [vmem:[#allocation2 + $0x1cf] sm:$0xff] }
 0x508   : > { %v3902_v25 = vpack.c.bf16 %v3879_v47, %v3878_v33 }
 0x509   : > { %3716 = vmatpush.bf16.xpose.msra.mxu3 %v3689_v16 }
 0x50a   : > { %v3942_v32 = vsel %vm1036_vm1, %v3902_v25, 0 }
 0x50f   : > { %4363 = vmatpush.bf16.xpose.msra.mxu0 %v3689_v16  ;;  %v3901_v16 = vpack.c.bf16 %v3877_v30, %v3876_v5 }
 0x511   : > { %3717 = vmatpush.bf16.xpose.msra.mxu3 %v3686_v11  ;;  %v3939_v24 = vsel %vm1036_vm1, %v3901_v16, 0 }
 0x517   : > { %4364 = vmatpush.bf16.xpose.msra.mxu0 %v3686_v11  ;;  %v3874_v11 = vld [vmem:[#allocation2 + $0x187] sm:$0xff] }
 0x519   : > { %3718 = vmatpush.bf16.xpose.msra.mxu3 %v3683_v51 }
 0x51f   : > { %4365 = vmatpush.bf16.xpose.msra.mxu0 %v3683_v51  ;;  %v4144_v51 = vld [vmem:[#allocation2 + $0x249] sm:$0xff] }
 0x520   : > { %v4164_v55 = vpack.c.bf16 %v4145_v12, %v4144_v51 }
 0x521   : > { %3719 = vmatpush.bf16.xpose.msra.mxu3 %v3680_v49 }
 0x527   : > { %4366 = vmatpush.bf16.xpose.msra.mxu0 %v3680_v49  ;;  %v4355_v54 = vpop.f32.mrf.mxu2  ;;  %v4212_v49 = vsel %vm1036_vm1, %v4164_v55, 0 }
 0x528   : > { %v4372_v60 = vadd.f32 %v4355_v54, %v4243_v15 }
 0x529   : > { %3720 = vmatpush.bf16.xpose.msra.mxu3 %v3677_v22 }
 0x52a   : > { %v4380_v57 = vadd.f32 %v6226_v9, %v4372_v60 }
 0x52b   : > { %v3852_v15 = vpop.f32.mrf.mxu0 }
 0x52c   : > { %4382 = vst [vmem:[%s6231_s21] sm:$0xff] %v4380_v57 }
 0x52e   : > { %4745 = vmatmul.msk.bf16.vlgmr.msra.gmra.mxu0 %vm1036_vm1, %v6175_v41 }
 0x52f   : > { %v4357_v1 = vpop.f32.mrf.mxu2 }
 0x530   : > { %4730 = vmatmul.msk.bf16.vlgmr.msra.gmra.mxu3 %vm1036_vm1, %v6009_v21  ;;  %v3905_v21 = vpack.c.bf16 %v3885_v53, %v3884_v20 }
 0x531   : > { %3972 = vmatpush.bf16.xpose.msrb.mxu3 %v3957_v27 }
 0x532   : > { %v3951_v41 = vsel %vm1036_vm1, %v3905_v21, 0 }
 0x533   : > { %v3206_v42 = vpop.f32.mrf.mxu3  ;;  %v3854_v20 = vpop.f32.mrf.mxu0 }
 0x534   : > { %v3211_v6 = vadd.f32 %v3206_v42, %v3081_v28  ;;  %v3875_v28 = vld [vmem:[#allocation2 + $0x18f] sm:$0xff] }
 0x535   : > { %v3900_v35 = vpack.c.bf16 %v3875_v28, %v3874_v11 }
 0x536   : > { %v3340_v23 = vadd.f32 %v3335_v56, %v3211_v6  ;;  %v4140_v56 = vld [vmem:[#allocation2 + $0x209] sm:$0xff] }
 0x537   : > { %v3936_v46 = vsel %vm1036_vm1, %v3900_v35, 0  ;;  %v4162_v40 = vpack.c.bf16 %v4141_v39, %v4140_v56 }
 0x539   : > { %3973 = vmatpush.bf16.xpose.msrb.mxu3 %v3954_v50  ;;  %v4206_v22 = vsel %vm1036_vm1, %v4162_v40, 0 }
 0x53b   : > { %v3208_v29 = vpop.f32.mrf.mxu3 }
 0x541   : > { %3974 = vmatpush.bf16.xpose.msrb.mxu3 %v3951_v41 }
 0x549   : > { %3975 = vmatpush.bf16.xpose.msrb.mxu3 %v3948_v45 }
 0x551   : > { %3976 = vmatpush.bf16.xpose.msrb.mxu3 %v3945_v63 }
 0x559   : > { %3977 = vmatpush.bf16.xpose.msrb.mxu3 %v3942_v32 }
 0x561   : > { %3978 = vmatpush.bf16.xpose.msrb.mxu3 %v3939_v24 }
 0x569   : > { %3979 = vmatpush.bf16.xpose.msrb.mxu3 %v3936_v46 }
 0x56b   : > { %v4110_v57 = vpop.f32.mrf.mxu0 }
 0x570   : > { %4736 = vmatmul.msk.bf16.vlgmr.msrb.gmra.mxu3 %vm1036_vm1, %v6065_v36  ;;  %v4203_v36 = vsel %vm1036_vm1, %v4161_v10, 0 }
 0x571   : > { %4230 = vmatpush.bf16.xpose.msra.mxu3 %v4215_v59 }
 0x573   : > { %v3464_v27 = vpop.f32.mrf.mxu3  ;;  %v4112_v41 = vpop.f32.mrf.mxu0 }
 0x574   : > { %v3469_v18 = vadd.f32 %v3464_v27, %v3340_v23 }
 0x576   : > { %v3598_v19 = vadd.f32 %v3593_v58, %v3469_v18 }
 0x579   : > { %4231 = vmatpush.bf16.xpose.msra.mxu3 %v4212_v49 }
 0x57b   : > { %v3466_v50 = vpop.f32.mrf.mxu3 }
 0x581   : > { %4232 = vmatpush.bf16.xpose.msra.mxu3 %v4209_v62 }
 0x589   : > { %4233 = vmatpush.bf16.xpose.msra.mxu3 %v4206_v22 }
 0x591   : > { %4234 = vmatpush.bf16.xpose.msra.mxu3 %v4203_v36 }
 0x599   : > { %4235 = vmatpush.bf16.xpose.msra.mxu3 %v6101_v26 }
 0x5a1   : > { %4236 = vmatpush.bf16.xpose.msra.mxu3 %v6111_v7 }
 0x5a9   : > { %4237 = vmatpush.bf16.xpose.msra.mxu3 %v6118_v31 }
 0x5ab   : > { %v4368_v52 = vpop.f32.mrf.mxu0 }
 0x5b0   : > { %4742 = vmatmul.msk.bf16.vlgmr.msra.gmra.mxu3 %vm1036_vm1, %v6133_v2 }
 0x5b3   : > { %v3722_v53 = vpop.f32.mrf.mxu3  ;;  %v4370_v43 = vpop.f32.mrf.mxu0 }
 0x5b4   : > { %v3727_v54 = vadd.f32 %v3722_v53, %v3598_v19 }
 0x5b6   : > { %v3857_v60 = vadd.f32 %v3852_v15, %v3727_v54 }
 0x5bb   : > { %v3724_v21 = vpop.f32.mrf.mxu3 }
 0x5f3   : > { %v3981_v1 = vpop.f32.mrf.mxu3 }
 0x5f4   : > { %v3986_v26 = vadd.f32 %v3981_v1, %v3857_v60 }
 0x5f6   : > { %v4115_v61 = vadd.f32 %v4110_v57, %v3986_v26 }
 0x5fb   : > { %v3983_v7 = vpop.f32.mrf.mxu3 }
 0x633   : > { %v4239_v42 = vpop.f32.mrf.mxu3 }
 0x634   : > { %v4244_v45 = vadd.f32 %v4239_v42, %v4115_v61 }
 0x636   : > { %v4373_v31 = vadd.f32 %v4368_v52, %v4244_v45 }
 0x638   : > { %v4381_v6 = vadd.f32 %v6226_v9, %v4373_v31 }
 0x63a   : > { %4383 = vst [vmem:[%s6231_s21 + $0x8] sm:$0xff] %v4381_v6 }
 0x63b   : > { %v4241_v2 = vpop.f32.mrf.mxu3 }
 0x63c PF: > { %s17_s24 = sadd.s32 1, %s4831_s24  }
 0x63d   : > { %p14_p4 = scmp.ge.s32.totalorder %s17_s24, 4  }
 0x63f   :  { %16 = sbr.rel (!%p14_p4) target bundleno = 1 (0x1), region = 106 }

</bundles_post_ra>
